<compile_context>
chip_gen: v6e
topology: v6e:2x2x1
jax: 0.10.0
libtpu: 0.0.40
codegen_flags: <defaults>
</compile_context>

<pallas_src>
from functools import partial

import numpy as np
import jax
import jax.numpy as jnp
from jax.experimental import pallas as pl
from jax.experimental.pallas import tpu as pltpu


def _round_up(x, m):
    return ((x + m - 1) // m) * m


def _vmem_budget():
    """(vmem_limit_bytes, per-input-buffer block budget), generation aware."""
    cap = 64 * 1024 * 1024
    try:
        info = pltpu.get_tpu_info()
        cap = int(getattr(info, "vmem_capacity_bytes", cap) or cap)
    except Exception:
        pass
    # ~96 MiB on 128 MiB parts (v5e/v6e), ~48 MiB on 64 MiB parts (v7x).
    limit = max(32 * 1024 * 1024, (cap * 3) // 4)
    blk_budget = limit // 3          # double-buffered x blocks stay <= 2/3 of limit
    return limit, blk_budget


def spatial_attention_kernel(x_ref, col_ref, w_ref, o_ref,
                             sum_ref, max_ref, pad_ref,
                             *, K, C, Cc, Nb, H, W, B, L, chunk):
    """x_ref: (Nb, Cc, HW) VMEM; col_ref: (1, HW) i32 VMEM; w_ref: (2*K*K,) SMEM;
    o_ref: (Nb, HW) VMEM; sum/max_ref: (Nb, HW) f32; pad_ref: (2*Nb, L) f32."""
    HW = H * W
    n_idx = pl.program_id(0)
    c_idx = pl.program_id(1)
    n_c = pl.num_programs(1)
    P = K // 2
    S = P * W + P              # largest negative flat shift of any tap
    DOFF = B - S               # base offset of the tap slices (>= 0)

    # ---- zero only the pad borders, once (image region is overwritten each finalize) ----
    @pl.when((n_idx == 0) & (c_idx == 0))
    def _zero_borders():
        pad_ref[:, pl.ds(0, B)] = jnp.zeros((2 * Nb, B), jnp.float32)
        pad_ref[:, pl.ds(B + HW, L - B - HW)] = jnp.zeros((2 * Nb, L - B - HW), jnp.float32)

    # ---- chunked channel reduction (cast per chunk, f32 accumulators) ----
    xf = x_ref[...].astype(jnp.float32)                   # (Nb, Cc, HW)
    if C % Cc != 0:
        # Mask channels of the ragged last C block.
        ch = jax.lax.broadcasted_iota(jnp.int32, (1, Cc, 1), 1)
        valid = ch < (C - c_idx * Cc)
        xs = jnp.where(valid, xf, 0.0)
        xm = jnp.where(valid, xf, -jnp.inf)
    else:
        xs = xf
        xm = xf
    chunk_sum = jnp.sum(xs, axis=1)                        # (Nb, HW)
    chunk_max = jnp.max(xm, axis=1)                        # (Nb, HW)

    @pl.when(c_idx == 0)
    def _init():
        sum_ref[...] = chunk_sum
        max_ref[...] = chunk_max

    @pl.when(c_idx > 0)
    def _accum():
        sum_ref[...] = sum_ref[...] + chunk_sum
        max_ref[...] = jnp.maximum(max_ref[...], chunk_max)

    # ---- finalize: KxK conv over (avg, max) + sigmoid, batched & lane-dense ----
    @pl.when(c_idx == n_c - 1)
    def _finalize():
        # Rows [0:Nb] = avg maps, rows [Nb:2Nb] = max maps, image data at lane
        # offset B inside the pre-zero-bordered flat padded scratch.
        pad_ref[0:Nb, pl.ds(B, HW)] = sum_ref[...] * (1.0 / C)
        pad_ref[Nb:2 * Nb, pl.ds(B, HW)] = max_ref[...]

        padv = pad_ref[...]                                # (2*Nb, L)
        col = col_ref[...]                                 # (1, HW) int32: lane -> column

        for s in range(0, HW, chunk):                      # lane-chunked accumulation
            cl = min(chunk, HW - s)
            colc = col[:, s:s + cl]
            acc = jnp.zeros((Nb, cl), jnp.float32)
            for kx in range(K):
                part = jnp.zeros((Nb, cl), jnp.float32)
                for ky in range(K):
                    off = DOFF + ky * W + kx + s
                    sl = padv[:, off:off + cl]             # (2*Nb, cl): one slice per tap
                    w_avg = w_ref[0 * K * K + ky * K + kx]
                    w_max = w_ref[1 * K * K + ky * K + kx]
                    part = part + w_avg * sl[0:Nb, :] + w_max * sl[Nb:2 * Nb, :]
                # SAME zero padding along W: validity depends only on kx.
                shifted = colc + (kx - P)
                ok = (shifted >= 0) & (shifted < W)        # (1, cl) bool
                acc = acc + jnp.where(ok, part, 0.0)
            o_ref[:, s:s + cl] = jax.nn.sigmoid(acc).astype(o_ref.dtype)


def spatial_attention(x, w, kernel_size, *, n_block=None, c_block=None):
    """x: (N, C, H, W); w: (1, 2, K, K) conv weight (no bias). Returns (N, 1, H, W)."""
    N, C, H, W = x.shape
    K = kernel_size
    assert w.shape == (1, 2, K, K)
    HW = H * W
    P = K // 2
    S = P * W + P
    B = _round_up(S, 128)                     # aligned start of image data in scratch
    L = _round_up(B + S + HW, 128)            # padded scratch length

    vmem_limit, blk_budget = _vmem_budget()
    itemsize = x.dtype.itemsize
    sub_mult = max(8, 32 // itemsize)         # sublane tile: 8 f32 / 16 bf16 / 32 int8
    per_nc = HW * itemsize                    # bytes of one (image, channel) plane

    # Channel tile: prefer the whole C resident so the reduction axis is one step.
    if c_block is not None:
        Cc = min(int(c_block), C)
    elif min(N, sub_mult) * C * per_nc <= blk_budget:
        Cc = C
    else:
        Cc = max(sub_mult,
                 (blk_budget // (min(N, sub_mult) * per_nc)) // sub_mult * sub_mult)
        Cc = min(Cc, C)
    if Cc < C:
        assert Cc % sub_mult == 0, (
            f"channel tile {Cc} must be a multiple of {sub_mult} for dtype {x.dtype}")
    n_c = pl.cdiv(C, Cc)

    # Batch tile: as many images per step as fit (sublane-dense finalize, fewer steps).
    if n_block is not None:
        Nb = min(int(n_block), N)
    elif N * Cc * per_nc <= blk_budget:
        Nb = N
    else:
        Nb = max(1, blk_budget // (Cc * per_nc))
        Nb = min(N, max(sub_mult, (Nb // sub_mult) * sub_mult))
    if Nb < N:
        assert Nb % sub_mult == 0, (
            f"batch tile {Nb} must be a multiple of {sub_mult} for dtype {x.dtype}")
    n_nb = pl.cdiv(N, Nb)

    x_flat = x.reshape(N, C, HW)
    w_flat = w.reshape(-1).astype(jnp.float32)

    # Lane -> column map (tiny, (1, HW) int32); per-kx masks are built in-kernel.
    col_idx = jnp.asarray(np.tile(np.arange(W, dtype=np.int32), H).reshape(1, HW))

    chunk = min(HW, 512)
    kern = partial(spatial_attention_kernel, K=K, C=C, Cc=Cc, Nb=Nb,
                   H=H, W=W, B=B, L=L, chunk=chunk)

    cost = pl.CostEstimate(
        flops=3 * N * C * HW + (4 * K * K + 2 * K) * N * HW,
        transcendentals=N * HW,
        bytes_accessed=(N * C * HW + N * HW) * itemsize + HW * 4 + 2 * K * K * 4,
    )

    out = pl.pallas_call(
        kern,
        out_shape=jax.ShapeDtypeStruct((N, HW), x.dtype),
        grid=(n_nb, n_c),
        in_specs=[
            pl.BlockSpec((Nb, Cc, HW), lambda n, c: (n, c, 0)),
            pl.BlockSpec((1, HW), lambda n, c: (0, 0)),
            pl.BlockSpec(memory_space=pltpu.MemorySpace.SMEM),
        ],
        out_specs=pl.BlockSpec((Nb, HW), lambda n, c: (n, 0)),
        scratch_shapes=[
            pltpu.VMEM((Nb, HW), jnp.float32),       # running sum
            pltpu.VMEM((Nb, HW), jnp.float32),       # running max
            pltpu.VMEM((2 * Nb, L), jnp.float32),    # zero-bordered (avg, max) flat maps
        ],
        compiler_params=pltpu.CompilerParams(
            dimension_semantics=("parallel", "arbitrary"),
            vmem_limit_bytes=int(vmem_limit),
        ),
        cost_estimate=cost,
    )(x_flat, col_idx, w_flat)
    return out.reshape(N, 1, H, W)


def reference(x, w):
    """Pure-JAX reference matching the PyTorch forward."""
    avg = jnp.mean(x, axis=1, keepdims=True)
    mx = jnp.max(x, axis=1, keepdims=True)
    inp = jnp.concatenate([avg, mx], axis=1)
    out = jax.lax.conv_general_dilated(
        inp, w, window_strides=(1, 1), padding="SAME",
        dimension_numbers=("NCHW", "OIHW", "NCHW"))
    return jax.nn.sigmoid(out)


def _make_inputs(key, N, C, H, W, K):
    kx, kw = jax.random.split(key)
    x = jax.random.normal(kx, (N, C, H, W), dtype=jnp.float32)
    fan_in = 2 * K * K
    bound = 1.0 / (fan_in ** 0.5)
    w = jax.random.uniform(kw, (1, 2, K, K), minval=-bound, maxval=bound,
                           dtype=jnp.float32)
    return x, w


if __name__ == "__main__":
    key = jax.random.PRNGKey(0)
    k1, k2 = jax.random.split(key)

    # Main case (typical CBAM use): K=7, 16x16 maps; all N images batched in 1 step.
    N, C, H, W, K = 2, 4, 16, 16, 7
    x, w = _make_inputs(k1, N, C, H, W, K)
    out = jax.block_until_ready(spatial_attention(x, w, K))
    ref = reference(x, w)
    assert out.shape == (N, 1, H, W)
    assert jnp.allclose(out, ref, atol=1e-5, rtol=1e-5)

    # Second case exercising the chunked-C reduction path (K=3, C tiled).
    N2, C2, H2, W2, K2 = 1, 16, 8, 24, 3
    x2, w2 = _make_inputs(k2, N2, C2, H2, W2, K2)
    out2 = jax.block_until_ready(spatial_attention(x2, w2, K2, c_block=8))
    ref2 = reference(x2, w2)
    assert out2.shape == (N2, 1, H2, W2)
    assert jnp.allclose(out2, ref2, atol=1e-5, rtol=1e-5)

    print("KERNEL_OK")
</pallas_src>

<mosaic_0001>
module attributes {stable_mosaic.version = 11 : i64} {
  func.func @spatial_attention_kernel(%arg0: i32, %arg1: i32, %arg2: memref<2x4x256xf32, #tpu.memory_space<vmem>>, %arg3: memref<1x256xi32, #tpu.memory_space<vmem>>, %arg4: memref<98xf32, #tpu.memory_space<smem>>, %arg5: memref<2x256xf32, #tpu.memory_space<vmem>>, %arg6: memref<2x256xf32, #tpu.memory_space<vmem>>, %arg7: memref<2x256xf32, #tpu.memory_space<vmem>>, %arg8: memref<4x512xf32, #tpu.memory_space<vmem>>) attributes {dimension_semantics = [#tpu.dimension_semantics<parallel>, #tpu.dimension_semantics<arbitrary>], iteration_bounds = array<i64: 1, 1>, scalar_prefetch = 0 : i64, scratch_operands = 3 : i64, tpu.core_type = #tpu.core_type<tc>, window_params = [{transform_indices = @transform_0, window_bounds = array<i64: 2, 4, 256>}, {pipeline_mode = #tpu.pipeline_mode<synchronous>, transform_indices = @transform_1, window_bounds = array<i64: 1, 256>}, {transform_indices = @transform_2, window_bounds = array<i64: 98>}, {transform_indices = @transform_3, window_bounds = array<i64: 2, 256>}]} {
    %c0_i32 = arith.constant 0 : i32
    %0 = arith.cmpi eq, %arg0, %c0_i32 : i32
    %c0_i32_0 = arith.constant 0 : i32
    %1 = arith.cmpi eq, %arg1, %c0_i32_0 : i32
    %2 = arith.andi %0, %1 : i1
    %3 = arith.extui %2 : i1 to i32
    %c0_i32_1 = arith.constant 0 : i32
    %4 = arith.cmpi ne, %3, %c0_i32_1 : i32
    scf.if %4 {
      %cst_11 = arith.constant 0.000000e+00 : f32
      %17 = vector.broadcast %cst_11 : f32 to vector<4x128xf32>
      %c0_12 = arith.constant 0 : index
      %c0_13 = arith.constant 0 : index
      %18 = vector.load %arg8[%c0_12, %c0_13] : memref<4x512xf32, #tpu.memory_space<vmem>>, vector<4x128xf32>
      tpu.vector_store %arg8[%c0_12, %c0_13], %17 {strides = array<i32>} : memref<4x512xf32, #tpu.memory_space<vmem>>, vector<4x128xf32>,
      %cst_14 = arith.constant 0.000000e+00 : f32
      %19 = vector.broadcast %cst_14 : f32 to vector<4x128xf32>
      %c0_15 = arith.constant 0 : index
      %c384 = arith.constant 384 : index
      %20 = vector.load %arg8[%c0_15, %c384] : memref<4x512xf32, #tpu.memory_space<vmem>>, vector<4x128xf32>
      tpu.vector_store %arg8[%c0_15, %c384], %19 {strides = array<i32>} : memref<4x512xf32, #tpu.memory_space<vmem>>, vector<4x128xf32>,
    } else {
    }
    %c0 = arith.constant 0 : index
    %c0_2 = arith.constant 0 : index
    %c0_3 = arith.constant 0 : index
    %5 = vector.load %arg2[%c0, %c0_2, %c0_3] : memref<2x4x256xf32, #tpu.memory_space<vmem>>, vector<2x4x256xf32>
    %cst = arith.constant dense<0.000000e+00> : vector<2x256xf32>
    %6 = vector.multi_reduction <add>, %5, %cst [1] : vector<2x4x256xf32> to vector<2x256xf32>
    %cst_4 = arith.constant dense<0xFF800000> : vector<2x256xf32>
    %7 = vector.multi_reduction <maximumf>, %5, %cst_4 [1] : vector<2x4x256xf32> to vector<2x256xf32>
    %c0_i32_5 = arith.constant 0 : i32
    %8 = arith.cmpi eq, %arg1, %c0_i32_5 : i32
    %9 = arith.extui %8 : i1 to i32
    %c0_i32_6 = arith.constant 0 : i32
    %10 = arith.cmpi ne, %9, %c0_i32_6 : i32
    scf.if %10 {
      %c0_11 = arith.constant 0 : index
      %c0_12 = arith.constant 0 : index
      %17 = vector.load %arg6[%c0_11, %c0_12] : memref<2x256xf32, #tpu.memory_space<vmem>>, vector<2x256xf32>
      tpu.vector_store %arg6[%c0_11, %c0_12], %6 {strides = array<i32>} : memref<2x256xf32, #tpu.memory_space<vmem>>, vector<2x256xf32>,
      %c0_13 = arith.constant 0 : index
      %c0_14 = arith.constant 0 : index
      %18 = vector.load %arg7[%c0_13, %c0_14] : memref<2x256xf32, #tpu.memory_space<vmem>>, vector<2x256xf32>
      tpu.vector_store %arg7[%c0_13, %c0_14], %7 {strides = array<i32>} : memref<2x256xf32, #tpu.memory_space<vmem>>, vector<2x256xf32>,
    } else {
    }
    %c0_i32_7 = arith.constant 0 : i32
    %11 = arith.cmpi sgt, %arg1, %c0_i32_7 : i32
    %12 = arith.extui %11 : i1 to i32
    %c0_i32_8 = arith.constant 0 : i32
    %13 = arith.cmpi ne, %12, %c0_i32_8 : i32
    scf.if %13 {
      %c0_11 = arith.constant 0 : index
      %c0_12 = arith.constant 0 : index
      %17 = vector.load %arg6[%c0_11, %c0_12] : memref<2x256xf32, #tpu.memory_space<vmem>>, vector<2x256xf32>
      %18 = arith.addf %17, %6 : vector<2x256xf32>
      %c0_13 = arith.constant 0 : index
      %c0_14 = arith.constant 0 : index
      %19 = vector.load %arg6[%c0_13, %c0_14] : memref<2x256xf32, #tpu.memory_space<vmem>>, vector<2x256xf32>
      tpu.vector_store %arg6[%c0_13, %c0_14], %18 {strides = array<i32>} : memref<2x256xf32, #tpu.memory_space<vmem>>, vector<2x256xf32>,
      %c0_15 = arith.constant 0 : index
      %c0_16 = arith.constant 0 : index
      %20 = vector.load %arg7[%c0_15, %c0_16] : memref<2x256xf32, #tpu.memory_space<vmem>>, vector<2x256xf32>
      %21 = arith.maximumf %20, %7 : vector<2x256xf32>
      %c0_17 = arith.constant 0 : index
      %c0_18 = arith.constant 0 : index
      %22 = vector.load %arg7[%c0_17, %c0_18] : memref<2x256xf32, #tpu.memory_space<vmem>>, vector<2x256xf32>
      tpu.vector_store %arg7[%c0_17, %c0_18], %21 {strides = array<i32>} : memref<2x256xf32, #tpu.memory_space<vmem>>, vector<2x256xf32>,
    } else {
    }
    %c0_i32_9 = arith.constant 0 : i32
    %14 = arith.cmpi eq, %arg1, %c0_i32_9 : i32
    %15 = arith.extui %14 : i1 to i32
    %c0_i32_10 = arith.constant 0 : i32
    %16 = arith.cmpi ne, %15, %c0_i32_10 : i32
    scf.if %16 {
      %c0_11 = arith.constant 0 : index
      %c0_12 = arith.constant 0 : index
      %17 = vector.load %arg6[%c0_11, %c0_12] : memref<2x256xf32, #tpu.memory_space<vmem>>, vector<2x256xf32>
      %cst_13 = arith.constant 2.500000e-01 : f32
      %18 = vector.broadcast %cst_13 : f32 to vector<2x256xf32>
      %19 = arith.mulf %17, %18 : vector<2x256xf32>
      %c0_14 = arith.constant 0 : index
      %c128 = arith.constant 128 : index
      %20 = vector.load %arg8[%c0_14, %c128] : memref<4x512xf32, #tpu.memory_space<vmem>>, vector<2x256xf32>
      tpu.vector_store %arg8[%c0_14, %c128], %19 {strides = array<i32>} : memref<4x512xf32, #tpu.memory_space<vmem>>, vector<2x256xf32>,
      %c0_15 = arith.constant 0 : index
      %c0_16 = arith.constant 0 : index
      %21 = vector.load %arg7[%c0_15, %c0_16] : memref<2x256xf32, #tpu.memory_space<vmem>>, vector<2x256xf32>
      %c2 = arith.constant 2 : index
      %c128_17 = arith.constant 128 : index
      %22 = vector.load %arg8[%c2, %c128_17] : memref<4x512xf32, #tpu.memory_space<vmem>>, vector<2x256xf32>
      tpu.vector_store %arg8[%c2, %c128_17], %21 {strides = array<i32>} : memref<4x512xf32, #tpu.memory_space<vmem>>, vector<2x256xf32>,
      %c0_18 = arith.constant 0 : index
      %c0_19 = arith.constant 0 : index
      %23 = vector.load %arg8[%c0_18, %c0_19] : memref<4x512xf32, #tpu.memory_space<vmem>>, vector<4x512xf32>
      %c0_20 = arith.constant 0 : index
      %c0_21 = arith.constant 0 : index
      %24 = vector.load %arg3[%c0_20, %c0_21] : memref<1x256xi32, #tpu.memory_space<vmem>>, vector<1x256xi32>
      %cst_22 = arith.constant 0.000000e+00 : f32
      %25 = vector.broadcast %cst_22 : f32 to vector<2x256xf32>
      %cst_23 = arith.constant 0.000000e+00 : f32
      %26 = vector.broadcast %cst_23 : f32 to vector<2x256xf32>
      %27 = vector.extract_strided_slice %23 {offsets = [0, 77], sizes = [4, 256], strides = [1, 1]} : vector<4x512xf32> to vector<4x256xf32>
      %c0_24 = arith.constant 0 : index
      %28 = memref.load %arg4[%c0_24] : memref<98xf32, #tpu.memory_space<smem>>
      %c49 = arith.constant 49 : index
      %29 = memref.load %arg4[%c49] : memref<98xf32, #tpu.memory_space<smem>>
      %30 = vector.extract_strided_slice %27 {offsets = [0, 0], sizes = [2, 256], strides = [1, 1]} : vector<4x256xf32> to vector<2x256xf32>
      %31 = vector.broadcast %28 : f32 to vector<2x256xf32>
      %32 = arith.mulf %31, %30 : vector<2x256xf32>
      %33 = arith.addf %26, %32 : vector<2x256xf32>
      %34 = vector.extract_strided_slice %27 {offsets = [2, 0], sizes = [2, 256], strides = [1, 1]} : vector<4x256xf32> to vector<2x256xf32>
      %35 = vector.broadcast %29 : f32 to vector<2x256xf32>
      %36 = arith.mulf %35, %34 : vector<2x256xf32>
      %37 = arith.addf %33, %36 : vector<2x256xf32>
      %38 = vector.extract_strided_slice %23 {offsets = [0, 93], sizes = [4, 256], strides = [1, 1]} : vector<4x512xf32> to vector<4x256xf32>
      %c7 = arith.constant 7 : index
      %39 = memref.load %arg4[%c7] : memref<98xf32, #tpu.memory_space<smem>>
      %c56 = arith.constant 56 : index
      %40 = memref.load %arg4[%c56] : memref<98xf32, #tpu.memory_space<smem>>
      %41 = vector.extract_strided_slice %38 {offsets = [0, 0], sizes = [2, 256], strides = [1, 1]} : vector<4x256xf32> to vector<2x256xf32>
      %42 = vector.broadcast %39 : f32 to vector<2x256xf32>
      %43 = arith.mulf %42, %41 : vector<2x256xf32>
      %44 = arith.addf %37, %43 : vector<2x256xf32>
      %45 = vector.extract_strided_slice %38 {offsets = [2, 0], sizes = [2, 256], strides = [1, 1]} : vector<4x256xf32> to vector<2x256xf32>
      %46 = vector.broadcast %40 : f32 to vector<2x256xf32>
      %47 = arith.mulf %46, %45 : vector<2x256xf32>
      %48 = arith.addf %44, %47 : vector<2x256xf32>
      %49 = vector.extract_strided_slice %23 {offsets = [0, 109], sizes = [4, 256], strides = [1, 1]} : vector<4x512xf32> to vector<4x256xf32>
      %c14 = arith.constant 14 : index
      %50 = memref.load %arg4[%c14] : memref<98xf32, #tpu.memory_space<smem>>
      %c63 = arith.constant 63 : index
      %51 = memref.load %arg4[%c63] : memref<98xf32, #tpu.memory_space<smem>>
      %52 = vector.extract_strided_slice %49 {offsets = [0, 0], sizes = [2, 256], strides = [1, 1]} : vector<4x256xf32> to vector<2x256xf32>
      %53 = vector.broadcast %50 : f32 to vector<2x256xf32>
      %54 = arith.mulf %53, %52 : vector<2x256xf32>
      %55 = arith.addf %48, %54 : vector<2x256xf32>
      %56 = vector.extract_strided_slice %49 {offsets = [2, 0], sizes = [2, 256], strides = [1, 1]} : vector<4x256xf32> to vector<2x256xf32>
      %57 = vector.broadcast %51 : f32 to vector<2x256xf32>
      %58 = arith.mulf %57, %56 : vector<2x256xf32>
      %59 = arith.addf %55, %58 : vector<2x256xf32>
      %60 = vector.extract_strided_slice %23 {offsets = [0, 125], sizes = [4, 256], strides = [1, 1]} : vector<4x512xf32> to vector<4x256xf32>
      %c21 = arith.constant 21 : index
      %61 = memref.load %arg4[%c21] : memref<98xf32, #tpu.memory_space<smem>>
      %c70 = arith.constant 70 : index
      %62 = memref.load %arg4[%c70] : memref<98xf32, #tpu.memory_space<smem>>
      %63 = vector.extract_strided_slice %60 {offsets = [0, 0], sizes = [2, 256], strides = [1, 1]} : vector<4x256xf32> to vector<2x256xf32>
      %64 = vector.broadcast %61 : f32 to vector<2x256xf32>
      %65 = arith.mulf %64, %63 : vector<2x256xf32>
      %66 = arith.addf %59, %65 : vector<2x256xf32>
      %67 = vector.extract_strided_slice %60 {offsets = [2, 0], sizes = [2, 256], strides = [1, 1]} : vector<4x256xf32> to vector<2x256xf32>
      %68 = vector.broadcast %62 : f32 to vector<2x256xf32>
      %69 = arith.mulf %68, %67 : vector<2x256xf32>
      %70 = arith.addf %66, %69 : vector<2x256xf32>
      %71 = vector.extract_strided_slice %23 {offsets = [0, 141], sizes = [4, 256], strides = [1, 1]} : vector<4x512xf32> to vector<4x256xf32>
      %c28 = arith.constant 28 : index
      %72 = memref.load %arg4[%c28] : memref<98xf32, #tpu.memory_space<smem>>
      %c77 = arith.constant 77 : index
      %73 = memref.load %arg4[%c77] : memref<98xf32, #tpu.memory_space<smem>>
      %74 = vector.extract_strided_slice %71 {offsets = [0, 0], sizes = [2, 256], strides = [1, 1]} : vector<4x256xf32> to vector<2x256xf32>
      %75 = vector.broadcast %72 : f32 to vector<2x256xf32>
      %76 = arith.mulf %75, %74 : vector<2x256xf32>
      %77 = arith.addf %70, %76 : vector<2x256xf32>
      %78 = vector.extract_strided_slice %71 {offsets = [2, 0], sizes = [2, 256], strides = [1, 1]} : vector<4x256xf32> to vector<2x256xf32>
      %79 = vector.broadcast %73 : f32 to vector<2x256xf32>
      %80 = arith.mulf %79, %78 : vector<2x256xf32>
      %81 = arith.addf %77, %80 : vector<2x256xf32>
      %82 = vector.extract_strided_slice %23 {offsets = [0, 157], sizes = [4, 256], strides = [1, 1]} : vector<4x512xf32> to vector<4x256xf32>
      %c35 = arith.constant 35 : index
      %83 = memref.load %arg4[%c35] : memref<98xf32, #tpu.memory_space<smem>>
      %c84 = arith.constant 84 : index
      %84 = memref.load %arg4[%c84] : memref<98xf32, #tpu.memory_space<smem>>
      %85 = vector.extract_strided_slice %82 {offsets = [0, 0], sizes = [2, 256], strides = [1, 1]} : vector<4x256xf32> to vector<2x256xf32>
      %86 = vector.broadcast %83 : f32 to vector<2x256xf32>
      %87 = arith.mulf %86, %85 : vector<2x256xf32>
      %88 = arith.addf %81, %87 : vector<2x256xf32>
      %89 = vector.extract_strided_slice %82 {offsets = [2, 0], sizes = [2, 256], strides = [1, 1]} : vector<4x256xf32> to vector<2x256xf32>
      %90 = vector.broadcast %84 : f32 to vector<2x256xf32>
      %91 = arith.mulf %90, %89 : vector<2x256xf32>
      %92 = arith.addf %88, %91 : vector<2x256xf32>
      %93 = vector.extract_strided_slice %23 {offsets = [0, 173], sizes = [4, 256], strides = [1, 1]} : vector<4x512xf32> to vector<4x256xf32>
      %c42 = arith.constant 42 : index
      %94 = memref.load %arg4[%c42] : memref<98xf32, #tpu.memory_space<smem>>
      %c91 = arith.constant 91 : index
      %95 = memref.load %arg4[%c91] : memref<98xf32, #tpu.memory_space<smem>>
      %96 = vector.extract_strided_slice %93 {offsets = [0, 0], sizes = [2, 256], strides = [1, 1]} : vector<4x256xf32> to vector<2x256xf32>
      %97 = vector.broadcast %94 : f32 to vector<2x256xf32>
      %98 = arith.mulf %97, %96 : vector<2x256xf32>
      %99 = arith.addf %92, %98 : vector<2x256xf32>
      %100 = vector.extract_strided_slice %93 {offsets = [2, 0], sizes = [2, 256], strides = [1, 1]} : vector<4x256xf32> to vector<2x256xf32>
      %101 = vector.broadcast %95 : f32 to vector<2x256xf32>
      %102 = arith.mulf %101, %100 : vector<2x256xf32>
      %103 = arith.addf %99, %102 : vector<2x256xf32>
      %c-3_i32 = arith.constant -3 : i32
      %104 = vector.broadcast %c-3_i32 : i32 to vector<1x256xi32>
      %105 = arith.addi %24, %104 : vector<1x256xi32>
      %c0_i32_25 = arith.constant 0 : i32
      %106 = vector.broadcast %c0_i32_25 : i32 to vector<1x256xi32>
      %107 = arith.cmpi sge, %105, %106 : vector<1x256xi32>
      %c16_i32 = arith.constant 16 : i32
      %108 = vector.broadcast %c16_i32 : i32 to vector<1x256xi32>
      %109 = arith.cmpi slt, %105, %108 : vector<1x256xi32>
      %110 = arith.andi %107, %109 : vector<1x256xi1>
      %cst_26 = arith.constant 0.000000e+00 : f32
      %111 = vector.shape_cast %110 : vector<1x256xi1> to vector<1x256xi1>
      %112 = vector.broadcast %111 : vector<1x256xi1> to vector<2x256xi1>
      %113 = vector.broadcast %cst_26 : f32 to vector<2x256xf32>
      %114 = arith.select %112, %103, %113 : vector<2x256xi1>, vector<2x256xf32>
      %115 = arith.addf %25, %114 : vector<2x256xf32>
      %cst_27 = arith.constant 0.000000e+00 : f32
      %116 = vector.broadcast %cst_27 : f32 to vector<2x256xf32>
      %117 = vector.extract_strided_slice %23 {offsets = [0, 78], sizes = [4, 256], strides = [1, 1]} : vector<4x512xf32> to vector<4x256xf32>
      %c1 = arith.constant 1 : index
      %118 = memref.load %arg4[%c1] : memref<98xf32, #tpu.memory_space<smem>>
      %c50 = arith.constant 50 : index
      %119 = memref.load %arg4[%c50] : memref<98xf32, #tpu.memory_space<smem>>
      %120 = vector.extract_strided_slice %117 {offsets = [0, 0], sizes = [2, 256], strides = [1, 1]} : vector<4x256xf32> to vector<2x256xf32>
      %121 = vector.broadcast %118 : f32 to vector<2x256xf32>
      %122 = arith.mulf %121, %120 : vector<2x256xf32>
      %123 = arith.addf %116, %122 : vector<2x256xf32>
      %124 = vector.extract_strided_slice %117 {offsets = [2, 0], sizes = [2, 256], strides = [1, 1]} : vector<4x256xf32> to vector<2x256xf32>
      %125 = vector.broadcast %119 : f32 to vector<2x256xf32>
      %126 = arith.mulf %125, %124 : vector<2x256xf32>
      %127 = arith.addf %123, %126 : vector<2x256xf32>
      %128 = vector.extract_strided_slice %23 {offsets = [0, 94], sizes = [4, 256], strides = [1, 1]} : vector<4x512xf32> to vector<4x256xf32>
      %c8 = arith.constant 8 : index
      %129 = memref.load %arg4[%c8] : memref<98xf32, #tpu.memory_space<smem>>
      %c57 = arith.constant 57 : index
      %130 = memref.load %arg4[%c57] : memref<98xf32, #tpu.memory_space<smem>>
      %131 = vector.extract_strided_slice %128 {offsets = [0, 0], sizes = [2, 256], strides = [1, 1]} : vector<4x256xf32> to vector<2x256xf32>
      %132 = vector.broadcast %129 : f32 to vector<2x256xf32>
      %133 = arith.mulf %132, %131 : vector<2x256xf32>
      %134 = arith.addf %127, %133 : vector<2x256xf32>
      %135 = vector.extract_strided_slice %128 {offsets = [2, 0], sizes = [2, 256], strides = [1, 1]} : vector<4x256xf32> to vector<2x256xf32>
      %136 = vector.broadcast %130 : f32 to vector<2x256xf32>
      %137 = arith.mulf %136, %135 : vector<2x256xf32>
      %138 = arith.addf %134, %137 : vector<2x256xf32>
      %139 = vector.extract_strided_slice %23 {offsets = [0, 110], sizes = [4, 256], strides = [1, 1]} : vector<4x512xf32> to vector<4x256xf32>
      %c15 = arith.constant 15 : index
      %140 = memref.load %arg4[%c15] : memref<98xf32, #tpu.memory_space<smem>>
      %c64 = arith.constant 64 : index
      %141 = memref.load %arg4[%c64] : memref<98xf32, #tpu.memory_space<smem>>
      %142 = vector.extract_strided_slice %139 {offsets = [0, 0], sizes = [2, 256], strides = [1, 1]} : vector<4x256xf32> to vector<2x256xf32>
      %143 = vector.broadcast %140 : f32 to vector<2x256xf32>
      %144 = arith.mulf %143, %142 : vector<2x256xf32>
      %145 = arith.addf %138, %144 : vector<2x256xf32>
      %146 = vector.extract_strided_slice %139 {offsets = [2, 0], sizes = [2, 256], strides = [1, 1]} : vector<4x256xf32> to vector<2x256xf32>
      %147 = vector.broadcast %141 : f32 to vector<2x256xf32>
      %148 = arith.mulf %147, %146 : vector<2x256xf32>
      %149 = arith.addf %145, %148 : vector<2x256xf32>
      %150 = vector.extract_strided_slice %23 {offsets = [0, 126], sizes = [4, 256], strides = [1, 1]} : vector<4x512xf32> to vector<4x256xf32>
      %c22 = arith.constant 22 : index
      %151 = memref.load %arg4[%c22] : memref<98xf32, #tpu.memory_space<smem>>
      %c71 = arith.constant 71 : index
      %152 = memref.load %arg4[%c71] : memref<98xf32, #tpu.memory_space<smem>>
      %153 = vector.extract_strided_slice %150 {offsets = [0, 0], sizes = [2, 256], strides = [1, 1]} : vector<4x256xf32> to vector<2x256xf32>
      %154 = vector.broadcast %151 : f32 to vector<2x256xf32>
      %155 = arith.mulf %154, %153 : vector<2x256xf32>
      %156 = arith.addf %149, %155 : vector<2x256xf32>
      %157 = vector.extract_strided_slice %150 {offsets = [2, 0], sizes = [2, 256], strides = [1, 1]} : vector<4x256xf32> to vector<2x256xf32>
      %158 = vector.broadcast %152 : f32 to vector<2x256xf32>
      %159 = arith.mulf %158, %157 : vector<2x256xf32>
      %160 = arith.addf %156, %159 : vector<2x256xf32>
      %161 = vector.extract_strided_slice %23 {offsets = [0, 142], sizes = [4, 256], strides = [1, 1]} : vector<4x512xf32> to vector<4x256xf32>
      %c29 = arith.constant 29 : index
      %162 = memref.load %arg4[%c29] : memref<98xf32, #tpu.memory_space<smem>>
      %c78 = arith.constant 78 : index
      %163 = memref.load %arg4[%c78] : memref<98xf32, #tpu.memory_space<smem>>
      %164 = vector.extract_strided_slice %161 {offsets = [0, 0], sizes = [2, 256], strides = [1, 1]} : vector<4x256xf32> to vector<2x256xf32>
      %165 = vector.broadcast %162 : f32 to vector<2x256xf32>
      %166 = arith.mulf %165, %164 : vector<2x256xf32>
      %167 = arith.addf %160, %166 : vector<2x256xf32>
      %168 = vector.extract_strided_slice %161 {offsets = [2, 0], sizes = [2, 256], strides = [1, 1]} : vector<4x256xf32> to vector<2x256xf32>
      %169 = vector.broadcast %163 : f32 to vector<2x256xf32>
      %170 = arith.mulf %169, %168 : vector<2x256xf32>
      %171 = arith.addf %167, %170 : vector<2x256xf32>
      %172 = vector.extract_strided_slice %23 {offsets = [0, 158], sizes = [4, 256], strides = [1, 1]} : vector<4x512xf32> to vector<4x256xf32>
      %c36 = arith.constant 36 : index
      %173 = memref.load %arg4[%c36] : memref<98xf32, #tpu.memory_space<smem>>
      %c85 = arith.constant 85 : index
      %174 = memref.load %arg4[%c85] : memref<98xf32, #tpu.memory_space<smem>>
      %175 = vector.extract_strided_slice %172 {offsets = [0, 0], sizes = [2, 256], strides = [1, 1]} : vector<4x256xf32> to vector<2x256xf32>
      %176 = vector.broadcast %173 : f32 to vector<2x256xf32>
      %177 = arith.mulf %176, %175 : vector<2x256xf32>
      %178 = arith.addf %171, %177 : vector<2x256xf32>
      %179 = vector.extract_strided_slice %172 {offsets = [2, 0], sizes = [2, 256], strides = [1, 1]} : vector<4x256xf32> to vector<2x256xf32>
      %180 = vector.broadcast %174 : f32 to vector<2x256xf32>
      %181 = arith.mulf %180, %179 : vector<2x256xf32>
      %182 = arith.addf %178, %181 : vector<2x256xf32>
      %183 = vector.extract_strided_slice %23 {offsets = [0, 174], sizes = [4, 256], strides = [1, 1]} : vector<4x512xf32> to vector<4x256xf32>
      %c43 = arith.constant 43 : index
      %184 = memref.load %arg4[%c43] : memref<98xf32, #tpu.memory_space<smem>>
      %c92 = arith.constant 92 : index
      %185 = memref.load %arg4[%c92] : memref<98xf32, #tpu.memory_space<smem>>
      %186 = vector.extract_strided_slice %183 {offsets = [0, 0], sizes = [2, 256], strides = [1, 1]} : vector<4x256xf32> to vector<2x256xf32>
      %187 = vector.broadcast %184 : f32 to vector<2x256xf32>
      %188 = arith.mulf %187, %186 : vector<2x256xf32>
      %189 = arith.addf %182, %188 : vector<2x256xf32>
      %190 = vector.extract_strided_slice %183 {offsets = [2, 0], sizes = [2, 256], strides = [1, 1]} : vector<4x256xf32> to vector<2x256xf32>
      %191 = vector.broadcast %185 : f32 to vector<2x256xf32>
      %192 = arith.mulf %191, %190 : vector<2x256xf32>
      %193 = arith.addf %189, %192 : vector<2x256xf32>
      %c-2_i32 = arith.constant -2 : i32
      %194 = vector.broadcast %c-2_i32 : i32 to vector<1x256xi32>
      %195 = arith.addi %24, %194 : vector<1x256xi32>
      %c0_i32_28 = arith.constant 0 : i32
      %196 = vector.broadcast %c0_i32_28 : i32 to vector<1x256xi32>
      %197 = arith.cmpi sge, %195, %196 : vector<1x256xi32>
      %c16_i32_29 = arith.constant 16 : i32
      %198 = vector.broadcast %c16_i32_29 : i32 to vector<1x256xi32>
      %199 = arith.cmpi slt, %195, %198 : vector<1x256xi32>
      %200 = arith.andi %197, %199 : vector<1x256xi1>
      %cst_30 = arith.constant 0.000000e+00 : f32
      %201 = vector.shape_cast %200 : vector<1x256xi1> to vector<1x256xi1>
      %202 = vector.broadcast %201 : vector<1x256xi1> to vector<2x256xi1>
      %203 = vector.broadcast %cst_30 : f32 to vector<2x256xf32>
      %204 = arith.select %202, %193, %203 : vector<2x256xi1>, vector<2x256xf32>
      %205 = arith.addf %115, %204 : vector<2x256xf32>
      %cst_31 = arith.constant 0.000000e+00 : f32
      %206 = vector.broadcast %cst_31 : f32 to vector<2x256xf32>
      %207 = vector.extract_strided_slice %23 {offsets = [0, 79], sizes = [4, 256], strides = [1, 1]} : vector<4x512xf32> to vector<4x256xf32>
      %c2_32 = arith.constant 2 : index
      %208 = memref.load %arg4[%c2_32] : memref<98xf32, #tpu.memory_space<smem>>
      %c51 = arith.constant 51 : index
      %209 = memref.load %arg4[%c51] : memref<98xf32, #tpu.memory_space<smem>>
      %210 = vector.extract_strided_slice %207 {offsets = [0, 0], sizes = [2, 256], strides = [1, 1]} : vector<4x256xf32> to vector<2x256xf32>
      %211 = vector.broadcast %208 : f32 to vector<2x256xf32>
      %212 = arith.mulf %211, %210 : vector<2x256xf32>
      %213 = arith.addf %206, %212 : vector<2x256xf32>
      %214 = vector.extract_strided_slice %207 {offsets = [2, 0], sizes = [2, 256], strides = [1, 1]} : vector<4x256xf32> to vector<2x256xf32>
      %215 = vector.broadcast %209 : f32 to vector<2x256xf32>
      %216 = arith.mulf %215, %214 : vector<2x256xf32>
      %217 = arith.addf %213, %216 : vector<2x256xf32>
      %218 = vector.extract_strided_slice %23 {offsets = [0, 95], sizes = [4, 256], strides = [1, 1]} : vector<4x512xf32> to vector<4x256xf32>
      %c9 = arith.constant 9 : index
      %219 = memref.load %arg4[%c9] : memref<98xf32, #tpu.memory_space<smem>>
      %c58 = arith.constant 58 : index
      %220 = memref.load %arg4[%c58] : memref<98xf32, #tpu.memory_space<smem>>
      %221 = vector.extract_strided_slice %218 {offsets = [0, 0], sizes = [2, 256], strides = [1, 1]} : vector<4x256xf32> to vector<2x256xf32>
      %222 = vector.broadcast %219 : f32 to vector<2x256xf32>
      %223 = arith.mulf %222, %221 : vector<2x256xf32>
      %224 = arith.addf %217, %223 : vector<2x256xf32>
      %225 = vector.extract_strided_slice %218 {offsets = [2, 0], sizes = [2, 256], strides = [1, 1]} : vector<4x256xf32> to vector<2x256xf32>
      %226 = vector.broadcast %220 : f32 to vector<2x256xf32>
      %227 = arith.mulf %226, %225 : vector<2x256xf32>
      %228 = arith.addf %224, %227 : vector<2x256xf32>
      %229 = vector.extract_strided_slice %23 {offsets = [0, 111], sizes = [4, 256], strides = [1, 1]} : vector<4x512xf32> to vector<4x256xf32>
      %c16 = arith.constant 16 : index
      %230 = memref.load %arg4[%c16] : memref<98xf32, #tpu.memory_space<smem>>
      %c65 = arith.constant 65 : index
      %231 = memref.load %arg4[%c65] : memref<98xf32, #tpu.memory_space<smem>>
      %232 = vector.extract_strided_slice %229 {offsets = [0, 0], sizes = [2, 256], strides = [1, 1]} : vector<4x256xf32> to vector<2x256xf32>
      %233 = vector.broadcast %230 : f32 to vector<2x256xf32>
      %234 = arith.mulf %233, %232 : vector<2x256xf32>
      %235 = arith.addf %228, %234 : vector<2x256xf32>
      %236 = vector.extract_strided_slice %229 {offsets = [2, 0], sizes = [2, 256], strides = [1, 1]} : vector<4x256xf32> to vector<2x256xf32>
      %237 = vector.broadcast %231 : f32 to vector<2x256xf32>
      %238 = arith.mulf %237, %236 : vector<2x256xf32>
      %239 = arith.addf %235, %238 : vector<2x256xf32>
      %240 = vector.extract_strided_slice %23 {offsets = [0, 127], sizes = [4, 256], strides = [1, 1]} : vector<4x512xf32> to vector<4x256xf32>
      %c23 = arith.constant 23 : index
      %241 = memref.load %arg4[%c23] : memref<98xf32, #tpu.memory_space<smem>>
      %c72 = arith.constant 72 : index
      %242 = memref.load %arg4[%c72] : memref<98xf32, #tpu.memory_space<smem>>
      %243 = vector.extract_strided_slice %240 {offsets = [0, 0], sizes = [2, 256], strides = [1, 1]} : vector<4x256xf32> to vector<2x256xf32>
      %244 = vector.broadcast %241 : f32 to vector<2x256xf32>
      %245 = arith.mulf %244, %243 : vector<2x256xf32>
      %246 = arith.addf %239, %245 : vector<2x256xf32>
      %247 = vector.extract_strided_slice %240 {offsets = [2, 0], sizes = [2, 256], strides = [1, 1]} : vector<4x256xf32> to vector<2x256xf32>
      %248 = vector.broadcast %242 : f32 to vector<2x256xf32>
      %249 = arith.mulf %248, %247 : vector<2x256xf32>
      %250 = arith.addf %246, %249 : vector<2x256xf32>
      %251 = vector.extract_strided_slice %23 {offsets = [0, 143], sizes = [4, 256], strides = [1, 1]} : vector<4x512xf32> to vector<4x256xf32>
      %c30 = arith.constant 30 : index
      %252 = memref.load %arg4[%c30] : memref<98xf32, #tpu.memory_space<smem>>
      %c79 = arith.constant 79 : index
      %253 = memref.load %arg4[%c79] : memref<98xf32, #tpu.memory_space<smem>>
      %254 = vector.extract_strided_slice %251 {offsets = [0, 0], sizes = [2, 256], strides = [1, 1]} : vector<4x256xf32> to vector<2x256xf32>
      %255 = vector.broadcast %252 : f32 to vector<2x256xf32>
      %256 = arith.mulf %255, %254 : vector<2x256xf32>
      %257 = arith.addf %250, %256 : vector<2x256xf32>
      %258 = vector.extract_strided_slice %251 {offsets = [2, 0], sizes = [2, 256], strides = [1, 1]} : vector<4x256xf32> to vector<2x256xf32>
      %259 = vector.broadcast %253 : f32 to vector<2x256xf32>
      %260 = arith.mulf %259, %258 : vector<2x256xf32>
      %261 = arith.addf %257, %260 : vector<2x256xf32>
      %262 = vector.extract_strided_slice %23 {offsets = [0, 159], sizes = [4, 256], strides = [1, 1]} : vector<4x512xf32> to vector<4x256xf32>
      %c37 = arith.constant 37 : index
      %263 = memref.load %arg4[%c37] : memref<98xf32, #tpu.memory_space<smem>>
      %c86 = arith.constant 86 : index
      %264 = memref.load %arg4[%c86] : memref<98xf32, #tpu.memory_space<smem>>
      %265 = vector.extract_strided_slice %262 {offsets = [0, 0], sizes = [2, 256], strides = [1, 1]} : vector<4x256xf32> to vector<2x256xf32>
      %266 = vector.broadcast %263 : f32 to vector<2x256xf32>
      %267 = arith.mulf %266, %265 : vector<2x256xf32>
      %268 = arith.addf %261, %267 : vector<2x256xf32>
      %269 = vector.extract_strided_slice %262 {offsets = [2, 0], sizes = [2, 256], strides = [1, 1]} : vector<4x256xf32> to vector<2x256xf32>
      %270 = vector.broadcast %264 : f32 to vector<2x256xf32>
      %271 = arith.mulf %270, %269 : vector<2x256xf32>
      %272 = arith.addf %268, %271 : vector<2x256xf32>
      %273 = vector.extract_strided_slice %23 {offsets = [0, 175], sizes = [4, 256], strides = [1, 1]} : vector<4x512xf32> to vector<4x256xf32>
      %c44 = arith.constant 44 : index
      %274 = memref.load %arg4[%c44] : memref<98xf32, #tpu.memory_space<smem>>
      %c93 = arith.constant 93 : index
      %275 = memref.load %arg4[%c93] : memref<98xf32, #tpu.memory_space<smem>>
      %276 = vector.extract_strided_slice %273 {offsets = [0, 0], sizes = [2, 256], strides = [1, 1]} : vector<4x256xf32> to vector<2x256xf32>
      %277 = vector.broadcast %274 : f32 to vector<2x256xf32>
      %278 = arith.mulf %277, %276 : vector<2x256xf32>
      %279 = arith.addf %272, %278 : vector<2x256xf32>
      %280 = vector.extract_strided_slice %273 {offsets = [2, 0], sizes = [2, 256], strides = [1, 1]} : vector<4x256xf32> to vector<2x256xf32>
      %281 = vector.broadcast %275 : f32 to vector<2x256xf32>
      %282 = arith.mulf %281, %280 : vector<2x256xf32>
      %283 = arith.addf %279, %282 : vector<2x256xf32>
      %c-1_i32 = arith.constant -1 : i32
      %284 = vector.broadcast %c-1_i32 : i32 to vector<1x256xi32>
      %285 = arith.addi %24, %284 : vector<1x256xi32>
      %c0_i32_33 = arith.constant 0 : i32
      %286 = vector.broadcast %c0_i32_33 : i32 to vector<1x256xi32>
      %287 = arith.cmpi sge, %285, %286 : vector<1x256xi32>
      %c16_i32_34 = arith.constant 16 : i32
      %288 = vector.broadcast %c16_i32_34 : i32 to vector<1x256xi32>
      %289 = arith.cmpi slt, %285, %288 : vector<1x256xi32>
      %290 = arith.andi %287, %289 : vector<1x256xi1>
      %cst_35 = arith.constant 0.000000e+00 : f32
      %291 = vector.shape_cast %290 : vector<1x256xi1> to vector<1x256xi1>
      %292 = vector.broadcast %291 : vector<1x256xi1> to vector<2x256xi1>
      %293 = vector.broadcast %cst_35 : f32 to vector<2x256xf32>
      %294 = arith.select %292, %283, %293 : vector<2x256xi1>, vector<2x256xf32>
      %295 = arith.addf %205, %294 : vector<2x256xf32>
      %cst_36 = arith.constant 0.000000e+00 : f32
      %296 = vector.broadcast %cst_36 : f32 to vector<2x256xf32>
      %297 = vector.extract_strided_slice %23 {offsets = [0, 80], sizes = [4, 256], strides = [1, 1]} : vector<4x512xf32> to vector<4x256xf32>
      %c3 = arith.constant 3 : index
      %298 = memref.load %arg4[%c3] : memref<98xf32, #tpu.memory_space<smem>>
      %c52 = arith.constant 52 : index
      %299 = memref.load %arg4[%c52] : memref<98xf32, #tpu.memory_space<smem>>
      %300 = vector.extract_strided_slice %297 {offsets = [0, 0], sizes = [2, 256], strides = [1, 1]} : vector<4x256xf32> to vector<2x256xf32>
      %301 = vector.broadcast %298 : f32 to vector<2x256xf32>
      %302 = arith.mulf %301, %300 : vector<2x256xf32>
      %303 = arith.addf %296, %302 : vector<2x256xf32>
      %304 = vector.extract_strided_slice %297 {offsets = [2, 0], sizes = [2, 256], strides = [1, 1]} : vector<4x256xf32> to vector<2x256xf32>
      %305 = vector.broadcast %299 : f32 to vector<2x256xf32>
      %306 = arith.mulf %305, %304 : vector<2x256xf32>
      %307 = arith.addf %303, %306 : vector<2x256xf32>
      %308 = vector.extract_strided_slice %23 {offsets = [0, 96], sizes = [4, 256], strides = [1, 1]} : vector<4x512xf32> to vector<4x256xf32>
      %c10 = arith.constant 10 : index
      %309 = memref.load %arg4[%c10] : memref<98xf32, #tpu.memory_space<smem>>
      %c59 = arith.constant 59 : index
      %310 = memref.load %arg4[%c59] : memref<98xf32, #tpu.memory_space<smem>>
      %311 = vector.extract_strided_slice %308 {offsets = [0, 0], sizes = [2, 256], strides = [1, 1]} : vector<4x256xf32> to vector<2x256xf32>
      %312 = vector.broadcast %309 : f32 to vector<2x256xf32>
      %313 = arith.mulf %312, %311 : vector<2x256xf32>
      %314 = arith.addf %307, %313 : vector<2x256xf32>
      %315 = vector.extract_strided_slice %308 {offsets = [2, 0], sizes = [2, 256], strides = [1, 1]} : vector<4x256xf32> to vector<2x256xf32>
      %316 = vector.broadcast %310 : f32 to vector<2x256xf32>
      %317 = arith.mulf %316, %315 : vector<2x256xf32>
      %318 = arith.addf %314, %317 : vector<2x256xf32>
      %319 = vector.extract_strided_slice %23 {offsets = [0, 112], sizes = [4, 256], strides = [1, 1]} : vector<4x512xf32> to vector<4x256xf32>
      %c17 = arith.constant 17 : index
      %320 = memref.load %arg4[%c17] : memref<98xf32, #tpu.memory_space<smem>>
      %c66 = arith.constant 66 : index
      %321 = memref.load %arg4[%c66] : memref<98xf32, #tpu.memory_space<smem>>
      %322 = vector.extract_strided_slice %319 {offsets = [0, 0], sizes = [2, 256], strides = [1, 1]} : vector<4x256xf32> to vector<2x256xf32>
      %323 = vector.broadcast %320 : f32 to vector<2x256xf32>
      %324 = arith.mulf %323, %322 : vector<2x256xf32>
      %325 = arith.addf %318, %324 : vector<2x256xf32>
      %326 = vector.extract_strided_slice %319 {offsets = [2, 0], sizes = [2, 256], strides = [1, 1]} : vector<4x256xf32> to vector<2x256xf32>
      %327 = vector.broadcast %321 : f32 to vector<2x256xf32>
      %328 = arith.mulf %327, %326 : vector<2x256xf32>
      %329 = arith.addf %325, %328 : vector<2x256xf32>
      %330 = vector.extract_strided_slice %23 {offsets = [0, 128], sizes = [4, 256], strides = [1, 1]} : vector<4x512xf32> to vector<4x256xf32>
      %c24 = arith.constant 24 : index
      %331 = memref.load %arg4[%c24] : memref<98xf32, #tpu.memory_space<smem>>
      %c73 = arith.constant 73 : index
      %332 = memref.load %arg4[%c73] : memref<98xf32, #tpu.memory_space<smem>>
      %333 = vector.extract_strided_slice %330 {offsets = [0, 0], sizes = [2, 256], strides = [1, 1]} : vector<4x256xf32> to vector<2x256xf32>
      %334 = vector.broadcast %331 : f32 to vector<2x256xf32>
      %335 = arith.mulf %334, %333 : vector<2x256xf32>
      %336 = arith.addf %329, %335 : vector<2x256xf32>
      %337 = vector.extract_strided_slice %330 {offsets = [2, 0], sizes = [2, 256], strides = [1, 1]} : vector<4x256xf32> to vector<2x256xf32>
      %338 = vector.broadcast %332 : f32 to vector<2x256xf32>
      %339 = arith.mulf %338, %337 : vector<2x256xf32>
      %340 = arith.addf %336, %339 : vector<2x256xf32>
      %341 = vector.extract_strided_slice %23 {offsets = [0, 144], sizes = [4, 256], strides = [1, 1]} : vector<4x512xf32> to vector<4x256xf32>
      %c31 = arith.constant 31 : index
      %342 = memref.load %arg4[%c31] : memref<98xf32, #tpu.memory_space<smem>>
      %c80 = arith.constant 80 : index
      %343 = memref.load %arg4[%c80] : memref<98xf32, #tpu.memory_space<smem>>
      %344 = vector.extract_strided_slice %341 {offsets = [0, 0], sizes = [2, 256], strides = [1, 1]} : vector<4x256xf32> to vector<2x256xf32>
      %345 = vector.broadcast %342 : f32 to vector<2x256xf32>
      %346 = arith.mulf %345, %344 : vector<2x256xf32>
      %347 = arith.addf %340, %346 : vector<2x256xf32>
      %348 = vector.extract_strided_slice %341 {offsets = [2, 0], sizes = [2, 256], strides = [1, 1]} : vector<4x256xf32> to vector<2x256xf32>
      %349 = vector.broadcast %343 : f32 to vector<2x256xf32>
      %350 = arith.mulf %349, %348 : vector<2x256xf32>
      %351 = arith.addf %347, %350 : vector<2x256xf32>
      %352 = vector.extract_strided_slice %23 {offsets = [0, 160], sizes = [4, 256], strides = [1, 1]} : vector<4x512xf32> to vector<4x256xf32>
      %c38 = arith.constant 38 : index
      %353 = memref.load %arg4[%c38] : memref<98xf32, #tpu.memory_space<smem>>
      %c87 = arith.constant 87 : index
      %354 = memref.load %arg4[%c87] : memref<98xf32, #tpu.memory_space<smem>>
      %355 = vector.extract_strided_slice %352 {offsets = [0, 0], sizes = [2, 256], strides = [1, 1]} : vector<4x256xf32> to vector<2x256xf32>
      %356 = vector.broadcast %353 : f32 to vector<2x256xf32>
      %357 = arith.mulf %356, %355 : vector<2x256xf32>
      %358 = arith.addf %351, %357 : vector<2x256xf32>
      %359 = vector.extract_strided_slice %352 {offsets = [2, 0], sizes = [2, 256], strides = [1, 1]} : vector<4x256xf32> to vector<2x256xf32>
      %360 = vector.broadcast %354 : f32 to vector<2x256xf32>
      %361 = arith.mulf %360, %359 : vector<2x256xf32>
      %362 = arith.addf %358, %361 : vector<2x256xf32>
      %363 = vector.extract_strided_slice %23 {offsets = [0, 176], sizes = [4, 256], strides = [1, 1]} : vector<4x512xf32> to vector<4x256xf32>
      %c45 = arith.constant 45 : index
      %364 = memref.load %arg4[%c45] : memref<98xf32, #tpu.memory_space<smem>>
      %c94 = arith.constant 94 : index
      %365 = memref.load %arg4[%c94] : memref<98xf32, #tpu.memory_space<smem>>
      %366 = vector.extract_strided_slice %363 {offsets = [0, 0], sizes = [2, 256], strides = [1, 1]} : vector<4x256xf32> to vector<2x256xf32>
      %367 = vector.broadcast %364 : f32 to vector<2x256xf32>
      %368 = arith.mulf %367, %366 : vector<2x256xf32>
      %369 = arith.addf %362, %368 : vector<2x256xf32>
      %370 = vector.extract_strided_slice %363 {offsets = [2, 0], sizes = [2, 256], strides = [1, 1]} : vector<4x256xf32> to vector<2x256xf32>
      %371 = vector.broadcast %365 : f32 to vector<2x256xf32>
      %372 = arith.mulf %371, %370 : vector<2x256xf32>
      %373 = arith.addf %369, %372 : vector<2x256xf32>
      %c0_i32_37 = arith.constant 0 : i32
      %374 = vector.broadcast %c0_i32_37 : i32 to vector<1x256xi32>
      %375 = arith.addi %24, %374 : vector<1x256xi32>
      %c0_i32_38 = arith.constant 0 : i32
      %376 = vector.broadcast %c0_i32_38 : i32 to vector<1x256xi32>
      %377 = arith.cmpi sge, %375, %376 : vector<1x256xi32>
      %c16_i32_39 = arith.constant 16 : i32
      %378 = vector.broadcast %c16_i32_39 : i32 to vector<1x256xi32>
      %379 = arith.cmpi slt, %375, %378 : vector<1x256xi32>
      %380 = arith.andi %377, %379 : vector<1x256xi1>
      %cst_40 = arith.constant 0.000000e+00 : f32
      %381 = vector.shape_cast %380 : vector<1x256xi1> to vector<1x256xi1>
      %382 = vector.broadcast %381 : vector<1x256xi1> to vector<2x256xi1>
      %383 = vector.broadcast %cst_40 : f32 to vector<2x256xf32>
      %384 = arith.select %382, %373, %383 : vector<2x256xi1>, vector<2x256xf32>
      %385 = arith.addf %295, %384 : vector<2x256xf32>
      %cst_41 = arith.constant 0.000000e+00 : f32
      %386 = vector.broadcast %cst_41 : f32 to vector<2x256xf32>
      %387 = vector.extract_strided_slice %23 {offsets = [0, 81], sizes = [4, 256], strides = [1, 1]} : vector<4x512xf32> to vector<4x256xf32>
      %c4 = arith.constant 4 : index
      %388 = memref.load %arg4[%c4] : memref<98xf32, #tpu.memory_space<smem>>
      %c53 = arith.constant 53 : index
      %389 = memref.load %arg4[%c53] : memref<98xf32, #tpu.memory_space<smem>>
      %390 = vector.extract_strided_slice %387 {offsets = [0, 0], sizes = [2, 256], strides = [1, 1]} : vector<4x256xf32> to vector<2x256xf32>
      %391 = vector.broadcast %388 : f32 to vector<2x256xf32>
      %392 = arith.mulf %391, %390 : vector<2x256xf32>
      %393 = arith.addf %386, %392 : vector<2x256xf32>
      %394 = vector.extract_strided_slice %387 {offsets = [2, 0], sizes = [2, 256], strides = [1, 1]} : vector<4x256xf32> to vector<2x256xf32>
      %395 = vector.broadcast %389 : f32 to vector<2x256xf32>
      %396 = arith.mulf %395, %394 : vector<2x256xf32>
      %397 = arith.addf %393, %396 : vector<2x256xf32>
      %398 = vector.extract_strided_slice %23 {offsets = [0, 97], sizes = [4, 256], strides = [1, 1]} : vector<4x512xf32> to vector<4x256xf32>
      %c11 = arith.constant 11 : index
      %399 = memref.load %arg4[%c11] : memref<98xf32, #tpu.memory_space<smem>>
      %c60 = arith.constant 60 : index
      %400 = memref.load %arg4[%c60] : memref<98xf32, #tpu.memory_space<smem>>
      %401 = vector.extract_strided_slice %398 {offsets = [0, 0], sizes = [2, 256], strides = [1, 1]} : vector<4x256xf32> to vector<2x256xf32>
      %402 = vector.broadcast %399 : f32 to vector<2x256xf32>
      %403 = arith.mulf %402, %401 : vector<2x256xf32>
      %404 = arith.addf %397, %403 : vector<2x256xf32>
      %405 = vector.extract_strided_slice %398 {offsets = [2, 0], sizes = [2, 256], strides = [1, 1]} : vector<4x256xf32> to vector<2x256xf32>
      %406 = vector.broadcast %400 : f32 to vector<2x256xf32>
      %407 = arith.mulf %406, %405 : vector<2x256xf32>
      %408 = arith.addf %404, %407 : vector<2x256xf32>
      %409 = vector.extract_strided_slice %23 {offsets = [0, 113], sizes = [4, 256], strides = [1, 1]} : vector<4x512xf32> to vector<4x256xf32>
      %c18 = arith.constant 18 : index
      %410 = memref.load %arg4[%c18] : memref<98xf32, #tpu.memory_space<smem>>
      %c67 = arith.constant 67 : index
      %411 = memref.load %arg4[%c67] : memref<98xf32, #tpu.memory_space<smem>>
      %412 = vector.extract_strided_slice %409 {offsets = [0, 0], sizes = [2, 256], strides = [1, 1]} : vector<4x256xf32> to vector<2x256xf32>
      %413 = vector.broadcast %410 : f32 to vector<2x256xf32>
      %414 = arith.mulf %413, %412 : vector<2x256xf32>
      %415 = arith.addf %408, %414 : vector<2x256xf32>
      %416 = vector.extract_strided_slice %409 {offsets = [2, 0], sizes = [2, 256], strides = [1, 1]} : vector<4x256xf32> to vector<2x256xf32>
      %417 = vector.broadcast %411 : f32 to vector<2x256xf32>
      %418 = arith.mulf %417, %416 : vector<2x256xf32>
      %419 = arith.addf %415, %418 : vector<2x256xf32>
      %420 = vector.extract_strided_slice %23 {offsets = [0, 129], sizes = [4, 256], strides = [1, 1]} : vector<4x512xf32> to vector<4x256xf32>
      %c25 = arith.constant 25 : index
      %421 = memref.load %arg4[%c25] : memref<98xf32, #tpu.memory_space<smem>>
      %c74 = arith.constant 74 : index
      %422 = memref.load %arg4[%c74] : memref<98xf32, #tpu.memory_space<smem>>
      %423 = vector.extract_strided_slice %420 {offsets = [0, 0], sizes = [2, 256], strides = [1, 1]} : vector<4x256xf32> to vector<2x256xf32>
      %424 = vector.broadcast %421 : f32 to vector<2x256xf32>
      %425 = arith.mulf %424, %423 : vector<2x256xf32>
      %426 = arith.addf %419, %425 : vector<2x256xf32>
      %427 = vector.extract_strided_slice %420 {offsets = [2, 0], sizes = [2, 256], strides = [1, 1]} : vector<4x256xf32> to vector<2x256xf32>
      %428 = vector.broadcast %422 : f32 to vector<2x256xf32>
      %429 = arith.mulf %428, %427 : vector<2x256xf32>
      %430 = arith.addf %426, %429 : vector<2x256xf32>
      %431 = vector.extract_strided_slice %23 {offsets = [0, 145], sizes = [4, 256], strides = [1, 1]} : vector<4x512xf32> to vector<4x256xf32>
      %c32 = arith.constant 32 : index
      %432 = memref.load %arg4[%c32] : memref<98xf32, #tpu.memory_space<smem>>
      %c81 = arith.constant 81 : index
      %433 = memref.load %arg4[%c81] : memref<98xf32, #tpu.memory_space<smem>>
      %434 = vector.extract_strided_slice %431 {offsets = [0, 0], sizes = [2, 256], strides = [1, 1]} : vector<4x256xf32> to vector<2x256xf32>
      %435 = vector.broadcast %432 : f32 to vector<2x256xf32>
      %436 = arith.mulf %435, %434 : vector<2x256xf32>
      %437 = arith.addf %430, %436 : vector<2x256xf32>
      %438 = vector.extract_strided_slice %431 {offsets = [2, 0], sizes = [2, 256], strides = [1, 1]} : vector<4x256xf32> to vector<2x256xf32>
      %439 = vector.broadcast %433 : f32 to vector<2x256xf32>
      %440 = arith.mulf %439, %438 : vector<2x256xf32>
      %441 = arith.addf %437, %440 : vector<2x256xf32>
      %442 = vector.extract_strided_slice %23 {offsets = [0, 161], sizes = [4, 256], strides = [1, 1]} : vector<4x512xf32> to vector<4x256xf32>
      %c39 = arith.constant 39 : index
      %443 = memref.load %arg4[%c39] : memref<98xf32, #tpu.memory_space<smem>>
      %c88 = arith.constant 88 : index
      %444 = memref.load %arg4[%c88] : memref<98xf32, #tpu.memory_space<smem>>
      %445 = vector.extract_strided_slice %442 {offsets = [0, 0], sizes = [2, 256], strides = [1, 1]} : vector<4x256xf32> to vector<2x256xf32>
      %446 = vector.broadcast %443 : f32 to vector<2x256xf32>
      %447 = arith.mulf %446, %445 : vector<2x256xf32>
      %448 = arith.addf %441, %447 : vector<2x256xf32>
      %449 = vector.extract_strided_slice %442 {offsets = [2, 0], sizes = [2, 256], strides = [1, 1]} : vector<4x256xf32> to vector<2x256xf32>
      %450 = vector.broadcast %444 : f32 to vector<2x256xf32>
      %451 = arith.mulf %450, %449 : vector<2x256xf32>
      %452 = arith.addf %448, %451 : vector<2x256xf32>
      %453 = vector.extract_strided_slice %23 {offsets = [0, 177], sizes = [4, 256], strides = [1, 1]} : vector<4x512xf32> to vector<4x256xf32>
      %c46 = arith.constant 46 : index
      %454 = memref.load %arg4[%c46] : memref<98xf32, #tpu.memory_space<smem>>
      %c95 = arith.constant 95 : index
      %455 = memref.load %arg4[%c95] : memref<98xf32, #tpu.memory_space<smem>>
      %456 = vector.extract_strided_slice %453 {offsets = [0, 0], sizes = [2, 256], strides = [1, 1]} : vector<4x256xf32> to vector<2x256xf32>
      %457 = vector.broadcast %454 : f32 to vector<2x256xf32>
      %458 = arith.mulf %457, %456 : vector<2x256xf32>
      %459 = arith.addf %452, %458 : vector<2x256xf32>
      %460 = vector.extract_strided_slice %453 {offsets = [2, 0], sizes = [2, 256], strides = [1, 1]} : vector<4x256xf32> to vector<2x256xf32>
      %461 = vector.broadcast %455 : f32 to vector<2x256xf32>
      %462 = arith.mulf %461, %460 : vector<2x256xf32>
      %463 = arith.addf %459, %462 : vector<2x256xf32>
      %c1_i32 = arith.constant 1 : i32
      %464 = vector.broadcast %c1_i32 : i32 to vector<1x256xi32>
      %465 = arith.addi %24, %464 : vector<1x256xi32>
      %c0_i32_42 = arith.constant 0 : i32
      %466 = vector.broadcast %c0_i32_42 : i32 to vector<1x256xi32>
      %467 = arith.cmpi sge, %465, %466 : vector<1x256xi32>
      %c16_i32_43 = arith.constant 16 : i32
      %468 = vector.broadcast %c16_i32_43 : i32 to vector<1x256xi32>
      %469 = arith.cmpi slt, %465, %468 : vector<1x256xi32>
      %470 = arith.andi %467, %469 : vector<1x256xi1>
      %cst_44 = arith.constant 0.000000e+00 : f32
      %471 = vector.shape_cast %470 : vector<1x256xi1> to vector<1x256xi1>
      %472 = vector.broadcast %471 : vector<1x256xi1> to vector<2x256xi1>
      %473 = vector.broadcast %cst_44 : f32 to vector<2x256xf32>
      %474 = arith.select %472, %463, %473 : vector<2x256xi1>, vector<2x256xf32>
      %475 = arith.addf %385, %474 : vector<2x256xf32>
      %cst_45 = arith.constant 0.000000e+00 : f32
      %476 = vector.broadcast %cst_45 : f32 to vector<2x256xf32>
      %477 = vector.extract_strided_slice %23 {offsets = [0, 82], sizes = [4, 256], strides = [1, 1]} : vector<4x512xf32> to vector<4x256xf32>
      %c5 = arith.constant 5 : index
      %478 = memref.load %arg4[%c5] : memref<98xf32, #tpu.memory_space<smem>>
      %c54 = arith.constant 54 : index
      %479 = memref.load %arg4[%c54] : memref<98xf32, #tpu.memory_space<smem>>
      %480 = vector.extract_strided_slice %477 {offsets = [0, 0], sizes = [2, 256], strides = [1, 1]} : vector<4x256xf32> to vector<2x256xf32>
      %481 = vector.broadcast %478 : f32 to vector<2x256xf32>
      %482 = arith.mulf %481, %480 : vector<2x256xf32>
      %483 = arith.addf %476, %482 : vector<2x256xf32>
      %484 = vector.extract_strided_slice %477 {offsets = [2, 0], sizes = [2, 256], strides = [1, 1]} : vector<4x256xf32> to vector<2x256xf32>
      %485 = vector.broadcast %479 : f32 to vector<2x256xf32>
      %486 = arith.mulf %485, %484 : vector<2x256xf32>
      %487 = arith.addf %483, %486 : vector<2x256xf32>
      %488 = vector.extract_strided_slice %23 {offsets = [0, 98], sizes = [4, 256], strides = [1, 1]} : vector<4x512xf32> to vector<4x256xf32>
      %c12 = arith.constant 12 : index
      %489 = memref.load %arg4[%c12] : memref<98xf32, #tpu.memory_space<smem>>
      %c61 = arith.constant 61 : index
      %490 = memref.load %arg4[%c61] : memref<98xf32, #tpu.memory_space<smem>>
      %491 = vector.extract_strided_slice %488 {offsets = [0, 0], sizes = [2, 256], strides = [1, 1]} : vector<4x256xf32> to vector<2x256xf32>
      %492 = vector.broadcast %489 : f32 to vector<2x256xf32>
      %493 = arith.mulf %492, %491 : vector<2x256xf32>
      %494 = arith.addf %487, %493 : vector<2x256xf32>
      %495 = vector.extract_strided_slice %488 {offsets = [2, 0], sizes = [2, 256], strides = [1, 1]} : vector<4x256xf32> to vector<2x256xf32>
      %496 = vector.broadcast %490 : f32 to vector<2x256xf32>
      %497 = arith.mulf %496, %495 : vector<2x256xf32>
      %498 = arith.addf %494, %497 : vector<2x256xf32>
      %499 = vector.extract_strided_slice %23 {offsets = [0, 114], sizes = [4, 256], strides = [1, 1]} : vector<4x512xf32> to vector<4x256xf32>
      %c19 = arith.constant 19 : index
      %500 = memref.load %arg4[%c19] : memref<98xf32, #tpu.memory_space<smem>>
      %c68 = arith.constant 68 : index
      %501 = memref.load %arg4[%c68] : memref<98xf32, #tpu.memory_space<smem>>
      %502 = vector.extract_strided_slice %499 {offsets = [0, 0], sizes = [2, 256], strides = [1, 1]} : vector<4x256xf32> to vector<2x256xf32>
      %503 = vector.broadcast %500 : f32 to vector<2x256xf32>
      %504 = arith.mulf %503, %502 : vector<2x256xf32>
      %505 = arith.addf %498, %504 : vector<2x256xf32>
      %506 = vector.extract_strided_slice %499 {offsets = [2, 0], sizes = [2, 256], strides = [1, 1]} : vector<4x256xf32> to vector<2x256xf32>
      %507 = vector.broadcast %501 : f32 to vector<2x256xf32>
      %508 = arith.mulf %507, %506 : vector<2x256xf32>
      %509 = arith.addf %505, %508 : vector<2x256xf32>
      %510 = vector.extract_strided_slice %23 {offsets = [0, 130], sizes = [4, 256], strides = [1, 1]} : vector<4x512xf32> to vector<4x256xf32>
      %c26 = arith.constant 26 : index
      %511 = memref.load %arg4[%c26] : memref<98xf32, #tpu.memory_space<smem>>
      %c75 = arith.constant 75 : index
      %512 = memref.load %arg4[%c75] : memref<98xf32, #tpu.memory_space<smem>>
      %513 = vector.extract_strided_slice %510 {offsets = [0, 0], sizes = [2, 256], strides = [1, 1]} : vector<4x256xf32> to vector<2x256xf32>
      %514 = vector.broadcast %511 : f32 to vector<2x256xf32>
      %515 = arith.mulf %514, %513 : vector<2x256xf32>
      %516 = arith.addf %509, %515 : vector<2x256xf32>
      %517 = vector.extract_strided_slice %510 {offsets = [2, 0], sizes = [2, 256], strides = [1, 1]} : vector<4x256xf32> to vector<2x256xf32>
      %518 = vector.broadcast %512 : f32 to vector<2x256xf32>
      %519 = arith.mulf %518, %517 : vector<2x256xf32>
      %520 = arith.addf %516, %519 : vector<2x256xf32>
      %521 = vector.extract_strided_slice %23 {offsets = [0, 146], sizes = [4, 256], strides = [1, 1]} : vector<4x512xf32> to vector<4x256xf32>
      %c33 = arith.constant 33 : index
      %522 = memref.load %arg4[%c33] : memref<98xf32, #tpu.memory_space<smem>>
      %c82 = arith.constant 82 : index
      %523 = memref.load %arg4[%c82] : memref<98xf32, #tpu.memory_space<smem>>
      %524 = vector.extract_strided_slice %521 {offsets = [0, 0], sizes = [2, 256], strides = [1, 1]} : vector<4x256xf32> to vector<2x256xf32>
      %525 = vector.broadcast %522 : f32 to vector<2x256xf32>
      %526 = arith.mulf %525, %524 : vector<2x256xf32>
      %527 = arith.addf %520, %526 : vector<2x256xf32>
      %528 = vector.extract_strided_slice %521 {offsets = [2, 0], sizes = [2, 256], strides = [1, 1]} : vector<4x256xf32> to vector<2x256xf32>
      %529 = vector.broadcast %523 : f32 to vector<2x256xf32>
      %530 = arith.mulf %529, %528 : vector<2x256xf32>
      %531 = arith.addf %527, %530 : vector<2x256xf32>
      %532 = vector.extract_strided_slice %23 {offsets = [0, 162], sizes = [4, 256], strides = [1, 1]} : vector<4x512xf32> to vector<4x256xf32>
      %c40 = arith.constant 40 : index
      %533 = memref.load %arg4[%c40] : memref<98xf32, #tpu.memory_space<smem>>
      %c89 = arith.constant 89 : index
      %534 = memref.load %arg4[%c89] : memref<98xf32, #tpu.memory_space<smem>>
      %535 = vector.extract_strided_slice %532 {offsets = [0, 0], sizes = [2, 256], strides = [1, 1]} : vector<4x256xf32> to vector<2x256xf32>
      %536 = vector.broadcast %533 : f32 to vector<2x256xf32>
      %537 = arith.mulf %536, %535 : vector<2x256xf32>
      %538 = arith.addf %531, %537 : vector<2x256xf32>
      %539 = vector.extract_strided_slice %532 {offsets = [2, 0], sizes = [2, 256], strides = [1, 1]} : vector<4x256xf32> to vector<2x256xf32>
      %540 = vector.broadcast %534 : f32 to vector<2x256xf32>
      %541 = arith.mulf %540, %539 : vector<2x256xf32>
      %542 = arith.addf %538, %541 : vector<2x256xf32>
      %543 = vector.extract_strided_slice %23 {offsets = [0, 178], sizes = [4, 256], strides = [1, 1]} : vector<4x512xf32> to vector<4x256xf32>
      %c47 = arith.constant 47 : index
      %544 = memref.load %arg4[%c47] : memref<98xf32, #tpu.memory_space<smem>>
      %c96 = arith.constant 96 : index
      %545 = memref.load %arg4[%c96] : memref<98xf32, #tpu.memory_space<smem>>
      %546 = vector.extract_strided_slice %543 {offsets = [0, 0], sizes = [2, 256], strides = [1, 1]} : vector<4x256xf32> to vector<2x256xf32>
      %547 = vector.broadcast %544 : f32 to vector<2x256xf32>
      %548 = arith.mulf %547, %546 : vector<2x256xf32>
      %549 = arith.addf %542, %548 : vector<2x256xf32>
      %550 = vector.extract_strided_slice %543 {offsets = [2, 0], sizes = [2, 256], strides = [1, 1]} : vector<4x256xf32> to vector<2x256xf32>
      %551 = vector.broadcast %545 : f32 to vector<2x256xf32>
      %552 = arith.mulf %551, %550 : vector<2x256xf32>
      %553 = arith.addf %549, %552 : vector<2x256xf32>
      %c2_i32 = arith.constant 2 : i32
      %554 = vector.broadcast %c2_i32 : i32 to vector<1x256xi32>
      %555 = arith.addi %24, %554 : vector<1x256xi32>
      %c0_i32_46 = arith.constant 0 : i32
      %556 = vector.broadcast %c0_i32_46 : i32 to vector<1x256xi32>
      %557 = arith.cmpi sge, %555, %556 : vector<1x256xi32>
      %c16_i32_47 = arith.constant 16 : i32
      %558 = vector.broadcast %c16_i32_47 : i32 to vector<1x256xi32>
      %559 = arith.cmpi slt, %555, %558 : vector<1x256xi32>
      %560 = arith.andi %557, %559 : vector<1x256xi1>
      %cst_48 = arith.constant 0.000000e+00 : f32
      %561 = vector.shape_cast %560 : vector<1x256xi1> to vector<1x256xi1>
      %562 = vector.broadcast %561 : vector<1x256xi1> to vector<2x256xi1>
      %563 = vector.broadcast %cst_48 : f32 to vector<2x256xf32>
      %564 = arith.select %562, %553, %563 : vector<2x256xi1>, vector<2x256xf32>
      %565 = arith.addf %475, %564 : vector<2x256xf32>
      %cst_49 = arith.constant 0.000000e+00 : f32
      %566 = vector.broadcast %cst_49 : f32 to vector<2x256xf32>
      %567 = vector.extract_strided_slice %23 {offsets = [0, 83], sizes = [4, 256], strides = [1, 1]} : vector<4x512xf32> to vector<4x256xf32>
      %c6 = arith.constant 6 : index
      %568 = memref.load %arg4[%c6] : memref<98xf32, #tpu.memory_space<smem>>
      %c55 = arith.constant 55 : index
      %569 = memref.load %arg4[%c55] : memref<98xf32, #tpu.memory_space<smem>>
      %570 = vector.extract_strided_slice %567 {offsets = [0, 0], sizes = [2, 256], strides = [1, 1]} : vector<4x256xf32> to vector<2x256xf32>
      %571 = vector.broadcast %568 : f32 to vector<2x256xf32>
      %572 = arith.mulf %571, %570 : vector<2x256xf32>
      %573 = arith.addf %566, %572 : vector<2x256xf32>
      %574 = vector.extract_strided_slice %567 {offsets = [2, 0], sizes = [2, 256], strides = [1, 1]} : vector<4x256xf32> to vector<2x256xf32>
      %575 = vector.broadcast %569 : f32 to vector<2x256xf32>
      %576 = arith.mulf %575, %574 : vector<2x256xf32>
      %577 = arith.addf %573, %576 : vector<2x256xf32>
      %578 = vector.extract_strided_slice %23 {offsets = [0, 99], sizes = [4, 256], strides = [1, 1]} : vector<4x512xf32> to vector<4x256xf32>
      %c13 = arith.constant 13 : index
      %579 = memref.load %arg4[%c13] : memref<98xf32, #tpu.memory_space<smem>>
      %c62 = arith.constant 62 : index
      %580 = memref.load %arg4[%c62] : memref<98xf32, #tpu.memory_space<smem>>
      %581 = vector.extract_strided_slice %578 {offsets = [0, 0], sizes = [2, 256], strides = [1, 1]} : vector<4x256xf32> to vector<2x256xf32>
      %582 = vector.broadcast %579 : f32 to vector<2x256xf32>
      %583 = arith.mulf %582, %581 : vector<2x256xf32>
      %584 = arith.addf %577, %583 : vector<2x256xf32>
      %585 = vector.extract_strided_slice %578 {offsets = [2, 0], sizes = [2, 256], strides = [1, 1]} : vector<4x256xf32> to vector<2x256xf32>
      %586 = vector.broadcast %580 : f32 to vector<2x256xf32>
      %587 = arith.mulf %586, %585 : vector<2x256xf32>
      %588 = arith.addf %584, %587 : vector<2x256xf32>
      %589 = vector.extract_strided_slice %23 {offsets = [0, 115], sizes = [4, 256], strides = [1, 1]} : vector<4x512xf32> to vector<4x256xf32>
      %c20 = arith.constant 20 : index
      %590 = memref.load %arg4[%c20] : memref<98xf32, #tpu.memory_space<smem>>
      %c69 = arith.constant 69 : index
      %591 = memref.load %arg4[%c69] : memref<98xf32, #tpu.memory_space<smem>>
      %592 = vector.extract_strided_slice %589 {offsets = [0, 0], sizes = [2, 256], strides = [1, 1]} : vector<4x256xf32> to vector<2x256xf32>
      %593 = vector.broadcast %590 : f32 to vector<2x256xf32>
      %594 = arith.mulf %593, %592 : vector<2x256xf32>
      %595 = arith.addf %588, %594 : vector<2x256xf32>
      %596 = vector.extract_strided_slice %589 {offsets = [2, 0], sizes = [2, 256], strides = [1, 1]} : vector<4x256xf32> to vector<2x256xf32>
      %597 = vector.broadcast %591 : f32 to vector<2x256xf32>
      %598 = arith.mulf %597, %596 : vector<2x256xf32>
      %599 = arith.addf %595, %598 : vector<2x256xf32>
      %600 = vector.extract_strided_slice %23 {offsets = [0, 131], sizes = [4, 256], strides = [1, 1]} : vector<4x512xf32> to vector<4x256xf32>
      %c27 = arith.constant 27 : index
      %601 = memref.load %arg4[%c27] : memref<98xf32, #tpu.memory_space<smem>>
      %c76 = arith.constant 76 : index
      %602 = memref.load %arg4[%c76] : memref<98xf32, #tpu.memory_space<smem>>
      %603 = vector.extract_strided_slice %600 {offsets = [0, 0], sizes = [2, 256], strides = [1, 1]} : vector<4x256xf32> to vector<2x256xf32>
      %604 = vector.broadcast %601 : f32 to vector<2x256xf32>
      %605 = arith.mulf %604, %603 : vector<2x256xf32>
      %606 = arith.addf %599, %605 : vector<2x256xf32>
      %607 = vector.extract_strided_slice %600 {offsets = [2, 0], sizes = [2, 256], strides = [1, 1]} : vector<4x256xf32> to vector<2x256xf32>
      %608 = vector.broadcast %602 : f32 to vector<2x256xf32>
      %609 = arith.mulf %608, %607 : vector<2x256xf32>
      %610 = arith.addf %606, %609 : vector<2x256xf32>
      %611 = vector.extract_strided_slice %23 {offsets = [0, 147], sizes = [4, 256], strides = [1, 1]} : vector<4x512xf32> to vector<4x256xf32>
      %c34 = arith.constant 34 : index
      %612 = memref.load %arg4[%c34] : memref<98xf32, #tpu.memory_space<smem>>
      %c83 = arith.constant 83 : index
      %613 = memref.load %arg4[%c83] : memref<98xf32, #tpu.memory_space<smem>>
      %614 = vector.extract_strided_slice %611 {offsets = [0, 0], sizes = [2, 256], strides = [1, 1]} : vector<4x256xf32> to vector<2x256xf32>
      %615 = vector.broadcast %612 : f32 to vector<2x256xf32>
      %616 = arith.mulf %615, %614 : vector<2x256xf32>
      %617 = arith.addf %610, %616 : vector<2x256xf32>
      %618 = vector.extract_strided_slice %611 {offsets = [2, 0], sizes = [2, 256], strides = [1, 1]} : vector<4x256xf32> to vector<2x256xf32>
      %619 = vector.broadcast %613 : f32 to vector<2x256xf32>
      %620 = arith.mulf %619, %618 : vector<2x256xf32>
      %621 = arith.addf %617, %620 : vector<2x256xf32>
      %622 = vector.extract_strided_slice %23 {offsets = [0, 163], sizes = [4, 256], strides = [1, 1]} : vector<4x512xf32> to vector<4x256xf32>
      %c41 = arith.constant 41 : index
      %623 = memref.load %arg4[%c41] : memref<98xf32, #tpu.memory_space<smem>>
      %c90 = arith.constant 90 : index
      %624 = memref.load %arg4[%c90] : memref<98xf32, #tpu.memory_space<smem>>
      %625 = vector.extract_strided_slice %622 {offsets = [0, 0], sizes = [2, 256], strides = [1, 1]} : vector<4x256xf32> to vector<2x256xf32>
      %626 = vector.broadcast %623 : f32 to vector<2x256xf32>
      %627 = arith.mulf %626, %625 : vector<2x256xf32>
      %628 = arith.addf %621, %627 : vector<2x256xf32>
      %629 = vector.extract_strided_slice %622 {offsets = [2, 0], sizes = [2, 256], strides = [1, 1]} : vector<4x256xf32> to vector<2x256xf32>
      %630 = vector.broadcast %624 : f32 to vector<2x256xf32>
      %631 = arith.mulf %630, %629 : vector<2x256xf32>
      %632 = arith.addf %628, %631 : vector<2x256xf32>
      %633 = vector.extract_strided_slice %23 {offsets = [0, 179], sizes = [4, 256], strides = [1, 1]} : vector<4x512xf32> to vector<4x256xf32>
      %c48 = arith.constant 48 : index
      %634 = memref.load %arg4[%c48] : memref<98xf32, #tpu.memory_space<smem>>
      %c97 = arith.constant 97 : index
      %635 = memref.load %arg4[%c97] : memref<98xf32, #tpu.memory_space<smem>>
      %636 = vector.extract_strided_slice %633 {offsets = [0, 0], sizes = [2, 256], strides = [1, 1]} : vector<4x256xf32> to vector<2x256xf32>
      %637 = vector.broadcast %634 : f32 to vector<2x256xf32>
      %638 = arith.mulf %637, %636 : vector<2x256xf32>
      %639 = arith.addf %632, %638 : vector<2x256xf32>
      %640 = vector.extract_strided_slice %633 {offsets = [2, 0], sizes = [2, 256], strides = [1, 1]} : vector<4x256xf32> to vector<2x256xf32>
      %641 = vector.broadcast %635 : f32 to vector<2x256xf32>
      %642 = arith.mulf %641, %640 : vector<2x256xf32>
      %643 = arith.addf %639, %642 : vector<2x256xf32>
      %c3_i32 = arith.constant 3 : i32
      %644 = vector.broadcast %c3_i32 : i32 to vector<1x256xi32>
      %645 = arith.addi %24, %644 : vector<1x256xi32>
      %c0_i32_50 = arith.constant 0 : i32
      %646 = vector.broadcast %c0_i32_50 : i32 to vector<1x256xi32>
      %647 = arith.cmpi sge, %645, %646 : vector<1x256xi32>
      %c16_i32_51 = arith.constant 16 : i32
      %648 = vector.broadcast %c16_i32_51 : i32 to vector<1x256xi32>
      %649 = arith.cmpi slt, %645, %648 : vector<1x256xi32>
      %650 = arith.andi %647, %649 : vector<1x256xi1>
      %cst_52 = arith.constant 0.000000e+00 : f32
      %651 = vector.shape_cast %650 : vector<1x256xi1> to vector<1x256xi1>
      %652 = vector.broadcast %651 : vector<1x256xi1> to vector<2x256xi1>
      %653 = vector.broadcast %cst_52 : f32 to vector<2x256xf32>
      %654 = arith.select %652, %643, %653 : vector<2x256xi1>, vector<2x256xf32>
      %655 = arith.addf %565, %654 : vector<2x256xf32>
      %656 = arith.negf %655 : vector<2x256xf32>
      %657 = math.exp %656 : vector<2x256xf32>
      %cst_53 = arith.constant 1.000000e+00 : f32
      %658 = vector.broadcast %cst_53 : f32 to vector<2x256xf32>
      %659 = arith.addf %658, %657 : vector<2x256xf32>
      %660 = arith.divf %658, %659 : vector<2x256xf32>
      %c0_54 = arith.constant 0 : index
      %c0_55 = arith.constant 0 : index
      %661 = vector.load %arg5[%c0_54, %c0_55] : memref<2x256xf32, #tpu.memory_space<vmem>>, vector<2x256xf32>
      tpu.vector_store %arg5[%c0_54, %c0_55], %660 {strides = array<i32>} : memref<2x256xf32, #tpu.memory_space<vmem>>, vector<2x256xf32>,
    } else {
    }
    return
  }
  func.func @transform_0(%arg0: i32, %arg1: i32) -> (i32, i32, i32) {
    %c0_i32 = arith.constant 0 : i32
    %c0_i32_0 = arith.constant 0 : i32
    return %arg0, %arg1, %c0_i32 : i32, i32, i32
  }
  func.func @transform_1(%arg0: i32, %arg1: i32) -> (i32, i32) {
    %c0_i32 = arith.constant 0 : i32
    %c0_i32_0 = arith.constant 0 : i32
    %c0_i32_1 = arith.constant 0 : i32
    return %c0_i32, %c0_i32_0 : i32, i32
  }
  func.func @transform_2(%arg0: i32, %arg1: i32) -> i32 {
    %c0_i32 = arith.constant 0 : i32
    %c0_i32_0 = arith.constant 0 : i32
    return %c0_i32 : i32
  }
  func.func @transform_3(%arg0: i32, %arg1: i32) -> (i32, i32) {
    %c0_i32 = arith.constant 0 : i32
    %c0_i32_0 = arith.constant 0 : i32
    return %arg0, %c0_i32 : i32, i32
  }
}

</mosaic_0001>

<bundles_post_ra>
// kernel: tpu_custom_call.1
= control target key start
LH: loop header
LB: loop body
LE: loop exit
PB: predicated region body
PF: predicated region fallthrough
CT: control target
= control target key end

     0   :  { %8 = vsyncpa [#allocation6], 0  ;;  %s4032_s0 = inlined_call_operand.hbm [shape: f32[2,4,256], index: 0, kind: input, shape index: {}]   ;;  %s4033_s1 = inlined_call_operand.hbm [shape: s32[1,256], index: 1, kind: input, shape index: {}]   ;;  %s4034_s2 = inlined_call_operand.vmem [shape: f32[98], index: 2, kind: input, shape index: {}]   ;;  %s4035_s3 = inlined_call_operand.hbm [shape: f32[2,256], index: 3, kind: output, shape index: {}]  }
   0x1   :  { %9 = vsyncpa [#allocation10], 0 }
   0x2   :  { %10 = vsyncpa [#allocation8], 0 }
   0x3   :  { %11 = vsyncpa [#allocation7], 0  ;;  %s2593_s12 = smov [#allocation5]  }
   0x4   :  { %s17_s13 = sshll.u32 %s2593_s12, 4  ;;  %s18_s13 = int_to_ptr.vmem [resolvable:$true] %s17_s13 }
   0x5   :  { %s2521_s14 = scalar_lea.vmem %s18_s13, 256  ;;  %p2526_p1 = scmp.lt.s32.totalorder %s18_s13, %s18_s13 }
   0x6   :  { %p2522_p0 = scmp.ne.s32.totalorder %s18_s13, %s2521_s14  ;;  %p2527_p2 = scmp.lt.s32.totalorder %s2521_s14, %s2521_s14 }
   0x8   :  { %p2528_p3 = por %p2527_p2, %p2526_p1 }
   0xa   :  { %p2529_p4 = pnand %p2528_p3, %p2522_p0 }
   0xc   :  { %2532 = shalt.err (!%p2529_p4)
}
   0xd   :  { %s2594_s15 = smov 128   ;;  %s2595_s16 = smov 8  }
   0xe   :  { %23 = dma.hbm_to_vmem [thread:$0]  %s4032_s0, 256, %s18_s13, [#allocation6], %s2594_s15, %s2594_s15, %s2595_s16  }
   0xf   :  { %s2596_s19 = smov [#allocation9]   ;;  %s40_s23 = sshll.u32 %s4034_s2, 4  ;;  %s41_s23 = int_to_ptr.vmem [resolvable:$true] %s40_s23 }
  0x10   :  { %s30_s20 = sshll.u32 %s2596_s19, 4  ;;  %s31_s20 = int_to_ptr.vmem [resolvable:$true] %s30_s20 }
  0x11   :  { %s2541_s24 = scalar_lea.vmem %s31_s20, 32  ;;  %p2546_p6 = scmp.lt.s32.totalorder %s31_s20, %s31_s20 }
  0x12   :  { %p2542_p5 = scmp.ne.s32.totalorder %s31_s20, %s2541_s24  ;;  %p2547_p7 = scmp.lt.s32.totalorder %s2541_s24, %s2541_s24 }
  0x14   :  { %p2548_p8 = por %p2547_p7, %p2546_p6 }
  0x16   :  { %p2549_p9 = pnand %p2548_p8, %p2542_p5 }
  0x18   :  { %2552 = shalt.err (!%p2549_p9)
}
  0x19   :  { %33 = dma.hbm_to_vmem [thread:$0]  %s4033_s1, 32, %s31_s20, [#allocation10]  }
  0x1a   :  { %s2553_s0 = scalar_lea.vmem %s41_s23, 16  ;;  %p2558_p11 = scmp.lt.s32.totalorder %s41_s23, %s41_s23 }
  0x1b   :  { %p2554_p10 = scmp.ne.s32.totalorder %s41_s23, %s2553_s0  ;;  %p2559_p12 = scmp.lt.s32.totalorder %s2553_s0, %s2553_s0 }
  0x1d   :  { %p2560_p13 = por %p2559_p12, %p2558_p11 }
  0x1f   :  { %p2561_p0 = pnand %p2560_p13, %p2554_p10 }
  0x21   :  { %2564 = shalt.err (!%p2561_p0)
}
  0x22   :  { %s2597_s2 = smov [#allocation11]  }
  0x23   :  { %43 = dma.vmem_to_smem %s41_s23, 16, %s2597_s2, [#allocation8]  }
  0x24   :  { %2585 = dma.done.wait [#allocation6], 256  }
  0x25   :  { %2586 = vsyncadd [#allocation6], 4294967040 }
  0x26   :  { %2587 = dma.done.wait [#allocation10], 32  }
  0x27   :  { %2588 = vsyncadd [#allocation10], 4294967264 }
  0x28   :  { %2589 = dma.done.wait [#allocation8], 16  }
  0x29   :  { %2590 = vsyncadd [#allocation8], 4294967280 }
  0x2a   :  { %53 = sfence }
  0x2b   :  { %v62_v0 = vld [vmem:[#allocation5] sm:$0xff]  ;;  %v63_v1 = vld [vmem:[#allocation5 + $0x8] sm:$0xff]  ;;  %vm70_vm0 = vcmask 1043456   ;;  %v138_v2 = vlaneseq  ;;  %v2598_v3 = vmov 0.0   ;;  %v2599_v58 = vmov 1983009808  }
  0x2c   :  { %61 = vst [vmem:[#allocation4 + $0xc] sm:$0xf] %v2598_v3  ;;  %v66_v4 = vcombine.high %v62_v0, %v62_v0  ;;  %v67_v5 = vcombine.high %v63_v1, %v63_v1  ;;  %v71_v6 = vsel %vm70_vm0, %v62_v0, 0.0  ;;  %v85_v7 = vsel %vm70_vm0, %v63_v1, 0.0  ;;  %60 = vst [vmem:[#allocation4] sm:$0xf] %v2598_v3 }
  0x2d   :  { %v72_v8 = vrot.slane %v71_v6, 4  ;;  %v86_v9 = vrot.slane %v85_v7, 4  ;;  %v99_v10 = vsel %vm70_vm0, %v62_v0, -inf  ;;  %v113_v11 = vsel %vm70_vm0, %v63_v1, -inf  ;;  %s2673_s1 = sld [smem:[#allocation11 + $0xe]]  ;;  %s2600_s28 = smov 115  }
  0x2e   :  { %v78_v12 = vsel %vm70_vm0, %v66_v4, 0.0  ;;  %v92_v13 = vsel %vm70_vm0, %v67_v5, 0.0  ;;  %v100_v14 = vrot.slane %v99_v10, 4  ;;  %v106_v15 = vsel %vm70_vm0, %v66_v4, -inf  ;;  %s2288_s27 = sld [smem:[#allocation11 + $0x7]]  ;;  %s2601_s30 = smov 99  }
  0x2f   :  { %v73_v16 = vadd.f32 %v72_v8, %v71_v6  ;;  %v79_v17 = vrot.slane %v78_v12, 4  ;;  %v87_v18 = vadd.f32 %v86_v9, %v85_v7  ;;  %v93_v19 = vrot.slane %v92_v13, 4  ;;  %s2681_s29 = sld [smem:[#allocation11 + $0x15]]  ;;  %s2602_s5 = smov 83  }
  0x30   :  { %v101_v20 = vmax.f32 %v99_v10, %v100_v14  ;;  %v107_v21 = vrot.slane %v106_v15, 4  ;;  %v114_v22 = vrot.slane %v113_v11, 4  ;;  %v120_v23 = vsel %vm70_vm0, %v67_v5, -inf  ;;  %s2686_s4 = sld [smem:[#allocation11 + $0x8]]  ;;  %s2603_s8 = smov 96  }
  0x31   :  { %v74_v24 = vrot.slane %v73_v16, 2  ;;  %v80_v25 = vadd.f32 %v79_v17, %v78_v12  ;;  %v88_v26 = vrot.slane %v87_v18, 2  ;;  %v94_v27 = vadd.f32 %v93_v19, %v92_v13  ;;  %s2694_s6 = sld [smem:[#allocation11 + $0xf]]  ;;  %s2604_s9 = smov 112  }
  0x32   :  { %v102_v28 = vrot.slane %v101_v20, 2  ;;  %v108_v29 = vmax.f32 %v106_v15, %v107_v21  ;;  %v115_v30 = vmax.f32 %v113_v11, %v114_v22  ;;  %v121_v31 = vrot.slane %v120_v23, 4  ;;  %s2289_s7 = sld [smem:[#allocation11 + $0x38]]  ;;  %s2605_s10 = smov 80  }
  0x33   :  { %v75_v32 = vadd.f32 %v74_v24, %v73_v16  ;;  %v81_v33 = vrot.slane %v80_v25, 2  ;;  %v89_v34 = vadd.f32 %v88_v26, %v87_v18  ;;  %v95_v35 = vrot.slane %v94_v27, 2  ;;  %s2293_s11 = sld [smem:[#allocation11 + $0x3f]]  ;;  %s2606_s19 = smov 114  }
  0x34   :  { %v103_v36 = vmax.f32 %v101_v20, %v102_v28  ;;  %v109_v37 = vrot.slane %v108_v29, 2  ;;  %v116_v38 = vrot.slane %v115_v30, 2  ;;  %v122_v39 = vmax.f32 %v120_v23, %v121_v31  ;;  %s2297_s12 = sld [smem:[#allocation11 + $0x46]]  ;;  %s2607_s20 = smov 98  }
  0x35   :  { %v76_v40 = vrot.slane %v75_v32, 1  ;;  %v82_v41 = vadd.f32 %v81_v33, %v80_v25  ;;  %v90_v42 = vrot.slane %v89_v34, 1  ;;  %v96_v43 = vadd.f32 %v95_v35, %v94_v27  ;;  %s2314_s13 = sld [smem:[#allocation11 + $0x39]]  ;;  %s2608_s23 = smov 82  }
  0x36   :  { %v104_v44 = vrot.slane %v103_v36, 1  ;;  %v110_v45 = vmax.f32 %v108_v29, %v109_v37  ;;  %v117_v46 = vmax.f32 %v115_v30, %v116_v38  ;;  %v123_v47 = vrot.slane %v122_v39, 2  ;;  %s2318_s14 = sld [smem:[#allocation11 + $0x40]]  ;;  %s2609_s26 = smov 113  }
  0x37   :  { %v77_v48 = vadd.f32 %v76_v40, %v75_v32  ;;  %v83_v49 = vrot.slane %v82_v41, 1  ;;  %v91_v50 = vadd.f32 %v90_v42, %v89_v34  ;;  %v97_v51 = vrot.slane %v96_v43, 1  ;;  %s2321_s15 = sld [smem:[#allocation11 + $0x16]]  ;;  %s2610_s0 = smov 127  }
  0x38   :  { %v105_v52 = vmax.f32 %v103_v36, %v104_v44  ;;  %v111_v53 = vrot.slane %v110_v45, 1  ;;  %v118_v54 = vrot.slane %v117_v46, 1  ;;  %v124_v55 = vmax.f32 %v122_v39, %v123_v47  ;;  %s2322_s16 = sld [smem:[#allocation11 + $0x47]]  ;;  %s2611_s2 = smov 126  }
  0x39   :  { %v84_v56 = vadd.f32 %v83_v49, %v82_v41  ;;  %v98_v57 = vadd.f32 %v97_v51, %v96_v43  ;;  %v136_v59 = vunpack.c.l.s4 %v2599_v58  ;;  %v2670_v60 = vshrl.u32 %v138_v2, 7  ;;  %s2338_s17 = sld [smem:[#allocation11 + $0x9]] }
  0x3a   :  { %v112_v61 = vmax.f32 %v110_v45, %v111_v53  ;;  %v119_v62 = vmax.f32 %v117_v46, %v118_v54  ;;  %v125_v63 = vrot.slane %v124_v55, 1  ;;  %vm155_vm1 = vcmask 1041409   ;;  %s2339_s18 = sld [smem:[#allocation11 + $0x3a]] }
  0x3b   :  { %4055 = vst [vmem:[#allocation17_spill] sm:$0xff] %v2670_v60  ;;  %v134_v0 = vcombine.low %v77_v48, %v84_v56  ;;  %v137_v1 = vunpack.c.0.s8 %v136_v59  ;;  %v142_v3 = vcombine.low %v91_v50, %v98_v57  ;;  %vm157_vm2 = vcmask 1043459   ;;  %s2342_s21 = sld [smem:[#allocation11 + $0x10]] }
  0x3c   :  { %v126_v4 = vmax.f32 %v124_v55, %v125_v63  ;;  %v169_v5 = vcombine.low %v105_v52, %v112_v61  ;;  %vm159_vm3 = vcmask 1045509   ;;  %vm161_vm4 = vcmask 1047559   ;;  %s2343_s22 = sld [smem:[#allocation11 + $0x41]] }
  0x3d   :  { %v140_v6 = vsub.s32 %v137_v1, %v2670_v60  ;;  %v359_v26 = vstv %s2673_s1  ;;  %v318_v27 = vstv %s2288_s27  ;;  %v400_v30 = vstv %s2681_s29  ;;  %s2346_s24 = sld [smem:[#allocation11 + $0x17]]  ;;  %s2612_s1 = smov 97  }
  0x3e   :  { %v177_v7 = vcombine.low %v119_v62, %v126_v4  ;;  %v605_v33 = vstv %s2686_s4  ;;  %v645_v36 = vstv %s2694_s6  ;;  %v336_v37 = vstv %s2289_s7  ;;  %s2759_s25 = sld [smem:[#allocation11 + $0x48]]  ;;  %s2613_s27 = smov 111  }
  0x3f   :  { %v141_v8 = vrot.slane %v134_v0, %v140_v6  ;;  %v149_v9 = vrot.slane %v142_v3, %v140_v6  ;;  %v176_v10 = vrot.slane %v169_v5, %v140_v6  ;;  %v377_v44 = vstv %s2293_s11  ;;  %s2615_s29 = smov 110   ;;  %s2300_s4 = sld [smem:[#allocation11 + $0x1c]] }
  0x40   :  { %v184_v11 = vrot.slane %v177_v7, %v140_v6  ;;  %v418_v49 = vstv %s2297_s12  ;;  %v622_v54 = vstv %s2314_s13  ;;  %v662_v59 = vstv %s2318_s14  ;;  %s2617_s6 = smov 95   ;;  %s2303_s7 = sld [smem:[#allocation11 + $0x23]] }
  0x41   :  { %v154_v12 = vrot.slane %v149_v9, 7  ;;  %v685_v4 = vstv %s2321_s15  ;;  %v702_v5 = vstv %s2322_s16  ;;  %vm451_vm5 = vcmask 941056   ;;  %s2618_s11 = smov 109   ;;  %s2306_s12 = sld [smem:[#allocation11 + $0x2a]] }
  0x42   :  { %v187_v2 = vrot.slane %v184_v11, 7  ;;  %vm488_vm6 = vcmask 809984   ;;  %s2619_s13 = smov 77   ;;  %vm524_vm7 = vcmask 678912   ;;  %s2325_s14 = sld [smem:[#allocation11 + $0x1d]]  ;;  %vm733_vm8 = vcmask 932864  }
  0x43   :  { %v156_v13 = vsel %vm155_vm1, %v154_v12, %v141_v8  ;;  %s2326_s15 = sld [smem:[#allocation11 + $0x4e]]  ;;  %vm770_vm9 = vcmask 801792   ;;  %vm806_vm10 = vcmask 670720   ;;  %vm330_vm11 = vcmask 916480  }
  0x44   :  { %v158_v14 = vsel %vm157_vm2, %v154_v12, %v156_v13  ;;  %v188_v15 = vsel %vm155_vm1, %v187_v2, %v176_v10  ;;  %s2876_s16 = sld [smem:[#allocation11 + $0x24]]  ;;  %vm371_vm12 = vcmask 785408   ;;  %vm412_vm13 = vcmask 654336  }
  0x45   :  { %v160_v16 = vsel %vm159_vm3, %v154_v12, %v158_v14  ;;  %v189_v17 = vsel %vm157_vm2, %v187_v2, %v188_v15  ;;  %vm1015_vm14 = vcmask 924672   ;;  %vm1524_vm15 = vcmask 1039360  }
  0x46   :  { %v162_v18 = vsel %vm161_vm4, %v154_v12, %v160_v16  ;;  %v190_v19 = vsel %vm159_vm3, %v187_v2, %v189_v17  ;;  %v887_v12 = vstv %s2338_s17  ;;  %s2878_s17 = sld [smem:[#allocation11 + $0x55]]  ;;  %vm1052_vm1 = vcmask 793600  }
  0x47   :  { %164 = vst [vmem:[#allocation2] sm:$0xf] %v162_v18  ;;  %v191_v20 = vsel %vm161_vm4, %v187_v2, %v190_v19  ;;  %v904_v2 = vstv %s2339_s18  ;;  %v927_v18 = vstv %s2342_s21  ;;  %s2880_s18 = sld [smem:[#allocation11 + $0x4d]]  ;;  %vm1560_vm2 = vcmask 908288  }
  0x48   :  { %193 = vst [vmem:[#allocation3] sm:$0xf] %v191_v20  ;;  %v944_v20 = vstv %s2343_s22  ;;  %s2889_s21 = sld [smem:[#allocation11 + $0x54]]  ;;  %s2620_s22 = smov 78   ;;  %vm1800_vm3 = vcmask 1031168   ;;  %vm2076_vm4 = vcmask 1022976  }
  0x4e   :  { %v269_v21 = vld [vmem:[#allocation2] sm:$0xf] }
  0x4f   :  { %v270_v22 = vmul.f32 0.25, %v269_v21  ;;  %v2500_v23 = vld [vmem:[#allocation3] ss:$0 sps:$4 sm:$0xff]  }
  0x50   :  { %2284 = vst.sshfl [vmem:[#allocation4 + $0x4] sm:$0xf0 pattern:$0x76325410] %v2500_v23 }
  0x51   :  { %2283 = vst.sshfl [vmem:[#allocation4 + $0x4] sm:$0xf pattern:$0x76325410] %v270_v22 }
  0x58   :  { %v2675_v24 = vld [vmem:[#allocation4 + $0x8] sm:$0xff]  ;;  %v2677_v25 = vld [vmem:[#allocation4] sm:$0xff] }
  0x59   :  { %446 = vrot.lane.b32.xlu1 %v2675_v24, %s2600_s28  ;;  %444 = vrot.lane.b32.xlu0 %v2677_v25, %s2600_s28  ;;  %v361_v28 = vmul.f32 %v359_v26, %v2675_v24  ;;  %v319_v29 = vmul.f32 %v318_v27, %v2677_v25  ;;  %v402_v31 = vmul.f32 %v400_v30, %v2675_v24  ;;  %s2614_s28 = smov 125  }
  0x5a   :  { %v320_v32 = vmul.f32 %v318_v27, %v2675_v24  ;;  %v606_v34 = vmul.f32 %v605_v33, %v2677_v25  ;;  %v360_v35 = vmul.f32 %v359_v26, %v2677_v25  ;;  %v646_v38 = vmul.f32 %v645_v36, %v2677_v25 }
  0x5b   :  { %v401_v39 = vmul.f32 %v400_v30, %v2677_v25  ;;  %v337_v40 = vmul.f32 %v336_v37, %v2677_v25  ;;  %v607_v42 = vmul.f32 %v605_v33, %v2675_v24  ;;  %v338_v43 = vmul.f32 %v336_v37, %v2675_v24 }
  0x5c   :  { %v647_v46 = vmul.f32 %v645_v36, %v2675_v24  ;;  %v379_v47 = vmul.f32 %v377_v44, %v2675_v24  ;;  %v378_v48 = vmul.f32 %v377_v44, %v2677_v25  ;;  %v420_v52 = vmul.f32 %v418_v49, %v2675_v24 }
  0x5d   :  { %483 = vrot.lane.b32.xlu1 %v2675_v24, %s2601_s30  ;;  %481 = vrot.lane.b32.xlu0 %v2677_v25, %s2601_s30  ;;  %v2290_v41 = vrot.slane %v337_v40, 10  ;;  %v2291_v45 = vrot.slane %v338_v43, 10  ;;  %v419_v53 = vmul.f32 %v418_v49, %v2677_v25  ;;  %v623_v57 = vmul.f32 %v622_v54, %v2677_v25  ;;  %s2616_s30 = smov 81  }
  0x5e   :  { %v2295_v50 = vrot.slane %v379_v47, 10  ;;  %v2294_v51 = vrot.slane %v378_v48, 10  ;;  %v2299_v55 = vrot.slane %v420_v52, 10  ;;  %v624_v58 = vmul.f32 %v622_v54, %v2675_v24 }
  0x5f   :  { %v2298_v56 = vrot.slane %v419_v53, 10  ;;  %v2315_v61 = vrot.slane %v623_v57, 10  ;;  %v663_v63 = vmul.f32 %v662_v59, %v2677_v25  ;;  %v664_v0 = vmul.f32 %v662_v59, %v2675_v24 }
  0x60   :  { %v2316_v62 = vrot.slane %v624_v58, 10  ;;  %v686_v6 = vmul.f32 %v685_v4, %v2677_v25  ;;  %v687_v7 = vmul.f32 %v685_v4, %v2675_v24  ;;  %v703_v8 = vmul.f32 %v702_v5, %v2677_v25 }
  0x61   :  { %519 = vrot.lane.b32.xlu1 %v2675_v24, %s2602_s5  ;;  %517 = vrot.lane.b32.xlu0 %v2677_v25, %s2602_s5  ;;  %v2319_v1 = vrot.slane %v663_v63, 10  ;;  %v2320_v3 = vrot.slane %v664_v0, 10  ;;  %v704_v9 = vmul.f32 %v702_v5, %v2675_v24  ;;  %v888_v13 = vmul.f32 %v887_v12, %v2677_v25 }
  0x62   :  { %v2323_v10 = vrot.slane %v703_v8, 10  ;;  %v905_v14 = vmul.f32 %v904_v2, %v2677_v25  ;;  %v889_v15 = vmul.f32 %v887_v12, %v2675_v24  ;;  %v906_v16 = vmul.f32 %v904_v2, %v2675_v24 }
  0x63   :  { %v2324_v11 = vrot.slane %v704_v9, 10  ;;  %v928_v21 = vmul.f32 %v927_v18, %v2677_v25  ;;  %v945_v22 = vmul.f32 %v944_v20, %v2677_v25  ;;  %v929_v23 = vmul.f32 %v927_v18, %v2675_v24 }
  0x64   :  { %v2340_v17 = vrot.slane %v905_v14, 10  ;;  %v2341_v19 = vrot.slane %v906_v16, 10  ;;  %v946_v26 = vmul.f32 %v944_v20, %v2675_v24  ;;  %v984_v30 = vstv %s2759_s25  ;;  %s3081_s25 = sld [smem:[#allocation11 + $0x4a]] }
  0x65   :  { %366 = vrot.lane.b32.xlu1 %v361_v28, %s2603_s8  ;;  %323 = vrot.lane.b32.xlu0 %v319_v29, %s2604_s9  ;;  %v2344_v27 = vrot.slane %v945_v22, 10  ;;  %v967_v29 = vstv %s2346_s24  ;;  %v441_v54 = vstv %s2300_s4  ;;  %s2307_s24 = sld [smem:[#allocation11 + $0x5b]] }
  0x66   :  { %v2345_v28 = vrot.slane %v946_v26, 10  ;;  %v969_v33 = vmul.f32 %v967_v29, %v2675_v24  ;;  %v480_v63 = vstv %s2303_s7  ;;  %v725_v26 = vstv %s2325_s14  ;;  %s2956_s4 = sld [smem:[#allocation11 + $0x3c]] }
  0x67   :  { %s2978_s7 = sld [smem:[#allocation11 + $0x42]] }
  0x68   :  { %s3015_s14 = sld [smem:[#allocation11 + $0x43]] }
  0x69   :  { %407 = vrot.lane.b32.xlu1 %v402_v31, %s2605_s10  ;;  %325 = vrot.lane.b32.xlu0 %v320_v32, %s2604_s9  ;;  %v968_v31 = vmul.f32 %v967_v29, %v2677_v25  ;;  %v985_v32 = vmul.f32 %v984_v30, %v2677_v25 }
  0x6d   :  { %610 = vrot.lane.b32.xlu1 %v606_v34, %s2604_s9  ;;  %364 = vrot.lane.b32.xlu0 %v360_v35, %s2603_s8  ;;  %v2348_v34 = vrot.slane %v985_v32, 10 }
  0x71   :  { %650 = vrot.lane.b32.xlu1 %v646_v38, %s2603_s8  ;;  %405 = vrot.lane.b32.xlu0 %v401_v39, %s2605_s10 }
  0x75   :  { %345 = vrot.lane.b32.xlu1 %v2290_v41, %s2604_s9  ;;  %612 = vrot.lane.b32.xlu0 %v607_v42, %s2604_s9 }
  0x79   :  { %347 = vrot.lane.b32.xlu1 %v2291_v45, %s2604_s9  ;;  %652 = vrot.lane.b32.xlu0 %v647_v46, %s2603_s8 }
  0x7d   :  { %388 = vrot.lane.b32.xlu1 %v2295_v50, %s2603_s8  ;;  %386 = vrot.lane.b32.xlu0 %v2294_v51, %s2603_s8 }
  0x81   :  { %429 = vrot.lane.b32.xlu1 %v2299_v55, %s2605_s10  ;;  %427 = vrot.lane.b32.xlu0 %v2298_v56, %s2605_s10 }
  0x85   :  { %631 = vrot.lane.b32.xlu1 %v2315_v61, %s2604_s9  ;;  %633 = vrot.lane.b32.xlu0 %v2316_v62, %s2604_s9 }
  0x89   :  { %671 = vrot.lane.b32.xlu1 %v2319_v1, %s2603_s8  ;;  %673 = vrot.lane.b32.xlu0 %v2320_v3, %s2603_s8 }
  0x8d   :  { %690 = vrot.lane.b32.xlu1 %v686_v6, %s2605_s10  ;;  %692 = vrot.lane.b32.xlu0 %v687_v7, %s2605_s10  ;;  %v516_v6 = vstv %s2306_s12  ;;  %s2995_s12 = sld [smem:[#allocation11 + $0x3d]] }
  0x91   :  { %711 = vrot.lane.b32.xlu1 %v2323_v10, %s2605_s10  ;;  %713 = vrot.lane.b32.xlu0 %v2324_v11, %s2605_s10 }
  0x95   :  { %726 = vrot.lane.b32.xlu1 %v2677_v25, %s2606_s19  ;;  %728 = vrot.lane.b32.xlu0 %v2675_v24, %s2606_s19  ;;  %s2882_s19 = sld [smem:[#allocation11 + $0x2b]] }
  0x99   :  { %763 = vrot.lane.b32.xlu1 %v2677_v25, %s2607_s20  ;;  %765 = vrot.lane.b32.xlu0 %v2675_v24, %s2607_s20  ;;  %s2884_s20 = sld [smem:[#allocation11 + $0x5c]] }
  0x9d   :  { %799 = vrot.lane.b32.xlu1 %v2677_v25, %s2608_s23  ;;  %801 = vrot.lane.b32.xlu0 %v2675_v24, %s2608_s23 }
  0xa1   :  { %892 = vrot.lane.b32.xlu0 %v888_v13, %s2604_s9  ;;  %894 = vrot.lane.b32.xlu1 %v889_v15, %s2604_s9 }
  0xa5   :  { %913 = vrot.lane.b32.xlu0 %v2340_v17, %s2604_s9  ;;  %915 = vrot.lane.b32.xlu1 %v2341_v19, %s2604_s9 }
  0xa9   :  { %932 = vrot.lane.b32.xlu0 %v928_v21, %s2603_s8  ;;  %934 = vrot.lane.b32.xlu1 %v929_v23, %s2603_s8 }
  0xad   :  { %953 = vrot.lane.b32.xlu0 %v2344_v27, %s2603_s8  ;;  %955 = vrot.lane.b32.xlu1 %v2345_v28, %s2603_s8  ;;  %v747_v27 = vstv %s2326_s15  ;;  %s3025_s15 = sld [smem:[#allocation11 + $0x31]] }
  0xb1   :  { %972 = vrot.lane.b32.xlu0 %v968_v31, %s2605_s10  ;;  %974 = vrot.lane.b32.xlu1 %v969_v33, %s2605_s10 }
  0xb5   :  { %993 = vrot.lane.b32.xlu0 %v2348_v34, %s2605_s10  ;;  %1008 = vrot.lane.b32.xlu1 %v2677_v25, %s2609_s26 }
  0xb9   :  { %1010 = vrot.lane.b32.xlu0 %v2675_v24, %s2609_s26  ;;  %1517 = vrot.lane.b32.xlu1 %v2677_v25, %s2610_s0  ;;  %s2621_s26 = smov 94  }
  0xbd   :  { %1519 = vrot.lane.b32.xlu0 %v2675_v24, %s2610_s0  ;;  %1280 = vrot.lane.b32.xlu1 %v2677_v25, %s2604_s9  ;;  %s2622_s0 = smov 79  }
  0xc1   :  { %1282 = vrot.lane.b32.xlu0 %v2675_v24, %s2604_s9  ;;  %1793 = vrot.lane.b32.xlu1 %v2677_v25, %s2611_s2 }
  0xc5   :  { %1795 = vrot.lane.b32.xlu0 %v2675_v24, %s2611_s2  ;;  %1045 = vrot.lane.b32.xlu1 %v2677_v25, %s2612_s1  ;;  %s2363_s2 = sld [smem:[#allocation11 + $0xa]] }
  0xc9   :  { %1047 = vrot.lane.b32.xlu0 %v2675_v24, %s2612_s1  ;;  %1553 = vrot.lane.b32.xlu1 %v2677_v25, %s2613_s27  ;;  %s2364_s1 = sld [smem:[#allocation11 + $0x3b]] }
  0xcb   :  { %v447_v35 = vpop.permute.xlu1 %446  ;;  %v445_v36 = vpop.permute.xlu0 %444 }
  0xcc   :  { %v449_v45 = vrot.slane %v447_v35, 4  ;;  %v448_v46 = vrot.slane %v445_v36, 4 }
  0xcd   :  { %1555 = vrot.lane.b32.xlu0 %v2675_v24, %s2613_s27  ;;  %2069 = vrot.lane.b32.xlu1 %v2677_v25, %s2614_s28  ;;  %s2623_s27 = smov 93  }
  0xce   :  { %v450_v49 = vsel %vm70_vm0, %v448_v46, %v449_v45 }
  0xcf   :  { %v484_v37 = vpop.permute.xlu1 %483  ;;  %v482_v38 = vpop.permute.xlu0 %481  ;;  %v2826_v55 = vsel %vm451_vm5, %v450_v49, %v447_v35  ;;  %vm459_vm5 = vcmask 629760  }
  0xd0   :  { %v486_v50 = vrot.slane %v484_v37, 4  ;;  %v485_v51 = vrot.slane %v482_v38, 4  ;;  %v454_v62 = vmul.f32 %v2826_v55, %v441_v54  ;;  %v783_v38 = vstv %s2878_s17  ;;  %s3035_s17 = sld [smem:[#allocation11 + $0x13]] }
  0xd1   :  { %2071 = vrot.lane.b32.xlu0 %v2675_v24, %s2614_s28  ;;  %1315 = vrot.lane.b32.xlu1 %v2677_v25, %s2603_s8  ;;  %s2943_s28 = sld [smem:[#allocation11 + $0xb]] }
  0xd2   :  { %v487_v56 = vsel %vm70_vm0, %v485_v51, %v486_v50 }
  0xd3   :  { %v520_v39 = vpop.permute.xlu1 %519  ;;  %v518_v40 = vpop.permute.xlu0 %517  ;;  %v2837_v0 = vsel %vm488_vm6, %v487_v56, %v484_v37  ;;  %v762_v37 = vstv %s2876_s16  ;;  %s3030_s16 = sld [smem:[#allocation11 + $0x32]]  ;;  %vm741_vm6 = vcmask 637952  }
  0xd4   :  { %v522_v57 = vrot.slane %v520_v39, 4  ;;  %v521_v58 = vrot.slane %v518_v40, 4  ;;  %v491_v5 = vmul.f32 %v2837_v0, %v480_v63 }
  0xd5   :  { %1317 = vrot.lane.b32.xlu0 %v2675_v24, %s2603_s8  ;;  %1829 = vrot.lane.b32.xlu1 %v2677_v25, %s2615_s29 }
  0xd6   :  { %v523_v1 = vsel %vm70_vm0, %v521_v58, %v522_v57  ;;  %v798_v57 = vstv %s2882_s19  ;;  %v819_v58 = vstv %s2884_s20  ;;  %s3041_s19 = sld [smem:[#allocation11]] }
  0xd7   :  { %v2801_v41 = vpop.permute.xlu1 %366  ;;  %v2803_v42 = vpop.permute.xlu0 %323  ;;  %v2847_v7 = vsel %vm524_vm7, %v523_v1, %v520_v39  ;;  %s3046_s20 = sld [smem:[#allocation11 + $0x1]] }
  0xd8   :  { %v527_v10 = vmul.f32 %v2847_v7, %v516_v6 }
  0xd9   :  { %1831 = vrot.lane.b32.xlu0 %v2675_v24, %s2615_s29  ;;  %1081 = vrot.lane.b32.xlu1 %v2677_v25, %s2616_s30  ;;  %s2954_s29 = sld [smem:[#allocation11 + $0x11]] }
  0xdb   :  { %v2808_v43 = vpop.permute.xlu1 %407  ;;  %v2810_v44 = vpop.permute.xlu0 %325 }
  0xdc   :  { %4056 = vst [vmem:[#allocation18_spill] sm:$0xff] %v2808_v43 }
  0xdd   :  { %1083 = vrot.lane.b32.xlu0 %v2675_v24, %s2616_s30  ;;  %1589 = vrot.lane.b32.xlu1 %v2677_v25, %s2617_s6 }
  0xdf   :  { %v2815_v47 = vpop.permute.xlu1 %610  ;;  %v2817_v48 = vpop.permute.xlu0 %364 }
  0xe1   :  { %1591 = vrot.lane.b32.xlu0 %v2675_v24, %s2617_s6  ;;  %2105 = vrot.lane.b32.xlu1 %v2677_v25, %s2618_s11  ;;  %s2972_s6 = sld [smem:[#allocation11 + $0xc]] }
  0xe3   :  { %v2822_v52 = vpop.permute.xlu1 %650  ;;  %v2824_v53 = vpop.permute.xlu0 %405 }
  0xe5   :  { %2107 = vrot.lane.b32.xlu0 %v2675_v24, %s2618_s11  ;;  %1350 = vrot.lane.b32.xlu1 %v2677_v25, %s2605_s10  ;;  %s2991_s11 = sld [smem:[#allocation11 + $0x12]] }
  0xe7   :  { %v2832_v59 = vpop.permute.xlu1 %345  ;;  %v2834_v61 = vpop.permute.xlu0 %612 }
  0xe9   :  { %456 = vrot.lane.b32.xlu0 %v454_v62, %s2619_s13  ;;  %v465_v62 = vstv %s2880_s18  ;;  %s3039_s18 = sld [smem:[#allocation11 + $0x3e]] }
  0xeb   :  { %v2841_v3 = vpop.permute.xlu1 %347  ;;  %v2843_v4 = vpop.permute.xlu0 %652 }
  0xed   :  { %493 = vrot.lane.b32.xlu0 %v491_v5, %s2619_s13 }
  0xef   :  { %v2850_v8 = vpop.permute.xlu1 %388  ;;  %v2852_v9 = vpop.permute.xlu0 %386 }
  0xf1   :  { %529 = vrot.lane.b32.xlu0 %v527_v10, %s2619_s13 }
  0xf3   :  { %v2856_v11 = vpop.permute.xlu1 %429  ;;  %v2858_v12 = vpop.permute.xlu0 %427 }
  0xf7   :  { %v2860_v2 = vpop.permute.xlu1 %631  ;;  %v2862_v13 = vpop.permute.xlu0 %633 }
  0xfb   :  { %v2864_v14 = vpop.permute.xlu1 %671  ;;  %v2866_v15 = vpop.permute.xlu0 %673 }
  0xff   :  { %v2868_v16 = vpop.permute.xlu1 %690  ;;  %v2870_v17 = vpop.permute.xlu0 %692 }
 0x103   :  { %v2872_v18 = vpop.permute.xlu1 %711  ;;  %v2874_v19 = vpop.permute.xlu0 %713 }
 0x107   :  { %v727_v20 = vpop.permute.xlu1 %726  ;;  %v729_v21 = vpop.permute.xlu0 %728 }
 0x108   :  { %v730_v22 = vrot.slane %v727_v20, 4  ;;  %v731_v23 = vrot.slane %v729_v21, 4 }
 0x10a   :  { %v732_v28 = vsel %vm70_vm0, %v730_v22, %v731_v23  ;;  %v501_v22 = vstv %s2889_s21  ;;  %s3053_s21 = sld [smem:[#allocation11 + $0x1e]] }
 0x10b   :  { %v734_v29 = vsel %vm733_vm8, %v732_v28, %v729_v21  ;;  %v764_v31 = vpop.permute.xlu1 %763  ;;  %v766_v32 = vpop.permute.xlu0 %765  ;;  %v466_v21 = vmul.f32 %v465_v62, %v2826_v55  ;;  %vm1836_vm8 = vcmask 900096  }
 0x10c   :  { %v767_v33 = vrot.slane %v764_v31, 4  ;;  %v768_v34 = vrot.slane %v766_v32, 4  ;;  %v736_v35 = vmul.f32 %v734_v29, %v725_v26  ;;  %v748_v36 = vmul.f32 %v747_v27, %v734_v29 }
 0x10d   :  { %v2302_v28 = vrot.slane %v466_v21, 10  ;;  %v502_v29 = vmul.f32 %v501_v22, %v2837_v0  ;;  %v537_v31 = vstv %s2307_s24  ;;  %s3061_s24 = sld [smem:[#allocation11 + $0x19]] }
 0x10e   :  { %v769_v39 = vsel %vm70_vm0, %v767_v33, %v768_v34  ;;  %738 = vrot.lane.b32.xlu1 %v736_v35, %s2620_s22  ;;  %v2327_v40 = vrot.slane %v748_v36, 10  ;;  %v538_v33 = vmul.f32 %v537_v31, %v2847_v7 }
 0x10f   :  { %v771_v45 = vsel %vm770_vm9, %v769_v39, %v766_v32  ;;  %v800_v46 = vpop.permute.xlu1 %799  ;;  %v802_v49 = vpop.permute.xlu0 %801  ;;  %v2305_v55 = vrot.slane %v502_v29, 10  ;;  %vm1088_vm9 = vcmask 662528  }
 0x110   :  { %v803_v50 = vrot.slane %v800_v46, 4  ;;  %v804_v51 = vrot.slane %v802_v49, 4  ;;  %752 = vrot.lane.b32.xlu0 %v2327_v40, %s2620_s22  ;;  %v773_v54 = vmul.f32 %v771_v45, %v762_v37  ;;  %v784_v56 = vmul.f32 %v783_v38, %v771_v45 }
 0x111   :  { %v2308_v0 = vrot.slane %v538_v33, 10  ;;  %v1169_v40 = vstv %s2363_s2  ;;  %v1186_v45 = vstv %s2364_s1  ;;  %v1712_v33 = vstv %s2972_s6  ;;  %s3072_s2 = sld [smem:[#allocation11 + $0x44]] }
 0x112   :  { %v805_v63 = vsel %vm70_vm0, %v803_v50, %v804_v51  ;;  %775 = vrot.lane.b32.xlu1 %v773_v54, %s2620_s22  ;;  %v2330_v1 = vrot.slane %v784_v56, 10  ;;  %v1171_v50 = vmul.f32 %v1169_v40, %v2675_v24  ;;  %v1188_v51 = vmul.f32 %v1186_v45, %v2675_v24  ;;  %s3085_s1 = sld [smem:[#allocation11 + $0x1f]] }
 0x113   :  { %v807_v5 = vsel %vm806_vm10, %v805_v63, %v802_v49  ;;  %v2900_v6 = vpop.permute.xlu0 %892  ;;  %v2906_v26 = vpop.permute.xlu1 %894  ;;  %v1170_v62 = vmul.f32 %v1169_v40, %v2677_v25  ;;  %v1187_v63 = vmul.f32 %v1186_v45, %v2677_v25  ;;  %s3117_s6 = sld [smem:[#allocation11 + $0x49]] }
 0x114   :  { %4057 = vst [vmem:[#allocation19_spill] sm:$0xff] %v2900_v6  ;;  %788 = vrot.lane.b32.xlu0 %v2330_v1, %s2620_s22  ;;  %v809_v10 = vmul.f32 %v807_v5, %v798_v57  ;;  %v820_v20 = vmul.f32 %v819_v58, %v807_v5  ;;  %4058 = vst [vmem:[#allocation20_spill] sm:$0xff] %v2906_v26  ;;  %v2366_v56 = vrot.slane %v1188_v51, 10  ;;  %v1436_v57 = vstv %s2943_s28  ;;  %s3103_s28 = sld [smem:[#allocation11 + $0x1a]] }
 0x115   :  { %v1438_v1 = vmul.f32 %v1436_v57, %v2675_v24  ;;  %v2365_v21 = vrot.slane %v1187_v63, 10  ;;  %v1437_v29 = vmul.f32 %v1436_v57, %v2677_v25  ;;  %v1714_v51 = vmul.f32 %v1712_v33, %v2675_v24 }
 0x116   :  { %811 = vrot.lane.b32.xlu1 %v809_v10, %s2620_s22  ;;  %v2333_v23 = vrot.slane %v820_v20, 10  ;;  %v1209_v10 = vstv %s2954_s29  ;;  %v1453_v20 = vstv %s2956_s4  ;;  %s3108_s29 = sld [smem:[#allocation11 + $0x4b]] }
 0x117   :  { %v2908_v27 = vpop.permute.xlu0 %913  ;;  %v2918_v34 = vpop.permute.xlu1 %915  ;;  %v1210_v45 = vmul.f32 %v1209_v10, %v2677_v25  ;;  %s3112_s4 = sld [smem:[#allocation11 + $0x25]] }
 0x118   :  { %4059 = vst [vmem:[#allocation21_spill] sm:$0xff] %v2908_v27  ;;  %824 = vrot.lane.b32.xlu0 %v2333_v23, %s2620_s22  ;;  %4061 = vst [vmem:[#allocation23_spill] sm:$0xff] %v2918_v34  ;;  %v1211_v23 = vmul.f32 %v1209_v10, %v2675_v24  ;;  %v1476_v10 = vstv %s2991_s11  ;;  %v1250_v34 = vrot.slane %v2677_v25, 4  ;;  %s3138_s11 = sld [smem:[#allocation11 + $0x45]] }
 0x11a   :  { %470 = vrot.lane.b32.xlu1 %v2302_v28, %s2619_s13  ;;  %v1455_v28 = vmul.f32 %v1453_v20, %v2675_v24 }
 0x11b   :  { %v2913_v32 = vpop.permute.xlu0 %932  ;;  %v2925_v36 = vpop.permute.xlu1 %934 }
 0x11c   :  { %4060 = vst [vmem:[#allocation22_spill] sm:$0xff] %v2913_v32  ;;  %1352 = vrot.lane.b32.xlu0 %v2675_v24, %s2605_s10  ;;  %4063 = vst [vmem:[#allocation25_spill] sm:$0xff] %v2925_v36  ;;  %v4072_v36 = vstv %s3039_s18 }
 0x11e   :  { %506 = vrot.lane.b32.xlu1 %v2305_v55, %s2619_s13  ;;  %v2390_v55 = vrot.slane %v1455_v28, 10 }
 0x11f   :  { %v2921_v35 = vpop.permute.xlu0 %953  ;;  %v2935_v38 = vpop.permute.xlu1 %955 }
 0x120   :  { %4062 = vst [vmem:[#allocation24_spill] sm:$0xff] %v2921_v35  ;;  %1867 = vrot.lane.b32.xlu0 %v2675_v24, %s2621_s26  ;;  %4066 = vst [vmem:[#allocation28_spill] sm:$0xff] %v2935_v38 }
 0x122   :  { %542 = vrot.lane.b32.xlu1 %v2308_v0, %s2619_s13  ;;  %v1226_v0 = vstv %s2978_s7  ;;  %s3123_s7 = sld [smem:[#allocation11 + $0x14]] }
 0x123   :  { %v2927_v37 = vpop.permute.xlu0 %972  ;;  %v2946_v46 = vpop.permute.xlu1 %974 }
 0x124   :  { %4064 = vst [vmem:[#allocation26_spill] sm:$0xff] %v2927_v37  ;;  %1627 = vrot.lane.b32.xlu0 %v2675_v24, %s2622_s0  ;;  %4067 = vst [vmem:[#allocation29_spill] sm:$0xff] %v2946_v46  ;;  %v585_v46 = vstv %s3046_s20  ;;  %s2624_s20 = smov 51  }
 0x125   :  { %v586_v27 = vmul.f32 %v585_v46, %v2677_v25  ;;  %v587_v26 = vmul.f32 %v585_v46, %v2675_v24 }
 0x126   :  { %1865 = vrot.lane.b32.xlu1 %v2677_v25, %s2621_s26  ;;  %s3068_s26 = sld [smem:[#allocation11 + $0x18]] }
 0x127   :  { %v2932_v7 = vpop.permute.xlu0 %993  ;;  %v2960_v54 = vpop.permute.xlu1 %1008 }
 0x128   :  { %4065 = vst [vmem:[#allocation27_spill] sm:$0xff] %v2932_v7  ;;  %2143 = vrot.lane.b32.xlu0 %v2675_v24, %s2623_s27 }
 0x12a   :  { %1625 = vrot.lane.b32.xlu1 %v2677_v25, %s2622_s0 }
 0x12b   :  { %v2939_v39 = vpop.permute.xlu0 %1010  ;;  %v2974_v5 = vpop.permute.xlu1 %1517 }
 0x12c   :  { %1903 = vrot.lane.b32.xlu0 %v2675_v24, %s2620_s22 }
 0x12e   :  { %2141 = vrot.lane.b32.xlu1 %v2677_v25, %s2623_s27  ;;  %s3097_s27 = sld [smem:[#allocation11 + $0x50]] }
 0x12f   :  { %v2948_v49 = vpop.permute.xlu0 %1519  ;;  %v2988_v31 = vpop.permute.xlu1 %1280 }
 0x130   :  { %2179 = vrot.lane.b32.xlu0 %v2675_v24, %s2619_s13 }
 0x132   :  { %1901 = vrot.lane.b32.xlu1 %v2677_v25, %s2620_s22  ;;  %s3058_s22 = sld [smem:[#allocation11 + $0x4f]] }
 0x133   :  { %v2964_v58 = vpop.permute.xlu0 %1282  ;;  %v3005_v57 = vpop.permute.xlu1 %1793 }
 0x134   :  { %1176 = vrot.lane.b32.xlu0 %v1171_v50, %s2604_s9  ;;  %v1454_v50 = vmul.f32 %v1453_v20, %v2677_v25  ;;  %v1729_v20 = vstv %s2995_s12  ;;  %s3170_s12 = sld [smem:[#allocation11 + $0x20]] }
 0x136   :  { %2177 = vrot.lane.b32.xlu1 %v2677_v25, %s2619_s13  ;;  %s3011_s13 = sld [smem:[#allocation11 + $0xd]] }
 0x137   :  { %v2981_v22 = vpop.permute.xlu0 %1795  ;;  %v3020_v28 = vpop.permute.xlu1 %1045 }
 0x138   :  { %1197 = vrot.lane.b32.xlu0 %v2366_v56, %s2604_s9  ;;  %v1228_v56 = vmul.f32 %v1226_v0, %v2675_v24 }
 0x13a   :  { %1174 = vrot.lane.b32.xlu1 %v1170_v62, %s2604_s9  ;;  %v2389_v62 = vrot.slane %v1454_v50, 10 }
 0x13b   :  { %v2997_v40 = vpop.permute.xlu0 %1047 }
 0x13c   :  { %1443 = vrot.lane.b32.xlu0 %v1438_v1, %s2604_s9  ;;  %v2370_v1 = vrot.slane %v1228_v56, 10  ;;  %v1493_v56 = vstv %s3015_s14  ;;  %s3321_s14 = sld [smem:[#allocation11 + $0x26]] }
 0x13e   :  { %1195 = vrot.lane.b32.xlu1 %v2365_v21, %s2604_s9  ;;  %v1713_v21 = vmul.f32 %v1712_v33, %v2677_v25 }
 0x13f   :  { %v3008_v63 = vpop.permute.xlu0 %1555 }
 0x140   :  { %1216 = vrot.lane.b32.xlu0 %v1211_v23, %s2603_s8  ;;  %v1227_v23 = vmul.f32 %v1226_v0, %v2677_v25  ;;  %v3033_v0 = vpop.permute.xlu1 %1553 }
 0x142   :  { %1441 = vrot.lane.b32.xlu1 %v1437_v29, %s2604_s9  ;;  %v1478_v29 = vmul.f32 %v1476_v10, %v2675_v24  ;;  %v2369_v50 = vrot.slane %v1227_v23, 10 }
 0x144   :  { %1464 = vrot.lane.b32.xlu0 %v2390_v55, %s2604_s9  ;;  %v1731_v55 = vmul.f32 %v1729_v20, %v2675_v24 }
 0x146   :  { %1214 = vrot.lane.b32.xlu1 %v1210_v45, %s2603_s8  ;;  %v3027_v45 = vpop.permute.xlu0 %2071  ;;  %v2414_v33 = vrot.slane %v1731_v55, 10  ;;  %v3056_v55 = vpop.permute.xlu1 %2069 }
 0x147   :  { %4069 = vst [vmem:[#allocation31_spill] sm:$0xff] %v3056_v55 }
 0x148   :  { %1719 = vrot.lane.b32.xlu0 %v1714_v51, %s2604_s9  ;;  %v1988_v51 = vstv %s3011_s13  ;;  %s3312_s13 = sld [smem:[#allocation11 + $0x56]] }
 0x149   :  { %v1990_v23 = vmul.f32 %v1988_v51, %v2675_v24 }
 0x14a   :  { %1462 = vrot.lane.b32.xlu1 %v2389_v62, %s2604_s9  ;;  %v1477_v62 = vmul.f32 %v1476_v10, %v2677_v25  ;;  %v3095_v32 = vpop.permute.xlu1 %1315 }
 0x14b   :  { %4073 = vst [vmem:[#allocation33_spill] sm:$0xff] %v3095_v32 }
 0x14c   :  { %1237 = vrot.lane.b32.xlu0 %v2370_v1, %s2603_s8  ;;  %v1730_v1 = vmul.f32 %v1729_v20, %v2677_v25  ;;  %v303_v20 = vstv %s3025_s15  ;;  %s3391_s15 = sld [smem:[#allocation11 + $0x34]] }
 0x14d   :  { %v305_v37 = vmul.f32 %v303_v20, %v2675_v24  ;;  %v304_v60 = vmul.f32 %v303_v20, %v2677_v25  ;;  %v4071_v20 = vstv %s3035_s17 }
 0x14e   :  { %1717 = vrot.lane.b32.xlu1 %v1713_v21, %s2604_s9  ;;  %v3048_v21 = vpop.permute.xlu0 %1317  ;;  %v2413_v10 = vrot.slane %v1730_v1, 10  ;;  %v298_v1 = vstv %s3041_s19  ;;  %v1753_v35 = vmul.f32 %v4071_v20, %v2677_v25  ;;  %s3425_s19 = sld [smem:[#allocation11 + $0x21]] }
 0x14f   :  { %4068 = vst [vmem:[#allocation30_spill] sm:$0xff] %v3048_v21  ;;  %v2286_v20 = vrot.slane %v304_v60, 10  ;;  %v1769_v21 = vstv %s3072_s2  ;;  %s3451_s2 = sld [smem:[#allocation11 + $0x27]] }
 0x150   :  { %1483 = vrot.lane.b32.xlu0 %v1478_v29, %s2603_s8  ;;  %v1494_v29 = vmul.f32 %v1493_v56, %v2677_v25 }
 0x152   :  { %1235 = vrot.lane.b32.xlu1 %v2369_v50, %s2603_s8  ;;  %v986_v50 = vmul.f32 %v984_v30, %v2675_v24  ;;  %v2393_v7 = vrot.slane %v1494_v29, 10  ;;  %v3077_v38 = vpop.permute.xlu0 %1831  ;;  %v1989_v30 = vmul.f32 %v1988_v51, %v2677_v25  ;;  %v300_v51 = vmul.f32 %v298_v1, %v2675_v24 }
 0x153   :  { %4070 = vst [vmem:[#allocation32_spill] sm:$0xff] %v3077_v38 }
 0x154   :  { %1740 = vrot.lane.b32.xlu0 %v2414_v33, %s2604_s9  ;;  %v590_v33 = vstv %s3030_s16  ;;  %s3408_s16 = sld [smem:[#allocation11 + $0x3]] }
 0x155   :  { %v592_v29 = vmul.f32 %v590_v33, %v2675_v24 }
 0x156   :  { %1481 = vrot.lane.b32.xlu1 %v1477_v62, %s2603_s8  ;;  %v2349_v62 = vrot.slane %v986_v50, 10  ;;  %v1251_v50 = vrot.slane %v2675_v24, 4 }
 0x157   :  { %v2312_v38 = vrot.slane %v592_v29, 10 }
 0x158   :  { %1995 = vrot.lane.b32.xlu0 %v1990_v23, %s2604_s9  ;;  %v591_v23 = vmul.f32 %v590_v33, %v2677_v25  ;;  %v299_v33 = vmul.f32 %v298_v1, %v2677_v25  ;;  %v328_v1 = vrot.slane %v2810_v44, 4 }
 0x15a   :  { %1738 = vrot.lane.b32.xlu1 %v2413_v10, %s2604_s9  ;;  %v2006_v10 = vmul.f32 %v4072_v36, %v2677_v25  ;;  %v1495_v36 = vmul.f32 %v1493_v56, %v2675_v24  ;;  %v2311_v6 = vrot.slane %v591_v23, 10  ;;  %v327_v25 = vrot.slane %v2803_v42, 4  ;;  %v3126_v23 = vpop.permute.xlu1 %1829 }
 0x15b   :  { %v1249_v56 = vstv %s3068_s26  ;;  %4075 = vst [vmem:[#allocation35_spill] sm:$0xff] %v3126_v23  ;;  %v314_v29 = vadd.f32 %v2286_v20, %v299_v33  ;;  %v369_v33 = vrot.slane %v2801_v41, 4  ;;  %v410_v20 = vrot.slane %v2808_v43, 4  ;;  %s3445_s26 = sld [smem:[#allocation11 + $0x5d]] }
 0x15c   :  { %1502 = vrot.lane.b32.xlu0 %v2393_v7, %s2603_s8  ;;  %v2287_v7 = vrot.slane %v305_v37, 10  ;;  %v3114_v37 = vpop.permute.xlu0 %1083  ;;  %v2437_v60 = vrot.slane %v2006_v10, 10  ;;  %v329_v10 = vsel %vm70_vm0, %v327_v25, %v328_v1 }
 0x15d   :  { %4074 = vst [vmem:[#allocation34_spill] sm:$0xff] %v3114_v37  ;;  %v614_v37 = vrot.slane %v2815_v47, 4 }
 0x15e   :  { %1993 = vrot.lane.b32.xlu1 %v1989_v30, %s2604_s9  ;;  %v1252_v30 = vsel %vm70_vm0, %v1250_v34, %v1251_v50  ;;  %v315_v46 = vadd.f32 %v2287_v7, %v300_v51  ;;  %v3129_v34 = vadd.f32 %v2311_v6, %v586_v27  ;;  %v3131_v50 = vadd.f32 %v2312_v38, %v587_v26 }
 0x15f   :  { %v1254_v51 = vmul.f32 %v1252_v30, %v1249_v56  ;;  %v331_v26 = vsel %vm330_vm11, %v2803_v42, %v329_v10  ;;  %v368_v38 = vrot.slane %v2817_v48, 4  ;;  %v4078_v56 = vstv %s3039_s18  ;;  %s3418_s18 = sld [smem:[#allocation11 + $0x57]] }
 0x160   :  { %1757 = vrot.lane.b32.xlu0 %v1753_v35, %s2603_s8  ;;  %v2394_v35 = vrot.slane %v1495_v36, 10  ;;  %v3146_v1 = vpop.permute.xlu0 %1591  ;;  %v2007_v27 = vmul.f32 %v4078_v56, %v2675_v24  ;;  %v335_v42 = vadd.f32 %v2810_v44, %v315_v46  ;;  %v615_v7 = vrot.slane %v2834_v61, 4 }
 0x161   :  { %4076 = vst [vmem:[#allocation36_spill] sm:$0xff] %v3146_v1  ;;  %v1264_v1 = vstv %s3117_s6  ;;  %v3166_v23 = vadd.f32 %v331_v26, %v314_v29  ;;  %v370_v44 = vsel %vm70_vm0, %v368_v38, %v369_v33  ;;  %v409_v46 = vrot.slane %v2824_v53, 4  ;;  %s3494_s6 = sld [smem:[#allocation11 + $0x5e]] }
 0x162   :  { %995 = vrot.lane.b32.xlu1 %v2349_v62, %s2605_s10  ;;  %v1771_v62 = vmul.f32 %v1769_v21, %v2675_v24  ;;  %v635_v29 = vrot.slane %v2860_v2, 4  ;;  %v636_v26 = vrot.slane %v2862_v13, 4  ;;  %v1265_v6 = vmul.f32 %v1264_v1, %v1252_v30 }
 0x163   :  { %v616_v56 = vsel %vm70_vm0, %v614_v37, %v615_v7  ;;  %v1013_v33 = vrot.slane %v2939_v39, 4  ;;  %v1012_v38 = vrot.slane %v2960_v54, 4  ;;  %v356_v43 = vadd.f32 %v2841_v3, %v335_v42 }
 0x164   :  { %2014 = vrot.lane.b32.xlu0 %v2437_v60, %s2604_s9  ;;  %v4077_v60 = vstv %s3035_s17  ;;  %v2418_v36 = vrot.slane %v1771_v62, 10  ;;  %v3175_v62 = vld [vmem:[#allocation4] sm:$0xff]  ;;  %v655_v30 = vrot.slane %v2843_v4, 4  ;;  %v2045_v37 = vstv %s3138_s11  ;;  %s3415_s17 = sld [smem:[#allocation11 + $0x4c]] }
 0x165   :  { %v1754_v25 = vmul.f32 %v4077_v60, %v2675_v24  ;;  %v2028_v24 = vstv %s3123_s7  ;;  %v1770_v10 = vmul.f32 %v3175_v62, %v1769_v21  ;;  %v350_v60 = vrot.slane %v2841_v3, 4  ;;  %s3507_s7 = sld [smem:[#allocation11 + $0x28]] }
 0x166   :  { %1504 = vrot.lane.b32.xlu1 %v2394_v35, %s2603_s8  ;;  %v3161_v35 = vpop.permute.xlu1 %1081  ;;  %v3196_v7 = vsel %vm371_vm12, %v2817_v48, %v370_v44  ;;  %v654_v54 = vrot.slane %v2822_v52, 4  ;;  %v617_v3 = vsel %vm330_vm11, %v2815_v47, %v616_v56  ;;  %v637_v32 = vsel %vm70_vm0, %v635_v29, %v636_v26  ;;  %s3514_s11 = sld [smem:[#allocation11 + $0x59]] }
 0x167   :  { %4079 = vst [vmem:[#allocation37_spill] sm:$0xff] %v3161_v35  ;;  %v349_v35 = vrot.slane %v2832_v59, 4  ;;  %v2417_v1 = vrot.slane %v1770_v10, 10  ;;  %v2373_v55 = vrot.slane %v1265_v6, 10  ;;  %v1522_v48 = vrot.slane %v2948_v49, 4 }
 0x168   :  { %1256 = vrot.lane.b32.xlu0 %v1254_v51, %s2605_s10  ;;  %v2438_v51 = vrot.slane %v2007_v27, 10  ;;  %v3187_v27 = vld [vmem:[#allocation4 + $0x8] sm:$0xff]  ;;  %v1014_v44 = vsel %vm70_vm0, %v1012_v38, %v1013_v33  ;;  %v2046_v10 = vmul.f32 %v3175_v62, %v2045_v37  ;;  %v656_v47 = vsel %vm70_vm0, %v654_v54, %v655_v30 }
 0x169   :  { %v2030_v21 = vmul.f32 %v3187_v27, %v2028_v24  ;;  %v351_v42 = vsel %vm70_vm0, %v349_v35, %v350_v60  ;;  %v376_v35 = vadd.f32 %v2801_v41, %v356_v43  ;;  %v1552_v60 = vstv %s3170_s12  ;;  %s3522_s12 = sld [smem:[#allocation11 + $0x36]] }
 0x16a   :  { %1759 = vrot.lane.b32.xlu1 %v1754_v25, %s2603_s8  ;;  %v3184_v25 = vpop.permute.xlu0 %2107  ;;  %v638_v6 = vsel %vm330_vm11, %v2860_v2, %v637_v32  ;;  %v675_v56 = vrot.slane %v2864_v14, 4  ;;  %v2029_v29 = vmul.f32 %v3175_v62, %v2028_v24  ;;  %v621_v26 = vadd.f32 %v2834_v61, %v3131_v50 }
 0x16b   :  { %4080 = vst [vmem:[#allocation38_spill] sm:$0xff] %v3184_v25  ;;  %v3201_v25 = vpop.permute.xlu1 %1589  ;;  %v352_v41 = vsel %vm330_vm11, %v2832_v59, %v351_v42  ;;  %v1016_v43 = vsel %vm1015_vm14, %v1014_v44, %v2939_v39  ;;  %v391_v2 = vrot.slane %v2850_v8, 4  ;;  %v390_v32 = vrot.slane %v2852_v9, 4 }
 0x16c   :  { %1780 = vrot.lane.b32.xlu0 %v2418_v36, %s2603_s8  ;;  %v411_v36 = vsel %vm70_vm0, %v409_v46, %v410_v20  ;;  %v1521_v20 = vrot.slane %v2974_v5, 4  ;;  %v676_v5 = vrot.slane %v2866_v15, 4  ;;  %v657_v61 = vsel %vm371_vm12, %v2822_v52, %v656_v47 }
 0x16d   :  { %v3214_v46 = vsel %vm412_vm13, %v2824_v53, %v411_v36  ;;  %v620_v53 = vadd.f32 %v617_v3, %v3129_v34  ;;  %v2441_v34 = vrot.slane %v2046_v10, 10  ;;  %v3243_v59 = vadd.f32 %v2850_v8, %v376_v35 }
 0x16e   :  { %2016 = vrot.lane.b32.xlu1 %v2438_v51, %s2604_s9  ;;  %v3223_v51 = vpop.permute.xlu0 %456  ;;  %v1523_v33 = vsel %vm70_vm0, %v1521_v20, %v1522_v48  ;;  %v642_v50 = vadd.f32 %v2862_v13, %v621_v26  ;;  %v677_v38 = vsel %vm70_vm0, %v675_v56, %v676_v5  ;;  %v4081_v30 = vstv %s3058_s22  ;;  %s3291_s9 = sld [smem:[#allocation11 + $0x1b]] }
 0x16f   :  { %v3238_v24 = vpop.permute.xlu1 %2105  ;;  %v641_v39 = vadd.f32 %v638_v6, %v620_v53  ;;  %v1030_v54 = vmul.f32 %v4081_v30, %v1016_v43  ;;  %v355_v36 = vadd.f32 %v352_v41, %v3166_v23  ;;  %v1285_v52 = vrot.slane %v2964_v58, 4  ;;  %s3435_s22 = sld [smem:[#allocation11 + $0x2c]] }
 0x170   :  { %2035 = vrot.lane.b32.xlu0 %v2030_v21, %s2603_s8  ;;  %v694_v21 = vrot.slane %v2868_v16, 4  ;;  %v1284_v8 = vrot.slane %v2988_v31, 4  ;;  %v392_v13 = vsel %vm70_vm0, %v390_v32, %v391_v2  ;;  %v1050_v3 = vrot.slane %v2997_v40, 4 }
 0x171   :  { %v1049_v42 = vrot.slane %v3020_v28, 4  ;;  %v4082_v44 = vstv %s3053_s21  ;;  %v661_v31 = vadd.f32 %v2843_v4, %v642_v50  ;;  %v660_v20 = vadd.f32 %v657_v61, %v641_v39  ;;  %s3430_s21 = sld [smem:[#allocation11 + $0x52]] }
 0x172   :  { %1778 = vrot.lane.b32.xlu1 %v2417_v1, %s2603_s8  ;;  %v1525_v1 = vsel %vm1524_vm15, %v1523_v33, %v2948_v49  ;;  %v3260_v48 = vpop.permute.xlu0 %493  ;;  %v1018_v23 = vmul.f32 %v1016_v43, %v4082_v44  ;;  %v678_v49 = vsel %vm371_vm12, %v2864_v14, %v677_v38  ;;  %v2047_v10 = vmul.f32 %v3187_v27, %v2045_v37 }
 0x173   :  { %v715_v28 = vrot.slane %v2872_v18, 4  ;;  %v3272_v35 = vpop.permute.xlu1 %1350  ;;  %v2352_v6 = vrot.slane %v1030_v54, 10  ;;  %v4083_v56 = vstv %s3081_s25  ;;  %v1286_v4 = vsel %vm70_vm0, %v1284_v8, %v1285_v52  ;;  %s2625_s25 = smov 50  }
 0x174   :  { %1269 = vrot.lane.b32.xlu0 %v2373_v55, %s2605_s10  ;;  %v695_v55 = vrot.slane %v2870_v17, 4  ;;  %v1538_v5 = vmul.f32 %v4083_v56, %v1525_v1  ;;  %v1797_v14 = vrot.slane %v3005_v57, 4  ;;  %v4084_v53 = vstv %s3061_s24  ;;  %s3440_s24 = sld [smem:[#allocation11 + $0x35]] }
 0x175   :  { %v1527_v26 = vmul.f32 %v1525_v1, %v4084_v53  ;;  %v1798_v37 = vrot.slane %v2981_v22, 4  ;;  %v1558_v41 = vrot.slane %v3008_v63, 4  ;;  %v1051_v43 = vsel %vm70_vm0, %v1049_v42, %v1050_v3 }
 0x176   :  { %2033 = vrot.lane.b32.xlu1 %v2029_v29, %s2603_s8  ;;  %v696_v47 = vsel %vm70_vm0, %v694_v21, %v695_v55  ;;  %v716_v29 = vrot.slane %v2874_v19, 4  ;;  %v1557_v2 = vrot.slane %v3033_v0, 4  ;;  %v375_v32 = vadd.f32 %v3196_v7, %v355_v36  ;;  %v3294_v39 = vpop.permute.xlu0 %529  ;;  %v4085_v36 = vld [vmem:[#allocation31_spill] sm:$0xff] }
 0x177   :  { %v393_v33 = vsel %vm371_vm12, %v2852_v9, %v392_v13  ;;  %v432_v57 = vrot.slane %v2856_v11, 4  ;;  %v682_v61 = vadd.f32 %v2866_v15, %v661_v31  ;;  %v681_v0 = vadd.f32 %v678_v49, %v660_v20  ;;  %v4087_v31 = vld [vmem:[#allocation33_spill] sm:$0xff] }
 0x178   :  { %2054 = vrot.lane.b32.xlu0 %v2441_v34, %s2603_s8  ;;  %v431_v34 = vrot.slane %v2858_v12, 4  ;;  %v2397_v50 = vrot.slane %v1538_v5, 10  ;;  %v2442_v38 = vrot.slane %v2047_v10, 10  ;;  %v717_v7 = vsel %vm70_vm0, %v715_v28, %v716_v29 }
 0x179   :  { %v697_v9 = vsel %vm412_vm13, %v2868_v16, %v696_v47  ;;  %v3302_v21 = vsel %vm1052_vm1, %v1051_v43, %v2997_v40  ;;  %v1287_v55 = vsel %vm330_vm11, %v1286_v4, %v2964_v58  ;;  %v2074_v15 = vrot.slane %v3027_v45, 4  ;;  %v4089_v47 = vld [vmem:[#allocation30_spill] sm:$0xff] }
 0x17a   :  { %1020 = vrot.lane.b32.xlu1 %v1018_v23, %s2622_s0  ;;  %v1799_v30 = vsel %vm70_vm0, %v1797_v14, %v1798_v37  ;;  %v1559_v54 = vsel %vm70_vm0, %v1557_v2, %v1558_v41  ;;  %v2073_v52 = vrot.slane %v4085_v36, 4  ;;  %v396_v16 = vadd.f32 %v393_v33, %v375_v32  ;;  %v4090_v4 = vld [vmem:[#allocation18_spill] sm:$0xff] }
 0x17b   :  { %v433_v40 = vsel %vm70_vm0, %v431_v34, %v432_v57  ;;  %v701_v58 = vadd.f32 %v2870_v17, %v682_v61  ;;  %v700_v13 = vadd.f32 %v697_v9, %v681_v0  ;;  %v718_v3 = vsel %vm412_vm13, %v2872_v18, %v717_v7 }
 0x17c   :  { %1034 = vrot.lane.b32.xlu0 %v2352_v6, %s2622_s0  ;;  %v4086_v44 = vstv %s3112_s4  ;;  %v1319_v49 = vrot.slane %v4087_v31, 4  ;;  %v4088_v20 = vstv %s3085_s1  ;;  %v3328_v17 = vsel %vm1560_vm2, %v1559_v54, %v3008_v63  ;;  %s3455_s1 = sld [smem:[#allocation11 + $0x58]] }
 0x17d   :  { %v1055_v23 = vmul.f32 %v3302_v21, %v4086_v44  ;;  %v1289_v10 = vmul.f32 %v1287_v55, %v4088_v20  ;;  %v1801_v18 = vsel %vm1800_vm3, %v1799_v30, %v2981_v22  ;;  %v1320_v28 = vrot.slane %v4089_v47, 4  ;;  %s3480_s4 = sld [smem:[#allocation11 + $0x2d]] }
 0x17e   :  { %1529 = vrot.lane.b32.xlu1 %v1527_v26, %s2616_s30  ;;  %v2075_v6 = vsel %vm70_vm0, %v2073_v52, %v2074_v15  ;;  %v417_v63 = vadd.f32 %v4090_v4, %v3243_v59  ;;  %v416_v14 = vadd.f32 %v3214_v46, %v396_v16  ;;  %v721_v53 = vadd.f32 %v718_v3, %v700_v13 }
 0x17f   :  { %v2068_v26 = vstv %s3291_s9  ;;  %v434_v22 = vsel %vm412_vm13, %v2858_v12, %v433_v40  ;;  %v722_v37 = vadd.f32 %v2874_v19, %v701_v58  ;;  %v1563_v43 = vmul.f32 %v3328_v17, %v1552_v60  ;;  %s3541_s9 = sld [smem:[#allocation11 + $0x2e]] }
 0x180   :  { %v739_v8 = vpop.permute.xlu1 %738  ;;  %1542 = vrot.lane.b32.xlu0 %v2397_v50, %s2616_s30  ;;  %v4091_v2 = vstv %s3097_s27  ;;  %v458_v46 = vrot.slane %v3223_v51, 4  ;;  %v4092_v33 = vstv %s3103_s28  ;;  %v3358_v19 = vsel %vm2076_vm4, %v2075_v6, %v3027_v45  ;;  %s3460_s27 = sld [smem:[#allocation11 + $0x4]] }
 0x181   :  { %v740_v1 = vrot.slane %v739_v8, 4  ;;  %v1300_v32 = vmul.f32 %v4091_v2, %v1287_v55  ;;  %v1803_v12 = vmul.f32 %v1801_v18, %v4092_v33  ;;  %v1321_v57 = vsel %vm70_vm0, %v1319_v49, %v1320_v28  ;;  %s3469_s28 = sld [smem:[#allocation11 + $0x22]] }
 0x182   :  { %2056 = vrot.lane.b32.xlu1 %v2442_v38, %s2603_s8  ;;  %v753_v42 = vpop.permute.xlu0 %752  ;;  %s3351_s8 = sld [smem:[#allocation11 + $0x51]]  ;;  %v1065_v50 = vstv %s3312_s13  ;;  %v438_v38 = vadd.f32 %v2856_v11, %v417_v63  ;;  %v437_v7 = vadd.f32 %v434_v22, %v416_v14  ;;  %v2079_v45 = vmul.f32 %v3358_v19, %v2068_v26 }
 0x183   :  { %v742_v56 = vsel %vm741_vm6, %v740_v1, %v739_v8  ;;  %v754_v5 = vrot.slane %v753_v42, 4  ;;  %v746_v34 = vadd.f32 %v740_v1, %v722_v37  ;;  %v1314_v55 = vstv %s3321_s14  ;;  %s3551_s13 = sld [smem:[#allocation11 + $0x5f]] }
 0x184   :  { %v776_v29 = vpop.permute.xlu1 %775  ;;  %1057 = vrot.lane.b32.xlu0 %v1055_v23, %s2622_s0  ;;  %v745_v59 = vadd.f32 %v742_v56, %v721_v53  ;;  %v460_v15 = vsel %vm459_vm5, %v458_v46, %v3223_v51  ;;  %v3376_v54 = vsel %vm371_vm12, %v1321_v57, %v4089_v47  ;;  %v4093_v36 = vstv %s3108_s29  ;;  %s3474_s29 = sld [smem:[#allocation11 + $0x53]] }
 0x185   :  { %v755_v60 = vsel %vm741_vm6, %v754_v5, %v753_v42  ;;  %v777_v61 = vrot.slane %v776_v29, 4  ;;  %v1814_v52 = vmul.f32 %v4093_v36, %v1801_v18  ;;  %v759_v11 = vadd.f32 %v754_v5, %v746_v34  ;;  %s3558_s14 = sld [smem:[#allocation11 + $0x5]] }
 0x186   :  { %1291 = vrot.lane.b32.xlu1 %v1289_v10, %s2605_s10  ;;  %v3344_v41 = vpop.permute.xlu0 %788  ;;  %v758_v30 = vadd.f32 %v755_v60, %v745_v59  ;;  %v2376_v1 = vrot.slane %v1300_v32, 10  ;;  %v464_v58 = vadd.f32 %v458_v46, %v438_v38  ;;  %v495_v51 = vrot.slane %v3260_v48, 4 }
 0x187   :  { %v778_v8 = vsel %vm741_vm6, %v777_v61, %v776_v29  ;;  %v790_v16 = vrot.slane %v3344_v41, 4  ;;  %v463_v3 = vadd.f32 %v460_v15, %v437_v7  ;;  %v1324_v44 = vmul.f32 %v3376_v54, %v1314_v55  ;;  %v4094_v55 = vld [vmem:[#allocation32_spill] sm:$0xff] }
 0x188   :  { %v3362_v0 = vpop.permute.xlu1 %811  ;;  %1565 = vrot.lane.b32.xlu0 %v1563_v43, %s2616_s30  ;;  %v1066_v23 = vmul.f32 %v1065_v50, %v3302_v21  ;;  %v1573_v31 = vstv %s3351_s8  ;;  %v781_v49 = vadd.f32 %v778_v8, %v758_v30  ;;  %v2421_v18 = vrot.slane %v1814_v52, 10  ;;  %v4095_v30 = vld [vmem:[#allocation35_spill] sm:$0xff]  ;;  %s3564_s8 = sld [smem:[#allocation11 + $0x29]] }
 0x189   :  { %v782_v47 = vadd.f32 %v777_v61, %v759_v11  ;;  %v791_v28 = vsel %vm741_vm6, %v790_v16, %v3344_v41  ;;  %v813_v6 = vrot.slane %v3362_v0, 4  ;;  %v496_v21 = vsel %vm459_vm5, %v495_v51, %v3260_v48 }
 0x18a   :  { %1805 = vrot.lane.b32.xlu1 %v1803_v12, %s2608_s23  ;;  %v3368_v9 = vpop.permute.xlu0 %824  ;;  %v531_v63 = vrot.slane %v3294_v39, 4  ;;  %v2355_v26 = vrot.slane %v1066_v23, 10  ;;  %v794_v22 = vadd.f32 %v791_v28, %v781_v49  ;;  %v1574_v43 = vmul.f32 %v1573_v31, %v3328_v17 }
 0x18b   :  { %v795_v2 = vadd.f32 %v790_v16, %v782_v47  ;;  %v814_v48 = vsel %vm741_vm6, %v813_v6, %v3362_v0  ;;  %v826_v32 = vrot.slane %v3368_v9, 4  ;;  %v1154_v0 = vstv %s3391_s15  ;;  %s3576_s15 = sld [smem:[#allocation11 + $0x5a]] }
 0x18c   :  { %v471_v40 = vpop.permute.xlu1 %470  ;;  %2081 = vrot.lane.b32.xlu0 %v2079_v45, %s2602_s5  ;;  %v532_v57 = vsel %vm459_vm5, %v531_v63, %v3294_v39  ;;  %v817_v17 = vadd.f32 %v814_v48, %v794_v22  ;;  %v2400_v45 = vrot.slane %v1574_v43, 10  ;;  %v1834_v15 = vrot.slane %v4094_v55, 4 }
 0x18d   :  { %v472_v13 = vrot.slane %v471_v40, 4  ;;  %v818_v50 = vadd.f32 %v813_v6, %v795_v2  ;;  %v827_v38 = vsel %vm741_vm6, %v826_v32, %v3368_v9  ;;  %v1833_v36 = vrot.slane %v4095_v30, 4  ;;  %v4098_v6 = vld [vmem:[#allocation36_spill] sm:$0xff] }
 0x18e   :  { %1304 = vrot.lane.b32.xlu1 %v2376_v1, %s2605_s10  ;;  %v3385_v42 = vpop.permute.xlu0 %1352  ;;  %v830_v52 = vadd.f32 %v827_v38, %v817_v17  ;;  %v1156_v8 = vmul.f32 %v3187_v27, %v1154_v0  ;;  %v1149_v1 = vstv %s3408_s16  ;;  %v2089_v28 = vstv %s3415_s17  ;;  %s3609_s16 = sld [smem:[#allocation11 + $0x60]] }
 0x18f   :  { %v473_v20 = vsel %vm459_vm5, %v472_v13, %v471_v40  ;;  %v477_v10 = vadd.f32 %v472_v13, %v464_v58  ;;  %v831_v16 = vadd.f32 %v826_v32, %v818_v50  ;;  %v4096_v58 = vld [vmem:[#allocation34_spill] sm:$0xff]  ;;  %v1835_v13 = vsel %vm70_vm0, %v1833_v36, %v1834_v15  ;;  %s3617_s17 = sld [smem:[#allocation11 + $0x30]] }
 0x190   :  { %v476_v56 = vadd.f32 %v473_v20, %v463_v3  ;;  %v507_v5 = vpop.permute.xlu1 %506  ;;  %1326 = vrot.lane.b32.xlu0 %v1324_v44, %s2605_s10  ;;  %v4097_v3 = vld [vmem:[#allocation37_spill] sm:$0xff]  ;;  %v849_v31 = vcombine.high %v830_v52, %v830_v52  ;;  %v1151_v49 = vmul.f32 %v3187_v27, %v1149_v1  ;;  %v2362_v20 = vrot.slane %v1156_v8, 10  ;;  %v4099_v32 = vld [vmem:[#allocation38_spill] sm:$0xff] }
 0x191   :  { %v500_v29 = vadd.f32 %v495_v51, %v477_v10  ;;  %v508_v4 = vrot.slane %v507_v5, 4  ;;  %v1086_v51 = vrot.slane %v4096_v58, 4  ;;  %v1085_v44 = vrot.slane %v4097_v3, 4 }
 0x192   :  { %v499_v14 = vadd.f32 %v496_v21, %v476_v56  ;;  %1818 = vrot.lane.b32.xlu1 %v2421_v18, %s2608_s23  ;;  %v3401_v53 = vpop.permute.xlu0 %1867  ;;  %v1828_v18 = vstv %s3425_s19  ;;  %v3466_v47 = vsel %vm1836_vm8, %v1835_v13, %v4094_v55  ;;  %v1594_v56 = vrot.slane %v4098_v6, 4  ;;  %s2627_s19 = smov 49  }
 0x193   :  { %v509_v37 = vsel %vm459_vm5, %v508_v4, %v507_v5  ;;  %v513_v41 = vadd.f32 %v508_v4, %v500_v29  ;;  %v1087_v5 = vsel %vm70_vm0, %v1085_v44, %v1086_v51  ;;  %v1593_v21 = vrot.slane %v3201_v25, 4 }
 0x194   :  { %v512_v46 = vadd.f32 %v509_v37, %v499_v14  ;;  %v543_v59 = vpop.permute.xlu1 %542  ;;  %v1334_v4 = vstv %s3418_s18  ;;  %v1839_v14 = vmul.f32 %v3466_v47, %v1828_v18  ;;  %v1080_v22 = vstv %s3435_s22  ;;  %s3665_s18 = sld [smem:[#allocation11 + $0x6]]  ;;  %s2630_s22 = smov 46  }
 0x195   :  { %v536_v33 = vadd.f32 %v531_v63, %v513_v41  ;;  %v544_v12 = vrot.slane %v543_v59, 4  ;;  %v1849_v63 = vstv %s3430_s21  ;;  %v1421_v37 = vstv %s3440_s24  ;;  %s2629_s21 = smov 47   ;;  %s2631_s24 = smov 45  }
 0x196   :  { %1070 = vrot.lane.b32.xlu1 %v2355_v26, %s2622_s0  ;;  %v3413_v34 = vpop.permute.xlu0 %1627  ;;  %v535_v60 = vadd.f32 %v532_v57, %v512_v46  ;;  %v1166_v26 = vadd.f32 %v2362_v20, %v1151_v49  ;;  %v1089_v43 = vsel %vm1088_vm9, %v1087_v5, %v4096_v58  ;;  %v2090_v2 = vmul.f32 %v2089_v28, %v3358_v19 }
 0x197   :  { %v549_v61 = vadd.f32 %v544_v12, %v536_v33  ;;  %v545_v7 = vsel %vm459_vm5, %v544_v12, %v543_v59  ;;  %v1101_v48 = vstv %s3445_s26  ;;  %v2110_v46 = vrot.slane %v4099_v32, 4  ;;  %s2632_s26 = smov [#allocation12]  }
 0x198   :  { %v3423_v39 = vpop.permute.xlu1 %1865  ;;  %v548_v11 = vadd.f32 %v545_v7, %v535_v60  ;;  %v1595_v59 = vsel %vm70_vm0, %v1593_v21, %v1594_v56  ;;  %v2109_v33 = vrot.slane %v3238_v24, 4  ;;  %vm1596_vm14 = vcmask 777216  }
 0x199   :  { %572 = vrot.lane.b32.xlu0 %v549_v61, %s2624_s20  ;;  %v1155_v57 = vmul.f32 %v3175_v62, %v1154_v0  ;;  %v1588_v19 = vstv %s3451_s2  ;;  %v1423_v17 = vmul.f32 %v3187_v27, %v1421_v37  ;;  %v1609_v60 = vstv %s3455_s1  ;;  %s2272_s2 = sshll.u32 %s2632_s26, 4  ;;  %s2273_s2 = int_to_ptr.vmem [resolvable:$true] %s2272_s2 }
 0x19a   :  { %1578 = vrot.lane.b32.xlu1 %v2400_v45, %s2616_s30  ;;  %v3433_v9 = vpop.permute.xlu0 %2143  ;;  %v567_v25 = vcombine.high %v548_v11, %v548_v11  ;;  %v1091_v24 = vmul.f32 %v1089_v43, %v1080_v22  ;;  %v1416_v50 = vstv %s3460_s27  ;;  %vm2112_vm15 = vcmask 891904   ;;  %p2570_p2 = scmp.lt.s32.totalorder %s2273_s2, %s2273_s2 }
 0x19b   :  { %v1355_v38 = vrot.slane %v3385_v42, 4  ;;  %v2445_v0 = vrot.slane %v2090_v2, 10  ;;  %v1597_v45 = vsel %vm1596_vm14, %v1595_v59, %v4098_v6  ;;  %v1335_v55 = vmul.f32 %v1334_v4, %v3376_v54 }
 0x19c   :  { %v3442_v40 = vpop.permute.xlu1 %1625  ;;  %v2111_v15 = vsel %vm70_vm0, %v2109_v33, %v2110_v46  ;;  %v1150_v30 = vmul.f32 %v3175_v62, %v1149_v1  ;;  %v2104_v36 = vstv %s3469_s28  ;;  %v2361_v54 = vrot.slane %v1155_v57, 10 }
 0x19d   :  { %568 = vrot.lane.b32.xlu0 %v548_v11, %s2624_s20  ;;  %v1354_v11 = vrot.slane %v3272_v35, 4  ;;  %v2386_v58 = vrot.slane %v1423_v17, 10  ;;  %v1349_v51 = vstv %s3480_s4  ;;  %v1599_v44 = vmul.f32 %v1597_v45, %v1588_v19 }
 0x19e   :  { %854 = vrot.lane.b32.xlu1 %v831_v16, %s2625_s25  ;;  %v3453_v23 = vpop.permute.xlu0 %1903  ;;  %v1418_v16 = vmul.f32 %v3187_v27, %v1416_v50  ;;  %v2379_v49 = vrot.slane %v1335_v55, 10  ;;  %v3534_v20 = vsel %vm2112_vm15, %v2111_v15, %v4099_v32  ;;  %v1850_v35 = vmul.f32 %v1849_v63, %v3466_v47 }
 0x19f   :  { %v1356_v1 = vsel %vm70_vm0, %v1354_v11, %v1355_v38  ;;  %v1369_v18 = vstv %s3494_s6  ;;  %v1870_v28 = vrot.slane %v3401_v53, 4  ;;  %v1869_v6 = vrot.slane %v3423_v39, 4 }
 0x1a0   :  { %v3462_v10 = vpop.permute.xlu1 %2141  ;;  %v1165_v5 = vadd.f32 %v2361_v54, %v1150_v30  ;;  %v1433_v21 = vadd.f32 %v2386_v58, %v1418_v16  ;;  %vm1872_vm1 = vcmask 769024   ;;  %v1357_v47 = vsel %vm412_vm13, %v1356_v1, %v3385_v42 }
 0x1a1   :  { %852 = vrot.lane.b32.xlu0 %v849_v31, %s2625_s25  ;;  %v2424_v2 = vrot.slane %v1850_v35, 10  ;;  %v1864_v32 = vstv %s3507_s7  ;;  %v1885_v46 = vstv %s3514_s11  ;;  %v1422_v42 = vmul.f32 %v3175_v62, %v1421_v37 }
 0x1a2   :  { %850 = vrot.lane.b32.xlu1 %v830_v52, %s2625_s25  ;;  %v3476_v29 = vpop.permute.xlu0 %2179  ;;  %v2125_v52 = vstv %s3474_s29  ;;  %v1697_v59 = vstv %s3522_s12  ;;  %v1359_v33 = vmul.f32 %v1357_v47, %v1349_v51  ;;  %v1610_v17 = vmul.f32 %v1609_v60, %v1597_v45  ;;  %s2565_s25 = scalar_lea.vmem %s2273_s2, 64 }
 0x1a3   :  { %v1629_v55 = vrot.slane %v3442_v40, 4  ;;  %vm2148_vm2 = vcmask 760832   ;;  %vm1023_vm3 = vcmask 646144   ;;  %v1624_v11 = vstv %s3541_s9  ;;  %p2566_p1 = scmp.ne.s32.totalorder %s2273_s2, %s2565_s25  ;;  %p2571_p3 = scmp.lt.s32.totalorder %s2565_s25, %s2565_s25 }
 0x1a4   :  { %v3485_v41 = vpop.permute.xlu1 %1901  ;;  %v1417_v40 = vmul.f32 %v3175_v62, %v1416_v50  ;;  %v2385_v54 = vrot.slane %v1422_v42, 10  ;;  %v2146_v35 = vrot.slane %v3433_v9, 4 }
 0x1a5   :  { %1841 = vrot.lane.b32.xlu0 %v1839_v14, %s2608_s23  ;;  %v1102_v14 = vmul.f32 %v1101_v48, %v1089_v43  ;;  %v1871_v43 = vsel %vm70_vm0, %v1869_v6, %v1870_v28  ;;  %v1692_v6 = vstv %s3558_s14  ;;  %p2572_p4 = por %p2571_p3, %p2570_p2 }
 0x1a6   :  { %v1177_v12 = vpop.permute.xlu0 %1176  ;;  %570 = vrot.lane.b32.xlu1 %v567_v25, %s2624_s20  ;;  %v1873_v60 = vsel %vm1872_vm1, %v1871_v43, %v3401_v53  ;;  %v1699_v53 = vmul.f32 %v3187_v27, %v1697_v59  ;;  %v2161_v43 = vstv %s3576_s15  ;;  %vm574_vm1 = vcmask 416768   ;;  %s2628_s20 = smov 48  }
 0x1a7   :  { %v1185_v61 = vadd.f32 %v1177_v12, %v1166_v26  ;;  %v1179_v13 = vrot.slane %v1177_v12, 4  ;;  %v2115_v26 = vmul.f32 %v3534_v20, %v2104_v36  ;;  %v2358_v19 = vrot.slane %v1102_v14, 10  ;;  %p2573_p5 = pnand %p2572_p4, %p2566_p1 }
 0x1a8   :  { %v3510_v7 = vpop.permute.xlu1 %2177  ;;  %v2140_v14 = vstv %s3564_s8 }
 0x1a9   :  { %1093 = vrot.lane.b32.xlu0 %v1091_v24, %s2622_s0 }
 0x1aa   :  { %v1198_v8 = vpop.permute.xlu0 %1197  ;;  %2094 = vrot.lane.b32.xlu1 %v2445_v0, %s2602_s5  ;;  %v1630_v0 = vrot.slane %v3413_v34, 4 }
 0x1ab   :  { %v1206_v3 = vadd.f32 %v1198_v8, %v1185_v61  ;;  %v1200_v39 = vrot.slane %v1198_v8, 4  ;;  %v1370_v8 = vmul.f32 %v1369_v18, %v1357_v47  ;;  %v2145_v18 = vrot.slane %v3462_v10, 4 }
 0x1ac   :  { %v1175_v31 = vpop.permute.xlu1 %1174 }
 0x1ad   :  { %v1178_v56 = vrot.slane %v1175_v31, 4  ;;  %1601 = vrot.lane.b32.xlu0 %v1599_v44, %s2616_s30  ;;  %v1631_v44 = vsel %vm70_vm0, %v1629_v55, %v1630_v0  ;;  %v2382_v47 = vrot.slane %v1370_v8, 10 }
 0x1ae   :  { %v1444_v4 = vpop.permute.xlu0 %1443  ;;  %1339 = vrot.lane.b32.xlu1 %v2379_v49, %s2605_s10  ;;  %v2126_v49 = vmul.f32 %v2125_v52, %v3534_v20  ;;  %v1632_v10 = vsel %vm1023_vm3, %v1631_v44, %v3413_v34  ;;  %v1906_v34 = vrot.slane %v3453_v23, 4 }
 0x1af   :  { %v1180_v63 = vsel %vm70_vm0, %v1178_v56, %v1179_v13  ;;  %v1446_v12 = vrot.slane %v1444_v4, 4  ;;  %v1452_v24 = vadd.f32 %v1444_v4, %v1433_v21  ;;  %v1432_v56 = vadd.f32 %v2385_v54, %v1417_v40 }
 0x1b0   :  { %v1181_v22 = vsel %vm330_vm11, %v1175_v31, %v1180_v63  ;;  %v1196_v25 = vpop.permute.xlu1 %1195  ;;  %v2403_v31 = vrot.slane %v1610_v17, 10  ;;  %v1886_v21 = vmul.f32 %v1885_v46, %v1873_v60  ;;  %v1644_v4 = vstv %s3551_s13 }
 0x1b1   :  { %v1199_v48 = vrot.slane %v1196_v25, 4  ;;  %2117 = vrot.lane.b32.xlu0 %v2115_v26, %s2602_s5  ;;  %v1184_v61 = vadd.f32 %v1181_v22, %v1165_v5  ;;  %v1694_v63 = vmul.f32 %v3187_v27, %v1692_v6  ;;  %v2410_v26 = vrot.slane %v1699_v53, 10 }
 0x1b2   :  { %v1217_v57 = vpop.permute.xlu0 %1216  ;;  %1854 = vrot.lane.b32.xlu1 %v2424_v2, %s2608_s23  ;;  %v2147_v2 = vsel %vm70_vm0, %v2145_v18, %v2146_v35  ;;  %v1634_v55 = vmul.f32 %v1632_v10, %v1624_v11  ;;  %v2176_v35 = vstv %s3617_s17 }
 0x1b3   :  { %v1201_v38 = vsel %vm70_vm0, %v1199_v48, %v1200_v39  ;;  %v3567_v37 = vadd.f32 %v1217_v57, %v1206_v3  ;;  %v1219_v58 = vrot.slane %v1217_v57, 4  ;;  %v1875_v3 = vmul.f32 %v1873_v60, %v1864_v32 }
 0x1b4   :  { %v1202_v15 = vsel %vm330_vm11, %v1196_v25, %v1201_v38  ;;  %v1442_v30 = vpop.permute.xlu1 %1441  ;;  %v2448_v25 = vrot.slane %v2126_v49, 10  ;;  %v1905_v48 = vrot.slane %v3485_v41, 4  ;;  %v1709_v38 = vadd.f32 %v2410_v26, %v1694_v63 }
 0x1b5   :  { %v1205_v45 = vadd.f32 %v1202_v15, %v1184_v61  ;;  %v1445_v36 = vrot.slane %v1442_v30, 4  ;;  %1361 = vrot.lane.b32.xlu0 %v1359_v33, %s2605_s10  ;;  %v2427_v33 = vrot.slane %v1886_v21, 10  ;;  %v2182_v15 = vrot.slane %v3476_v29, 4 }
 0x1b6   :  { %v1465_v16 = vpop.permute.xlu0 %1464  ;;  %1106 = vrot.lane.b32.xlu1 %v2358_v19, %s2622_s0  ;;  %s3603_s0 = sld [smem:[#allocation11 + $0x2f]] }
 0x1b7   :  { %v1447_v51 = vsel %vm70_vm0, %v1445_v36, %v1446_v12  ;;  %v3586_v13 = vadd.f32 %v1465_v16, %v1452_v24  ;;  %v1467_v39 = vrot.slane %v1465_v16, 4  ;;  %v1645_v12 = vmul.f32 %v1644_v4, %v1632_v10 }
 0x1b8   :  { %v1448_v50 = vsel %vm330_vm11, %v1442_v30, %v1447_v51  ;;  %v1215_v1 = vpop.permute.xlu1 %1214  ;;  %v2149_v24 = vsel %vm2148_vm2, %v2147_v2, %v3433_v9  ;;  %v2181_v30 = vrot.slane %v3510_v7, 4  ;;  %v1698_v9 = vmul.f32 %v3175_v62, %v1697_v59 }
 0x1b9   :  { %v1218_v28 = vrot.slane %v1215_v1, 4  ;;  %1877 = vrot.lane.b32.xlu0 %v1875_v3, %s2608_s23  ;;  %v1451_v57 = vadd.f32 %v1448_v50, %v1432_v56  ;;  %v2406_v11 = vrot.slane %v1645_v12, 10  ;;  %v2162_v54 = vmul.f32 %v2161_v43, %v2149_v24 }
 0x1ba   :  { %v1720_v5 = vpop.permute.xlu0 %1719  ;;  %1614 = vrot.lane.b32.xlu1 %v2403_v31, %s2616_s30  ;;  %v1920_v3 = vstv %s3609_s16  ;;  %v2183_v44 = vsel %vm70_vm0, %v2181_v30, %v2182_v15  ;;  %v2409_v31 = vrot.slane %v1698_v9, 10  ;;  %v3680_v9 = vld [vmem:[#allocation4] sm:$0xff] }
 0x1bb   :  { %v1220_v52 = vsel %vm70_vm0, %v1218_v28, %v1219_v58  ;;  %v1722_v19 = vrot.slane %v1720_v5, 4  ;;  %v2151_v58 = vmul.f32 %v2149_v24, %v2140_v14  ;;  %v1728_v50 = vadd.f32 %v1720_v5, %v1709_v38 }
 0x1bc   :  { %v1221_v20 = vsel %vm371_vm12, %v1215_v1, %v1220_v52  ;;  %v1463_v22 = vpop.permute.xlu1 %1462  ;;  %v1900_v51 = vstv %s3603_s0  ;;  %v2184_v5 = vsel %vm459_vm5, %v2183_v44, %v3476_v29 }
 0x1bd   :  { %v1224_v32 = vadd.f32 %v1221_v20, %v1205_v45  ;;  %v1466_v46 = vrot.slane %v1463_v22, 4  ;;  %1374 = vrot.lane.b32.xlu0 %v2382_v47, %s2605_s10  ;;  %s3629_s10 = sld [smem:[#allocation11 + $0x61]]  ;;  %v2186_v63 = vmul.f32 %v2184_v5, %v2176_v35 }
 0x1be   :  { %v1238_v42 = vpop.permute.xlu0 %1237  ;;  %2130 = vrot.lane.b32.xlu1 %v2448_v25, %s2602_s5 }
 0x1bf   :  { %v1468_v17 = vsel %vm70_vm0, %v1466_v46, %v1467_v39  ;;  %v3621_v61 = vadd.f32 %v1238_v42, %v3567_v37  ;;  %v1907_v37 = vsel %vm70_vm0, %v1905_v48, %v1906_v34  ;;  %v1240_v8 = vrot.slane %v1238_v42, 4 }
 0x1c0   :  { %v1469_v41 = vsel %vm330_vm11, %v1463_v22, %v1468_v17  ;;  %v1718_v0 = vpop.permute.xlu1 %1717  ;;  %v1908_v59 = vsel %vm741_vm6, %v1907_v37, %v3453_v23  ;;  %v2451_v23 = vrot.slane %v2162_v54, 10 }
 0x1c1   :  { %v1472_v60 = vadd.f32 %v1469_v41, %v1451_v57  ;;  %v1721_v45 = vrot.slane %v1718_v0, 4  ;;  %1890 = vrot.lane.b32.xlu0 %v2427_v33, %s2608_s23 }
 0x1c2   :  { %v1484_v36 = vpop.permute.xlu0 %1483  ;;  %1636 = vrot.lane.b32.xlu1 %v1634_v55, %s2616_s30  ;;  %v1968_v55 = vstv %s3665_s18 }
 0x1c3   :  { %v1723_v7 = vsel %vm70_vm0, %v1721_v45, %v1722_v19  ;;  %v3638_v40 = vadd.f32 %v1484_v36, %v3586_v13  ;;  %v1693_v13 = vmul.f32 %v3175_v62, %v1692_v6  ;;  %v1486_v18 = vrot.slane %v1484_v36, 4 }
 0x1c4   :  { %v1724_v16 = vsel %vm330_vm11, %v1718_v0, %v1723_v7  ;;  %v1236_v53 = vpop.permute.xlu1 %1235  ;;  %v1910_v62 = vmul.f32 %v1908_v59, %v1900_v51  ;;  %v1921_v6 = vmul.f32 %v1920_v3, %v1908_v59  ;;  %v2196_v39 = vstv %s3629_s10 }
 0x1c5   :  { %v1239_v1 = vrot.slane %v1236_v53, 4  ;;  %1649 = vrot.lane.b32.xlu0 %v2406_v11, %s2616_s30  ;;  %s3658_s30 = sld [smem:[#allocation11 + $0x37]]  ;;  %v1708_v10 = vadd.f32 %v2409_v31, %v1693_v13  ;;  %v2197_v2 = vmul.f32 %v2196_v39, %v2184_v5  ;;  %v1970_v45 = vmul.f32 %v3187_v27, %v1968_v55 }
 0x1c6   :  { %v1741_v49 = vpop.permute.xlu0 %1740  ;;  %2153 = vrot.lane.b32.xlu1 %v2151_v58, %s2602_s5  ;;  %v2430_v25 = vrot.slane %v1921_v6, 10 }
 0x1c7   :  { %v1241_v28 = vsel %vm70_vm0, %v1239_v1, %v1240_v8  ;;  %v3653_v56 = vadd.f32 %v1741_v49, %v1728_v50  ;;  %v1743_v20 = vrot.slane %v1741_v49, 4  ;;  %v1727_v34 = vadd.f32 %v1724_v16, %v1708_v10 }
 0x1c8   :  { %v1242_v21 = vsel %vm371_vm12, %v1236_v53, %v1241_v28  ;;  %v1482_v4 = vpop.permute.xlu1 %1481  ;;  %v2454_v19 = vrot.slane %v2197_v2, 10  ;;  %v1969_v16 = vmul.f32 %v3680_v9, %v1968_v55 }
 0x1c9   :  { %v1245_v14 = vadd.f32 %v1242_v21, %v1224_v32  ;;  %v1485_v47 = vrot.slane %v1482_v4, 4  ;;  %2166 = vrot.lane.b32.xlu0 %v2451_v23, %s2602_s5 }
 0x1ca   :  { %v1996_v52 = vpop.permute.xlu0 %1995  ;;  %1912 = vrot.lane.b32.xlu1 %v1910_v62, %s2608_s23 }
 0x1cb   :  { %v1487_v29 = vsel %vm70_vm0, %v1485_v47, %v1486_v18  ;;  %v1998_v48 = vrot.slane %v1996_v52, 4  ;;  %v1973_v33 = vstv %s3658_s30 }
 0x1cc   :  { %v1488_v26 = vsel %vm371_vm12, %v1482_v4, %v1487_v29  ;;  %v1739_v22 = vpop.permute.xlu1 %1738  ;;  %v1975_v41 = vmul.f32 %v3187_v27, %v1973_v33  ;;  %v1974_v36 = vmul.f32 %v3680_v9, %v1973_v33 }
 0x1cd   :  { %v1491_v32 = vadd.f32 %v1488_v26, %v1472_v60  ;;  %v1742_v46 = vrot.slane %v1739_v22, 4  ;;  %2188 = vrot.lane.b32.xlu0 %v2186_v63, %s2602_s5 }
 0x1ce   :  { %v1503_v43 = vpop.permute.xlu0 %1502  ;;  %1925 = vrot.lane.b32.xlu1 %v2430_v25, %s2608_s23  ;;  %v2434_v37 = vrot.slane %v1975_v41, 10  ;;  %v2433_v51 = vrot.slane %v1974_v36, 10  ;;  %s2334_s23 = sld [smem:[#allocation11 + $0x2]] }
 0x1cf   :  { %v1744_v42 = vsel %vm70_vm0, %v1742_v46, %v1743_v20  ;;  %v1506_v8 = vrot.slane %v1503_v43, 4 }
 0x1d0   :  { %v1745_v12 = vsel %vm330_vm11, %v1739_v22, %v1744_v42  ;;  %v1994_v57 = vpop.permute.xlu1 %1993  ;;  %v1985_v58 = vadd.f32 %v2434_v37, %v1970_v45  ;;  %v1984_v23 = vadd.f32 %v2433_v51, %v1969_v16 }
 0x1d1   :  { %v1748_v17 = vadd.f32 %v1745_v12, %v1727_v34  ;;  %v1997_v24 = vrot.slane %v1994_v57, 4 }
 0x1d2   :  { %v1758_v38 = vpop.permute.xlu0 %1757  ;;  %2201 = vrot.lane.b32.xlu1 %v2454_v19, %s2602_s5  ;;  %v2004_v28 = vadd.f32 %v1996_v52, %v1985_v58  ;;  %s2335_s5 = sld [smem:[#allocation11 + $0x33]]  ;;  %v2512_v58 = vld [vmem:[#allocation4 + $0x8] sm:$0xff] }
 0x1d3   :  { %v1999_v0 = vsel %vm70_vm0, %v1997_v24, %v1998_v48  ;;  %v1761_v27 = vrot.slane %v1758_v38, 4 }
 0x1d4   :  { %v2000_v15 = vsel %vm330_vm11, %v1994_v57, %v1999_v0  ;;  %v3677_v30 = vpop.permute.xlu1 %995 }
 0x1d6   :  { %v2015_v60 = vpop.permute.xlu0 %2014 }
 0x1d7   :  { %v2018_v6 = vrot.slane %v2015_v60, 4 }
 0x1d8   :  { %v1505_v11 = vpop.permute.xlu1 %1504  ;;  %v872_v16 = vstv %s2335_s5 }
 0x1d9   :  { %v1507_v7 = vrot.slane %v1505_v11, 4  ;;  %v3684_v54 = vadd.f32 %v1505_v11, %v3638_v40  ;;  %v874_v51 = vmul.f32 %v2512_v58, %v872_v16 }
 0x1da   :  { %v1257_v53 = vpop.permute.xlu0 %1256 }
 0x1db   :  { %v1508_v3 = vsel %vm70_vm0, %v1506_v8, %v1507_v7  ;;  %v1258_v59 = vrot.slane %v1257_v53, 4 }
 0x1dc   :  { %v1760_v44 = vpop.permute.xlu1 %1759  ;;  %v1509_v50 = vsel %vm371_vm12, %v1503_v43, %v1508_v3 }
 0x1dd   :  { %v1259_v1 = vsel %vm412_vm13, %v1258_v59, %v1257_v53  ;;  %v3691_v13 = vadd.f32 %v1258_v59, %v3621_v61  ;;  %v1762_v31 = vrot.slane %v1760_v44, 4  ;;  %v1768_v40 = vadd.f32 %v1760_v44, %v3653_v56  ;;  %v4100_v44 = vld [vmem:[#allocation19_spill] sm:$0xff] }
 0x1de   :  { %v3694_v49 = vadd.f32 %v1259_v1, %v1245_v14  ;;  %v1781_v35 = vpop.permute.xlu0 %1780  ;;  %v3696_v18 = vadd.f32 %v1509_v50, %v1491_v32  ;;  %v2003_v56 = vadd.f32 %v2000_v15, %v1984_v23  ;;  %v873_v53 = vmul.f32 %v3680_v9, %v872_v16  ;;  %v4101_v1 = vld [vmem:[#allocation20_spill] sm:$0xff] }
 0x1df   :  { %v1763_v5 = vsel %vm70_vm0, %v1761_v27, %v1762_v31  ;;  %v3699_v21 = vadd.f32 %v1781_v35, %v1768_v40  ;;  %v1783_v14 = vrot.slane %v1781_v35, 4  ;;  %v867_v59 = vstv %s2334_s23  ;;  %v3741_v40 = vld [vmem:[#allocation9] sm:$0x3] }
 0x1e0   :  { %v2017_v4 = vpop.permute.xlu1 %2016  ;;  %v1764_v62 = vsel %vm371_vm12, %v1758_v38, %v1763_v5  ;;  %v896_v50 = vrot.slane %v4100_v44, 4  ;;  %v897_v31 = vrot.slane %v4101_v1, 4  ;;  %v868_v35 = vmul.f32 %v3680_v9, %v867_v59 }
 0x1e1   :  { %v2019_v61 = vrot.slane %v2017_v4, 4  ;;  %v2025_v47 = vadd.f32 %v2017_v4, %v2004_v28  ;;  %v1767_v39 = vadd.f32 %v1764_v62, %v1748_v17  ;;  %v869_v28 = vmul.f32 %v2512_v58, %v867_v59  ;;  %v4102_v62 = vld [vmem:[#allocation21_spill] sm:$0xff] }
 0x1e2   :  { %v2036_v10 = vpop.permute.xlu0 %2035  ;;  %v2336_v23 = vrot.slane %v873_v53, 10  ;;  %v2337_v5 = vrot.slane %v874_v51, 10 }
 0x1e3   :  { %v2020_v20 = vsel %vm70_vm0, %v2018_v6, %v2019_v61  ;;  %v2044_v29 = vadd.f32 %v2036_v10, %v2025_v47  ;;  %v2038_v2 = vrot.slane %v2036_v10, 4  ;;  %v917_v6 = vrot.slane %v4102_v62, 4  ;;  %v4103_v61 = vld [vmem:[#allocation23_spill] sm:$0xff] }
 0x1e4   :  { %v1779_v63 = vpop.permute.xlu1 %1778  ;;  %v2021_v52 = vsel %vm330_vm11, %v2015_v60, %v2020_v20  ;;  %v918_v47 = vrot.slane %v4103_v61, 4  ;;  %v898_v10 = vsel %vm70_vm0, %v896_v50, %v897_v31  ;;  %v883_v20 = vadd.f32 %v2336_v23, %v868_v35  ;;  %v4109_v35 = vld [vmem:[#allocation26_spill] sm:$0xff] }
 0x1e5   :  { %v1782_v26 = vrot.slane %v1779_v63, 4  ;;  %v2024_v22 = vadd.f32 %v2021_v52, %v2003_v56  ;;  %v550_v56 = vadd.s32 4294967293, %v3741_v40 }
 0x1e6   :  { %v3704_v25 = vpop.permute.xlu0 %1269  ;;  %v919_v52 = vsel %vm70_vm0, %v917_v6, %v918_v47 }
 0x1e7   :  { %v1784_v32 = vsel %vm70_vm0, %v1782_v26, %v1783_v14  ;;  %v4104_v26 = vld [vmem:[#allocation22_spill] sm:$0xff]  ;;  %vm551_vm6 = vcmp.ge.s32.totalorder %v550_v56, 0  ;;  %vm552_vm8 = vcmp.lt.s32.totalorder %v550_v56, 16 }
 0x1e8   :  { %v1785_v46 = vsel %vm371_vm12, %v1779_v63, %v1784_v32  ;;  %v2034_v43 = vpop.permute.xlu1 %2033  ;;  %v899_v63 = vsel %vm330_vm11, %v4100_v44, %v898_v10  ;;  %vm553_vm15 = vmand %vm551_vm6, %vm552_vm8  ;;  %v2626_v44 = vmov 0  }
 0x1e9   :  { %v3708_v34 = vadd.f32 %v1785_v46, %v1767_v39  ;;  %v2037_v48 = vrot.slane %v2034_v43, 4  ;;  %v832_v39 = vadd.s32 4294967294, %v3741_v40 }
 0x1ea   :  { %v2055_v42 = vpop.permute.xlu0 %2054 }
 0x1eb   :  { %v2039_v33 = vsel %vm70_vm0, %v2037_v48, %v2038_v2  ;;  %v2058_v0 = vrot.slane %v2055_v42, 4  ;;  %vm833_vm4 = vcmp.ge.s32.totalorder %v832_v39, 0  ;;  %vm834_vm5 = vcmp.lt.s32.totalorder %v832_v39, 16  ;;  %v4105_v2 = vld [vmem:[#allocation25_spill] sm:$0xff] }
 0x1ec   :  { %v2040_v12 = vsel %vm371_vm12, %v2034_v43, %v2039_v33  ;;  %v3712_v57 = vpop.permute.xlu1 %1020  ;;  %v937_v32 = vrot.slane %v4105_v2, 4  ;;  %v902_v43 = vadd.f32 %v899_v63, %v883_v20  ;;  %vm835_vm14 = vmand %vm833_vm4, %vm834_vm5  ;;  %v920_v33 = vsel %vm330_vm11, %v4102_v62, %v919_v52 }
 0x1ed   :  { %v2043_v19 = vadd.f32 %v2040_v12, %v2024_v22  ;;  %v936_v22 = vrot.slane %v4104_v26, 4  ;;  %v4106_v12 = vld [vmem:[#allocation24_spill] sm:$0xff]  ;;  %v836_v50 = vsel %vm835_vm14, 1, %v2626_v44  ;;  %vm856_vm11 = vcmask 408576  }
 0x1ee   :  { %v3714_v17 = vpop.permute.xlu0 %1034  ;;  %v923_v58 = vadd.f32 %v920_v33, %v902_v43  ;;  %v998_v20 = vrot.slane %v3677_v30, 4 }
 0x1f0   :  { %v3716_v24 = vpop.permute.xlu1 %1529 }
 0x1f2   :  { %v3718_v38 = vpop.permute.xlu0 %1542 }
 0x1f4   :  { %v2057_v41 = vpop.permute.xlu1 %2056 }
 0x1f5   :  { %v2059_v55 = vrot.slane %v2057_v41, 4  ;;  %v3720_v15 = vadd.f32 %v2057_v41, %v2044_v29  ;;  %v884_v29 = vadd.f32 %v2337_v5, %v869_v28  ;;  %v938_v41 = vsel %vm70_vm0, %v936_v22, %v937_v32  ;;  %v4110_v5 = vld [vmem:[#allocation29_spill] sm:$0xff]  ;;  %v4111_v32 = vld [vmem:[#allocation27_spill] sm:$0xff] }
 0x1f6   :  { %v3722_v60 = vpop.permute.xlu0 %1057  ;;  %v939_v31 = vsel %vm371_vm12, %v4104_v26, %v938_v41  ;;  %v976_v28 = vrot.slane %v4109_v35, 4  ;;  %v977_v62 = vrot.slane %v4110_v5, 4  ;;  %v997_v43 = vrot.slane %v4111_v32, 4 }
 0x1f7   :  { %v2060_v45 = vsel %vm70_vm0, %v2058_v0, %v2059_v55  ;;  %v903_v48 = vadd.f32 %v4101_v1, %v884_v29  ;;  %v4107_v0 = vld [vmem:[#allocation28_spill] sm:$0xff]  ;;  %v554_v1 = vsel %vm553_vm15, 1, %v2626_v44  ;;  %v942_v29 = vadd.f32 %v939_v31, %v923_v58 }
 0x1f8   :  { %v3725_v37 = vpop.permute.xlu1 %1291  ;;  %v2061_v36 = vsel %vm371_vm12, %v2055_v42, %v2060_v45  ;;  %v958_v55 = vrot.slane %v4107_v0, 4  ;;  %v999_v41 = vsel %vm70_vm0, %v997_v43, %v998_v20  ;;  %v1544_v43 = vrot.slane %v3718_v38, 4 }
 0x1f9   :  { %v3728_v11 = vadd.f32 %v2061_v36, %v2043_v19  ;;  %v957_v19 = vrot.slane %v4106_v12, 4  ;;  %v4108_v36 = vld [vmem:[#allocation17_spill] sm:$0xff]  ;;  %v924_v51 = vadd.f32 %v4103_v61, %v903_v48  ;;  %v978_v48 = vsel %vm70_vm0, %v976_v28, %v977_v62 }
 0x1fa   :  { %v3730_v8 = vpop.permute.xlu0 %1565  ;;  %v3769_v16 = vsub.s32 1, %v4108_v36  ;;  %v3772_v53 = vsub.s32 0, %v4108_v36  ;;  %v979_v58 = vsel %vm412_vm13, %v4109_v35, %v978_v48 }
 0x1fb   :  { %v959_v23 = vsel %vm70_vm0, %v957_v19, %v958_v55  ;;  %v943_v56 = vadd.f32 %v4105_v2, %v924_v51  ;;  %v1022_v51 = vrot.slane %v3712_v57, 4 }
 0x1fc   :  { %v3732_v7 = vpop.permute.xlu1 %1805  ;;  %v844_v6 = vrot.slane %v836_v50, %v3769_v16  ;;  %v840_v61 = vrot.slane %v836_v50, %v3772_v53  ;;  %v558_v39 = vrot.slane %v554_v1, %v3772_v53  ;;  %v562_v10 = vrot.slane %v554_v1, %v3769_v16 }
 0x1fd   :  { %v960_v26 = vsel %vm371_vm12, %v4106_v12, %v959_v23  ;;  %v964_v12 = vadd.f32 %v4107_v0, %v943_v56  ;;  %v1000_v0 = vsel %vm412_vm13, %v4111_v32, %v999_v41  ;;  %v1271_v56 = vrot.slane %v3704_v25, 4 }
 0x1fe   :  { %v3737_v27 = vpop.permute.xlu0 %2081  ;;  %vm3792_vm2 = vcmp.eq.s32.totalorder %v844_v6, 1  ;;  %vm3796_vm4 = vcmp.eq.s32.totalorder %v840_v61, 1  ;;  %vm563_vm5 = vcmp.eq.s32.totalorder %v558_v39, 1  ;;  %vm564_vm6 = vcmp.eq.s32.totalorder %v562_v10, 1 }
 0x1ff   :  { %v963_v55 = vadd.f32 %v960_v26, %v942_v29  ;;  %v1036_v61 = vrot.slane %v3714_v17, 4  ;;  %v1531_v39 = vrot.slane %v3716_v24, 4  ;;  %v983_v10 = vadd.f32 %v4110_v5, %v964_v12 }
 0x200   :  { %v3735_v3 = vpop.permute.xlu1 %1304  ;;  %v1059_v29 = vrot.slane %v3722_v60, 4  ;;  %v1272_v33 = vsel %vm412_vm13, %v1271_v56, %v3704_v25  ;;  %vm1383_vm12 = vcmp.lt.s32.totalorder %v3741_v40, 16 }
 0x201   :  { %v1532_v5 = vsel %vm1088_vm9, %v1531_v39, %v3716_v24  ;;  %v1275_v25 = vadd.f32 %v1272_v33, %v3694_v49 }
 0x202   :  { %v3751_v14 = vpop.permute.xlu0 %1326  ;;  %v1060_v12 = vsel %vm1023_vm3, %v1059_v29, %v3722_v60  ;;  %v1535_v24 = vadd.f32 %v1532_v5, %v3696_v18  ;;  %v1567_v60 = vrot.slane %v3730_v8, 4 }
 0x204   :  { %v3744_v4 = vpop.permute.xlu1 %1818 }
 0x208   :  { %v3753_v9 = vpop.permute.xlu1 %1070 }
 0x209   :  { %v1072_v48 = vrot.slane %v3753_v9, 4 }
 0x20b   :  { %v573_v46 = vpop.permute.xlu0 %572 }
 0x20c   :  { %v3761_v42 = vpop.permute.xlu1 %1578 }
 0x20f   :  { %v569_v45 = vpop.permute.xlu0 %568 }
 0x210   :  { %v855_v59 = vpop.permute.xlu1 %854 }
 0x213   :  { %v853_v47 = vpop.permute.xlu0 %852 }
 0x214   :  { %v858_v63 = vsel %vm856_vm11, %v853_v47, %v855_v59  ;;  %v851_v52 = vpop.permute.xlu1 %850 }
 0x215   :  { %v857_v22 = vsel %vm856_vm11, %v851_v52, %v853_v47  ;;  %v862_v1 = vsel %vm3792_vm2, %v858_v63, 0.0  ;;  %v982_v47 = vadd.f32 %v979_v58, %v963_v55  ;;  %v1004_v52 = vadd.f32 %v3677_v30, %v983_v10 }
 0x216   :  { %v861_v31 = vsel %vm3796_vm4, %v857_v22, 0.0  ;;  %v1293_v22 = vrot.slane %v3725_v37, 4  ;;  %v1306_v30 = vrot.slane %v3735_v3, 4  ;;  %vm1138_vm2 = vcmask 400384  }
 0x217   :  { %v3800_v19 = vpop.permute.xlu0 %1841  ;;  %v1003_v20 = vadd.f32 %v1000_v0, %v982_v47  ;;  %v1028_v2 = vadd.f32 %v1022_v51, %v1004_v52 }
 0x218   :  { %v571_v36 = vpop.permute.xlu1 %570  ;;  %v1294_v58 = vsel %vm412_vm13, %v1293_v22, %v3725_v37  ;;  %v1307_v18 = vsel %vm412_vm13, %v1306_v30, %v3735_v3  ;;  %v1276_v37 = vadd.f32 %v1271_v56, %v3691_v13  ;;  %v1568_v3 = vsel %vm1088_vm9, %v1567_v60, %v3730_v8 }
 0x219   :  { %v575_v59 = vsel %vm574_vm1, %v569_v45, %v571_v36  ;;  %v576_v50 = vsel %vm574_vm1, %v571_v36, %v573_v46  ;;  %v1024_v46 = vsel %vm1023_vm3, %v1022_v51, %v3712_v57  ;;  %v1037_v57 = vsel %vm1023_vm3, %v1036_v61, %v3714_v17 }
 0x21a   :  { %v579_v28 = vsel %vm563_vm5, %v575_v59, 0.0  ;;  %v580_v23 = vsel %vm564_vm6, %v576_v50, 0.0  ;;  %v1027_v26 = vadd.f32 %v1024_v46, %v1003_v20  ;;  %v1536_v36 = vadd.f32 %v1531_v39, %v3684_v54 }
 0x21b   :  { %v3813_v62 = vadd.f32 %v861_v31, %v579_v28  ;;  %v3815_v6 = vadd.f32 %v862_v1, %v580_v23  ;;  %v3817_v35 = vpop.permute.xlu0 %1093  ;;  %v1545_v51 = vsel %vm1088_vm9, %v1544_v43, %v3718_v38  ;;  %v1073_v50 = vsel %vm1023_vm3, %v1072_v48, %v3753_v9 }
 0x21c   :  { %v3819_v45 = vpop.permute.xlu1 %2094  ;;  %v1095_v41 = vrot.slane %v3817_v35, 4  ;;  %v1040_v17 = vadd.f32 %v1037_v57, %v1027_v26  ;;  %v1328_v54 = vrot.slane %v3751_v14, 4  ;;  %v1041_v31 = vadd.f32 %v1036_v61, %v1028_v2 }
 0x21d   :  { %v1297_v28 = vadd.f32 %v1294_v58, %v1275_v25  ;;  %v1548_v38 = vadd.f32 %v1545_v51, %v1535_v24  ;;  %v1549_v0 = vadd.f32 %v1544_v43, %v1536_v36  ;;  %v1807_v13 = vrot.slane %v3732_v7, 4 }
 0x21e   :  { %v1063_v1 = vadd.f32 %v1060_v12, %v1040_v17  ;;  %v1096_v49 = vsel %vm1023_vm3, %v1095_v41, %v3817_v35  ;;  %v1064_v39 = vadd.f32 %v1059_v29, %v1041_v31  ;;  %v1329_v61 = vsel %vm412_vm13, %v1328_v54, %v3751_v14 }
 0x21f   :  { %v3828_v63 = vpop.permute.xlu0 %1601  ;;  %v1310_v10 = vadd.f32 %v1307_v18, %v1297_v28  ;;  %v1298_v52 = vadd.f32 %v1293_v22, %v1276_v37  ;;  %v1572_v26 = vadd.f32 %v1567_v60, %v1549_v0  ;;  %v1580_v57 = vrot.slane %v3761_v42, 4 }
 0x220   :  { %v3832_v32 = vpop.permute.xlu1 %1339  ;;  %v1076_v47 = vadd.f32 %v1073_v50, %v1063_v1  ;;  %v2083_v8 = vrot.slane %v3737_v27, 4  ;;  %v1077_v43 = vadd.f32 %v1072_v48, %v1064_v39  ;;  %v1571_v14 = vadd.f32 %v1568_v3, %v1548_v38 }
 0x221   :  { %v1341_v9 = vrot.slane %v3832_v32, 4  ;;  %v1311_v17 = vadd.f32 %v1306_v30, %v1298_v52  ;;  %v1332_v24 = vadd.f32 %v1329_v61, %v1310_v10  ;;  %v1603_v22 = vrot.slane %v3828_v63, 4 }
 0x222   :  { %v1099_v35 = vadd.f32 %v1096_v49, %v1076_v47  ;;  %v1808_v36 = vsel %vm806_vm10, %v1807_v13, %v3732_v7  ;;  %v1100_v58 = vadd.f32 %v1095_v41, %v1077_v43  ;;  %v1581_v48 = vsel %vm1088_vm9, %v1580_v57, %v3761_v42 }
 0x223   :  { %v3846_v55 = vpop.permute.xlu0 %2117  ;;  %v1342_v33 = vsel %vm412_vm13, %v1341_v9, %v3832_v32  ;;  %v3890_v32 = vadd.f32 %v1807_v13, %v3699_v21  ;;  %v2084_v7 = vsel %vm524_vm7, %v2083_v8, %v3737_v27  ;;  %v1820_v41 = vrot.slane %v3744_v4, 4 }
 0x224   :  { %v3852_v59 = vpop.permute.xlu1 %1854  ;;  %v1345_v30 = vadd.f32 %v1342_v33, %v1332_v24  ;;  %v1811_v21 = vadd.f32 %v1808_v36, %v3708_v34  ;;  %v1333_v31 = vadd.f32 %v1328_v54, %v1311_v17  ;;  %v1604_v42 = vsel %vm1088_vm9, %v1603_v22, %v3828_v63 }
 0x225   :  { %v1584_v49 = vadd.f32 %v1581_v48, %v1571_v14  ;;  %v2096_v38 = vrot.slane %v3819_v45, 4  ;;  %v2087_v47 = vadd.f32 %v2084_v7, %v3728_v11  ;;  %v1821_v63 = vsel %vm806_vm10, %v1820_v41, %v3744_v4 }
 0x226   :  { %v1585_v3 = vadd.f32 %v1580_v57, %v1572_v26  ;;  %v1856_v61 = vrot.slane %v3852_v59, 4  ;;  %vm1405_vm6 = vcmask 392192  }
 0x227   :  { %v3866_v23 = vpop.permute.xlu0 %1361  ;;  %v1607_v10 = vadd.f32 %v1604_v42, %v1584_v49 }
 0x228   :  { %v1107_v46 = vpop.permute.xlu1 %1106  ;;  %v1363_v56 = vrot.slane %v3866_v23, 4  ;;  %v1608_v43 = vadd.f32 %v1603_v22, %v1585_v3  ;;  %v1857_v22 = vsel %vm806_vm10, %v1856_v61, %v3852_v59 }
 0x229   :  { %v1108_v20 = vrot.slane %v1107_v46, 4 }
 0x22a   :  { %v1364_v25 = vsel %vm412_vm13, %v1363_v56, %v3866_v23  ;;  %v1843_v23 = vrot.slane %v3800_v19, 4 }
 0x22b   :  { %v1109_v5 = vsel %vm1023_vm3, %v1108_v20, %v1107_v46  ;;  %v3877_v29 = vpop.permute.xlu0 %1877  ;;  %v1113_v1 = vadd.f32 %v1108_v20, %v1100_v58  ;;  %v1367_v28 = vadd.f32 %v1364_v25, %v1345_v30  ;;  %v1346_v46 = vadd.f32 %v1341_v9, %v1333_v31 }
 0x22c   :  { %v1112_v2 = vadd.f32 %v1109_v5, %v1099_v35  ;;  %v3882_v12 = vpop.permute.xlu1 %1614  ;;  %v2119_v20 = vrot.slane %v3846_v55, 4  ;;  %v1844_v9 = vsel %vm806_vm10, %v1843_v23, %v3800_v19  ;;  %v2097_v5 = vsel %vm524_vm7, %v2096_v38, %v3819_v45 }
 0x22d   :  { %v1616_v60 = vrot.slane %v3882_v12, 4  ;;  %v1368_v35 = vadd.f32 %v1363_v56, %v1346_v46  ;;  %v1879_v26 = vrot.slane %v3877_v29, 4  ;;  %v2088_v25 = vadd.f32 %v2083_v8, %v3720_v15 }
 0x22e   :  { %v1131_v51 = vcombine.high %v1112_v2, %v1112_v2  ;;  %1132 = vrot.lane.b32.xlu0 %v1112_v2, %s2627_s19  ;;  %v2120_v45 = vsel %vm524_vm7, %v2119_v20, %v3846_v55  ;;  %v2100_v48 = vadd.f32 %v2097_v5, %v2087_v47 }
 0x22f   :  { %v1375_v50 = vpop.permute.xlu0 %1374  ;;  %v1617_v39 = vsel %vm1088_vm9, %v1616_v60, %v3882_v12  ;;  %v1824_v12 = vadd.f32 %v1821_v63, %v1811_v21  ;;  %v1621_v36 = vadd.f32 %v1616_v60, %v1608_v43  ;;  %v1825_v60 = vadd.f32 %v1820_v41, %v3890_v32 }
 0x230   :  { %v1376_v18 = vrot.slane %v1375_v50, 4  ;;  %1134 = vrot.lane.b32.xlu1 %v1131_v51, %s2627_s19  ;;  %v3900_v37 = vpop.permute.xlu1 %2130  ;;  %v1620_v4 = vadd.f32 %v1617_v39, %v1607_v10  ;;  %v2123_v21 = vadd.f32 %v2120_v45, %v2100_v48  ;;  %v2101_v47 = vadd.f32 %v2096_v38, %v2088_v25 }
 0x231   :  { %v2132_v33 = vrot.slane %v3900_v37, 4  ;;  %v1847_v51 = vadd.f32 %v1844_v9, %v1824_v12  ;;  %v1657_v25 = vadd.s32 1, %v3741_v40 }
 0x232   :  { %v1377_v0 = vsel %vm412_vm13, %v1376_v18, %v1375_v50  ;;  %1136 = vrot.lane.b32.xlu0 %v1113_v1, %s2627_s19  ;;  %v1381_v57 = vadd.f32 %v1376_v18, %v1368_v35  ;;  %v1880_v50 = vsel %vm806_vm10, %v1879_v26, %v3877_v29  ;;  %v1848_v29 = vadd.f32 %v1843_v23, %v1825_v60 }
 0x233   :  { %v1380_v34 = vadd.f32 %v1377_v0, %v1367_v28  ;;  %v3911_v54 = vpop.permute.xlu0 %1890  ;;  %v2133_v7 = vsel %vm524_vm7, %v2132_v33, %v3900_v37  ;;  %v1860_v31 = vadd.f32 %v1857_v22, %v1847_v51  ;;  %v2124_v23 = vadd.f32 %v2119_v20, %v2101_v47 }
 0x234   :  { %v1637_v13 = vpop.permute.xlu1 %1636  ;;  %v1892_v14 = vrot.slane %v3911_v54, 4  ;;  %v2136_v0 = vadd.f32 %v2133_v7, %v2123_v21  ;;  %v1861_v39 = vadd.f32 %v1856_v61, %v1848_v29  ;;  %v1114_v22 = vadd.s32 4294967295, %v3741_v40 }
 0x235   :  { %v1398_v52 = vcombine.high %v1380_v34, %v1380_v34  ;;  %v1638_v11 = vrot.slane %v1637_v13, 4  ;;  %1399 = vrot.lane.b32.xlu1 %v1380_v34, %s2628_s20  ;;  %v1883_v37 = vadd.f32 %v1880_v50, %v1860_v31  ;;  %v2137_v9 = vadd.f32 %v2132_v33, %v2124_v23 }
 0x236   :  { %v1893_v15 = vsel %vm806_vm10, %v1892_v14, %v3911_v54  ;;  %v1884_v35 = vadd.f32 %v1879_v26, %v1861_v39  ;;  %vm1115_vm0 = vcmp.ge.s32.totalorder %v1114_v22, 0  ;;  %v1933_v51 = vadd.s32 2, %v3741_v40 }
 0x237   :  { %v1639_v2 = vsel %vm1088_vm9, %v1638_v11, %v1637_v13  ;;  %v1650_v56 = vpop.permute.xlu0 %1649  ;;  %1401 = vrot.lane.b32.xlu0 %v1398_v52, %s2628_s20  ;;  %v1643_v1 = vadd.f32 %v1638_v11, %v1621_v36  ;;  %v1896_v34 = vadd.f32 %v1893_v15, %v1883_v37  ;;  %vm1659_vm3 = vcmp.lt.s32.totalorder %v1657_v25, 16 }
 0x238   :  { %v1642_v17 = vadd.f32 %v1639_v2, %v1620_v4  ;;  %v1651_v24 = vrot.slane %v1650_v56, 4  ;;  %v2154_v19 = vpop.permute.xlu1 %2153  ;;  %v1897_v5 = vadd.f32 %v1892_v14, %v1884_v35  ;;  %vm1934_vm14 = vcmp.ge.s32.totalorder %v1933_v51, 0 }
 0x239   :  { %v2155_v58 = vrot.slane %v2154_v19, 4  ;;  %1403 = vrot.lane.b32.xlu1 %v1381_v57, %s2628_s20  ;;  %vm1935_vm15 = vcmp.lt.s32.totalorder %v1933_v51, 16  ;;  %v2209_v7 = vadd.s32 3, %v3741_v40 }
 0x23a   :  { %v1652_v30 = vsel %vm1088_vm9, %v1651_v24, %v1650_v56  ;;  %v1656_v46 = vadd.f32 %v1651_v24, %v1643_v1  ;;  %vm1658_vm9 = vcmp.ge.s32.totalorder %v1657_v25, 0  ;;  %vm1936_vm1 = vmand %vm1934_vm14, %vm1935_vm15 }
 0x23b   :  { %v1655_v18 = vadd.f32 %v1652_v30, %v1642_v17  ;;  %v2167_v59 = vpop.permute.xlu0 %2166  ;;  %v2156_v42 = vsel %vm524_vm7, %v2155_v58, %v2154_v19  ;;  %v2160_v2 = vadd.f32 %v2155_v58, %v2137_v9  ;;  %vm1660_vm11 = vmand %vm1658_vm9, %vm1659_vm3  ;;  %vm2210_vm4 = vcmp.ge.s32.totalorder %v2209_v7, 0 }
 0x23c   :  { %v1913_v27 = vpop.permute.xlu1 %1912  ;;  %v2168_v28 = vrot.slane %v2167_v59, 4  ;;  %v2159_v54 = vadd.f32 %v2156_v42, %v2136_v0  ;;  %v1661_v21 = vsel %vm1660_vm11, 1, %v2626_v44  ;;  %vm2211_vm5 = vcmp.lt.s32.totalorder %v2209_v7, 16 }
 0x23d   :  { %v1674_v8 = vcombine.high %v1655_v18, %v1655_v18  ;;  %v1914_v49 = vrot.slane %v1913_v27, 4  ;;  %1675 = vrot.lane.b32.xlu0 %v1655_v18, %s2629_s21  ;;  %v1669_v29 = vrot.slane %v1661_v21, %v3769_v16  ;;  %vm1957_vm9 = vcmask 375808  }
 0x23e   :  { %v2169_v10 = vsel %vm524_vm7, %v2168_v28, %v2167_v59  ;;  %v2173_v24 = vadd.f32 %v2168_v28, %v2160_v2 }
 0x23f   :  { %v1915_v32 = vsel %vm806_vm10, %v1914_v49, %v1913_v27  ;;  %v2189_v41 = vpop.permute.xlu0 %2188  ;;  %1677 = vrot.lane.b32.xlu1 %v1674_v8, %s2629_s21  ;;  %v2172_v61 = vadd.f32 %v2169_v10, %v2159_v54  ;;  %v1919_v56 = vadd.f32 %v1914_v49, %v1897_v5  ;;  %v1937_v27 = vsel %vm1936_vm1, 1, %v2626_v44 }
 0x240   :  { %v2190_v63 = vrot.slane %v2189_v41, 4  ;;  %v1926_v3 = vpop.permute.xlu1 %1925  ;;  %v1918_v52 = vadd.f32 %v1915_v32, %v1896_v34  ;;  %v1665_v49 = vrot.slane %v1661_v21, %v3772_v53  ;;  %v1941_v0 = vrot.slane %v1937_v27, %v3772_v53 }
 0x241   :  { %v1927_v13 = vrot.slane %v1926_v3, 4  ;;  %1679 = vrot.lane.b32.xlu0 %v1656_v46, %s2629_s21  ;;  %v1945_v54 = vrot.slane %v1937_v27, %v3769_v16  ;;  %vm4000_vm14 = vcmp.eq.s32.totalorder %v1669_v29, 1  ;;  %vm2233_vm1 = vcmask 367616  }
 0x242   :  { %v2191_v38 = vsel %vm524_vm7, %v2190_v63, %v2189_v41  ;;  %v2195_v19 = vadd.f32 %v2190_v63, %v2173_v24  ;;  %vm4004_vm15 = vcmp.eq.s32.totalorder %v1941_v0, 1 }
 0x243   :  { %v1928_v11 = vsel %vm806_vm10, %v1927_v13, %v1926_v3  ;;  %v2194_v12 = vadd.f32 %v2191_v38, %v2172_v61  ;;  %v1932_v20 = vadd.f32 %v1927_v13, %v1919_v56  ;;  %vm1116_vm10 = vcmp.lt.s32.totalorder %v1114_v22, 16 }
 0x244   :  { %v1931_v43 = vadd.f32 %v1928_v11, %v1918_v52  ;;  %v2202_v4 = vpop.permute.xlu1 %2201  ;;  %vm1117_vm13 = vmand %vm1115_vm0, %vm1116_vm10  ;;  %vm4016_vm11 = vcmp.eq.s32.totalorder %v1945_v54, 1 }
 0x245   :  { %v2203_v57 = vrot.slane %v2202_v4, 4  ;;  %v1118_v50 = vsel %vm1117_vm13, 1, %v2626_v44  ;;  %vm2212_vm10 = vmand %vm2210_vm4, %vm2211_vm5 }
 0x246   :  { %v1950_v17 = vcombine.high %v1931_v43, %v1931_v43  ;;  %1951 = vrot.lane.b32.xlu1 %v1931_v43, %s2630_s22  ;;  %v1122_v60 = vrot.slane %v1118_v50, %v3772_v53  ;;  %v1126_v31 = vrot.slane %v1118_v50, %v3769_v16  ;;  %v2213_v63 = vsel %vm2212_vm10, 1, %v2626_v44 }
 0x247   :  { %v2204_v55 = vsel %vm524_vm7, %v2203_v57, %v2202_v4  ;;  %v2208_v14 = vadd.f32 %v2203_v57, %v2195_v19  ;;  %vm1382_vm7 = vcmp.ge.s32.totalorder %v3741_v40, 0  ;;  %v2217_v43 = vrot.slane %v2213_v63, %v3772_v53 }
 0x248   :  { %v2207_v26 = vadd.f32 %v2204_v55, %v2194_v12  ;;  %1953 = vrot.lane.b32.xlu0 %v1950_v17, %s2630_s22  ;;  %vm1384_vm8 = vmand %vm1382_vm7, %vm1383_vm12  ;;  %vm3963_vm0 = vcmp.eq.s32.totalorder %v1122_v60, 1  ;;  %vm1681_vm7 = vcmask 384000   ;;  %vm3972_vm12 = vcmp.eq.s32.totalorder %v1126_v31, 1 }
 0x249   :  { %v1385_v1 = vsel %vm1384_vm8, 1, %v2626_v44  ;;  %vm3991_vm8 = vcmp.eq.s32.totalorder %v1665_v49, 1  ;;  %v2221_v55 = vrot.slane %v2213_v63, %v3769_v16 }
 0x24a   :  { %1955 = vrot.lane.b32.xlu1 %v1932_v20, %s2630_s22  ;;  %v2226_v33 = vcombine.high %v2207_v26, %v2207_v26  ;;  %v1389_v15 = vrot.slane %v1385_v1, %v3772_v53  ;;  %v1393_v28 = vrot.slane %v1385_v1, %v3769_v16 }
 0x24b   :  { %vm2223_vm4 = vcmp.eq.s32.totalorder %v2221_v55, 1 }
 0x24c   :  { %2227 = vrot.lane.b32.xlu0 %v2207_v26, %s2631_s24  ;;  %vm3977_vm13 = vcmp.eq.s32.totalorder %v1389_v15, 1  ;;  %vm3986_vm3 = vcmp.eq.s32.totalorder %v1393_v28, 1 }
 0x24e   :  { %2229 = vrot.lane.b32.xlu1 %v2226_v33, %s2631_s24 }
 0x250   :  { %2231 = vrot.lane.b32.xlu0 %v2208_v14, %s2631_s24 }
 0x2a0   :  { %v1133_v45 = vpop.permute.xlu0 %1132 }
 0x2a2   :  { %v1135_v36 = vpop.permute.xlu1 %1134 }
 0x2a3   :  { %v1139_v42 = vsel %vm1138_vm2, %v1133_v45, %v1135_v36 }
 0x2a4   :  { %v1137_v58 = vpop.permute.xlu0 %1136  ;;  %v1143_v39 = vsel %vm3963_vm0, %v1139_v42, 0.0 }
 0x2a5   :  { %v1140_v46 = vsel %vm1138_vm2, %v1135_v36, %v1137_v58  ;;  %v1145_v9 = vadd.f32 %v1143_v39, %v3813_v62  ;;  %vm2222_vm2 = vcmp.eq.s32.totalorder %v2217_v43, 1 }
 0x2a6   :  { %v1144_v35 = vsel %vm3972_vm12, %v1140_v46, 0.0 }
 0x2a7   :  { %v1400_v48 = vpop.permute.xlu1 %1399  ;;  %v1146_v12 = vadd.f32 %v1144_v35, %v3815_v6 }
 0x2a9   :  { %v1402_v30 = vpop.permute.xlu0 %1401 }
 0x2aa   :  { %v1406_v41 = vsel %vm1405_vm6, %v1400_v48, %v1402_v30 }
 0x2ab   :  { %v1404_v18 = vpop.permute.xlu1 %1403  ;;  %v1410_v52 = vsel %vm3977_vm13, %v1406_v41, 0.0 }
 0x2ac   :  { %v1407_v10 = vsel %vm1405_vm6, %v1402_v30, %v1404_v18  ;;  %v1412_v62 = vadd.f32 %v1410_v52, %v1145_v9 }
 0x2ad   :  { %v1411_v4 = vsel %vm3986_vm3, %v1407_v10, 0.0 }
 0x2ae   :  { %v1413_v24 = vadd.f32 %v1411_v4, %v1146_v12 }
 0x2af   :  { %v1676_v59 = vpop.permute.xlu0 %1675 }
 0x2b1   :  { %v1678_v40 = vpop.permute.xlu1 %1677 }
 0x2b2   :  { %v1682_v23 = vsel %vm1681_vm7, %v1676_v59, %v1678_v40 }
 0x2b3   :  { %v1680_v37 = vpop.permute.xlu0 %1679  ;;  %v1686_v57 = vsel %vm3991_vm8, %v1682_v23, 0.0 }
 0x2b4   :  { %v1683_v5 = vsel %vm1681_vm7, %v1678_v40, %v1680_v37  ;;  %v1688_v19 = vadd.f32 %v1686_v57, %v1412_v62 }
 0x2b5   :  { %v1687_v53 = vsel %vm4000_vm14, %v1683_v5, 0.0 }
 0x2b6   :  { %v1689_v14 = vadd.f32 %v1687_v53, %v1413_v24 }
 0x2b8   :  { %v1952_v34 = vpop.permute.xlu1 %1951 }
 0x2ba   :  { %v1954_v11 = vpop.permute.xlu0 %1953 }
 0x2bb   :  { %v1958_v61 = vsel %vm1957_vm9, %v1952_v34, %v1954_v11 }
 0x2bc   :  { %v1956_v56 = vpop.permute.xlu1 %1955  ;;  %v1962_v20 = vsel %vm4004_vm15, %v1958_v61, 0.0 }
 0x2bd   :  { %v1959_v17 = vsel %vm1957_vm9, %v1954_v11, %v1956_v56  ;;  %v1964_v45 = vadd.f32 %v1962_v20, %v1688_v19 }
 0x2be   :  { %v2228_v26 = vpop.permute.xlu0 %2227  ;;  %v1963_v33 = vsel %vm4016_vm11, %v1959_v17, 0.0 }
 0x2bf   :  { %v1965_v58 = vadd.f32 %v1963_v33, %v1689_v14 }
 0x2c0   :  { %v2230_v6 = vpop.permute.xlu1 %2229 }
 0x2c1   :  { %v2234_v22 = vsel %vm2233_vm1, %v2228_v26, %v2230_v6 }
 0x2c2   :  { %v2238_v16 = vsel %vm2222_vm2, %v2234_v22, 0.0  ;;  %v2232_v36 = vpop.permute.xlu0 %2231 }
 0x2c3   :  { %v2240_v25 = vadd.f32 %v2238_v16, %v1964_v45  ;;  %v2235_v51 = vsel %vm2233_vm1, %v2230_v6, %v2232_v36 }
 0x2c4   :  { %v2239_v48 = vsel %vm2223_vm4, %v2235_v51, 0.0 }
 0x2c5   :  { %v2455_v30 = vmul.f32 -1.442695, %v2240_v25  ;;  %v2241_v50 = vadd.f32 %v2239_v48, %v1965_v58 }
 0x2c7   :  { %2501 = vpow2.f32 %v2455_v30  ;;  %v2456_v7 = vmul.f32 -1.442695, %v2241_v50 }
 0x2c9   :  { %2503 = vpow2.f32 %v2456_v7 }
 0x2d4   :  { %v2502_v1 = vpop.eup %2501 }
 0x2d5   :  { %v2248_v18 = vadd.f32 1.0, %v2502_v1 }
 0x2d6   :  { %v2504_v59 = vpop.eup %2503 }
 0x2d7   :  { %v2249_v60 = vadd.f32 1.0, %v2504_v59  ;;  %2505 = vrcp.f32 %v2248_v18 }
 0x2d9   :  { %2507 = vrcp.f32 %v2249_v60 }
 0x2e4   :  { %v2506_v21 = vpop.eup %2505 }
 0x2e6   :  { %v2508_v31 = vpop.eup %2507 }
 0x2e7   :  { %v2256_v15 = vcombine.low %v2506_v21, %v2508_v31 }
 0x2e9   :  { %2457 = vst.sshfl [vmem:[#allocation12] sm:$0x33 pattern:$0x76325410] %v2256_v15 }
 0x2ea   :  { %2576 = shalt.err (!%p2573_p5)
}
 0x2eb   :  { %2275 = dma.vmem_to_hbm [thread:$0]  %s2273_s2, 64, %s4035_s3, [#allocation7]  }
 0x2ec   :  { %2591 = dma.done.wait [#allocation7], 64  }
 0x2ed   :  { %2592 = vsyncadd [#allocation7], 4294967232 }
 0x2ee   :  { %2279 = vsyncpa [#allocation6], 1 }
 0x2ef   :  { %2280 = vsyncpa [#allocation10], 1 }
 0x2f0   :  { %2281 = vsyncpa [#allocation7], 1 }
 0x2f1   :  { %2282 = vsyncpa [#allocation8], 1 }

</bundles_post_ra>
